<compile_context>
chip_gen: v5e
topology: v5e:2x2
jax: 0.10.0
libtpu: 0.0.40
codegen_flags: <defaults>
</compile_context>

<pallas_src>
import functools

import jax
import jax.numpy as jnp
from jax.experimental import pallas as pl
from jax.experimental.pallas import tpu as pltpu

BN_EPS = 1e-5


# ------------------------------ fused kernel --------------------------------

def _base_pc_kernel(x0_ref, mask_ref, w1_ref, w4_ref, w7_ref, bn_ref,
                    o_ref, patch_ref, *, N, H, W, CPAD):
    """Whole basePC forward on one (N, H, W) batch.

    x0_ref:    (3, M)        f32, M = N*H*W, column m = n*H*W + h*W + w
    mask_ref:  (9, M)        f32 0/1 per-tap boundary masks, tap t=(dy+1)*3+(dx+1)
    w*_ref:    (Cout, 9*Cin) f32 im2col weights, col = t*Cin + ci
    bn_ref:    (6*CPAD, 1)   f32 packed BN params [g1,b1,g4,b4,g7,b7]
    o_ref:     (N, pn^2, H*W) f32 output (NCHW-ordered, lane-dense last dim)
    patch_ref: (9*Cmax, M)   f32 VMEM im2col staging buffer
    """
    HW = H * W
    M = N * HW

    def conv3x3(act, w_ref):
        """3x3 'same' conv of act (Cin, M) -> (Cout, M) via one im2col matmul."""
        cin = act.shape[0]
        t = 0
        for dy in (-1, 0, 1):
            for dx in (-1, 0, 1):
                s = dy * W + dx
                # tap[:, m] = act[:, (m + s) mod M]; boundary mask zeroes every
                # cross-row / cross-image wrap, so circular roll == zero halo.
                tap = act if s == 0 else pltpu.roll(act, shift=(-s) % M, axis=1)
                if t != 4:  # center tap needs no mask
                    tap = tap * mask_ref[t:t + 1, :]
                patch_ref[t * cin:(t + 1) * cin, :] = tap
                t += 1
        return jnp.dot(w_ref[...], patch_ref[0:9 * cin, :],
                       preferred_element_type=jnp.float32)

    def bn_relu(y, layer):
        """Training-mode BatchNorm (biased var over N,H,W == axis 1) + ReLU."""
        c = y.shape[0]
        g = bn_ref[(2 * layer) * CPAD:(2 * layer) * CPAD + c, :]        # (c, 1)
        b = bn_ref[(2 * layer + 1) * CPAD:(2 * layer + 1) * CPAD + c, :]
        inv_m = 1.0 / M
        mean = jnp.sum(y, axis=1, keepdims=True) * inv_m                # (c, 1)
        ey2 = jnp.sum(y * y, axis=1, keepdims=True) * inv_m             # (c, 1)
        var = jnp.maximum(ey2 - mean * mean, 0.0)
        scale = g * jax.lax.rsqrt(var + BN_EPS)
        shift = b - mean * scale
        return jnp.maximum(y * scale + shift, 0.0)

    # ---- layer 1: cat(src, thick, thin) -> conv(3->C)   -> BN -> ReLU
    act = bn_relu(conv3x3(x0_ref[...], w1_ref), 0)
    # ---- layer 2:                        conv(C->2C)    -> BN -> ReLU
    act = bn_relu(conv3x3(act, w4_ref), 1)
    # ---- layer 3:                        conv(2C->pn^2) -> BN -> ReLU -> softmax
    y = bn_relu(conv3x3(act, w7_ref), 2)

    y = y - jnp.max(y, axis=0, keepdims=True)
    e = jnp.exp(y)
    out = e * pl.reciprocal(jnp.sum(e, axis=0, keepdims=True), approx=False)

    # Lane-dense store, already NCHW-ordered (aligned 256-lane slices).
    for n in range(N):
        o_ref[n] = out[:, n * HW:(n + 1) * HW]


# -------------------------------- wrapper ------------------------------------

def _full_spec(shape):
    nd = len(shape)
    return pl.BlockSpec(shape, lambda i: (0,) * nd)


def base_pc_forward(params, input_src, input_thick, input_thin):
    """Inputs NCHW (N,1,H,W) like the PyTorch module; output NCHW (N, pn^2, H, W)."""
    N, c1, H, W = input_src.shape
    assert c1 == 1
    assert input_thick.shape == input_src.shape == input_thin.shape
    HW = H * W
    M = N * HW

    w1f = params["conv1_wf"]  # (C,   27)
    w4f = params["conv4_wf"]  # (2C,  9C)
    w7f = params["conv7_wf"]  # (pn2, 18C)
    channels = w1f.shape[0]
    pn2 = w7f.shape[0]
    cmax_in = max(3, 2 * channels)
    cpad = ((max(2 * channels, pn2) + 7) // 8) * 8  # sublane-aligned BN stride

    # channel-cat + flatten: column m = n*H*W + h*W + w  (free-ish reshapes)
    x0 = jnp.concatenate(
        [input_src.reshape(1, M),
         input_thick.reshape(1, M),
         input_thin.reshape(1, M)], axis=0)                  # (3, M)

    # Per-tap boundary masks (shape-only constants -> XLA constant-folds them).
    m_idx = jnp.arange(M, dtype=jnp.int32)
    wq = m_idx % W
    hq = (m_idx // W) % H
    rows = []
    for dy in (-1, 0, 1):
        for dx in (-1, 0, 1):
            ok = jnp.ones((M,), bool)
            if dy == -1:
                ok = ok & (hq >= 1)
            elif dy == 1:
                ok = ok & (hq <= H - 2)
            if dx == -1:
                ok = ok & (wq >= 1)
            elif dx == 1:
                ok = ok & (wq <= W - 2)
            rows.append(ok)
    tap_masks = jnp.stack(rows, axis=0).astype(jnp.float32)  # (9, M)

    # Pack the six BN vectors into one operand (one prologue DMA).
    bn_pack = jnp.zeros((6 * cpad, 1), jnp.float32)
    for k, name in enumerate(["bn1_g", "bn1_b", "bn4_g", "bn4_b",
                              "bn7_g", "bn7_b"]):
        v = params[name]
        bn_pack = bn_pack.at[k * cpad:k * cpad + v.shape[0], 0].set(v)

    operands = (x0, tap_masks, w1f, w4f, w7f, bn_pack)

    kern = functools.partial(_base_pc_kernel, N=N, H=H, W=W, CPAD=cpad)
    out = pl.pallas_call(
        kern,
        out_shape=jax.ShapeDtypeStruct((N, pn2, HW), jnp.float32),
        grid=(1,),
        in_specs=[_full_spec(a.shape) for a in operands],
        out_specs=_full_spec((N, pn2, HW)),
        scratch_shapes=[pltpu.VMEM((9 * cmax_in, M), jnp.float32)],
        compiler_params=pltpu.CompilerParams(
            dimension_semantics=("arbitrary",)),
    )(*operands)

    return out.reshape(N, pn2, H, W)


# -------------------------------- params -------------------------------------

def make_params(key, channels=8, pn_size=5, kernel_size=3, avg=0.0, std=0.1):
    assert kernel_size == 3, "kernel implemented for 3x3"
    k1, k4, k7 = jax.random.split(key, 3)
    pn2 = pn_size * pn_size

    def conv_oihw(k, cin, cout):
        return avg + std * jax.random.normal(k, (cout, cin, 3, 3), jnp.float32)

    def to_flat(w):
        # (Cout, Cin, KH, KW) -> (Cout, 9*Cin), col = (kh*3 + kw)*Cin + ci
        cout, cin = w.shape[0], w.shape[1]
        return jnp.transpose(w, (0, 2, 3, 1)).reshape(cout, 9 * cin)

    w1 = conv_oihw(k1, 3, channels)
    w4 = conv_oihw(k4, channels, 2 * channels)
    w7 = conv_oihw(k7, 2 * channels, pn2)

    return {
        # OIHW weights kept for the pure-JAX reference path.
        "conv1_w": w1, "conv4_w": w4, "conv7_w": w7,
        # Kernel-ready im2col layout (precomputed once, no per-call glue).
        "conv1_wf": to_flat(w1), "conv4_wf": to_flat(w4), "conv7_wf": to_flat(w7),
        # conv7 bias (center 1.0, per create_conv_bias) — used by the reference
        # only; it cancels exactly under training-mode BatchNorm, so the Pallas
        # kernel omits it (conv1/conv4 have no bias in the PyTorch module).
        "conv7_b": jnp.zeros((pn2,), jnp.float32).at[pn2 // 2].set(1.0),
        "bn1_g": jnp.ones((channels,), jnp.float32),
        "bn1_b": jnp.zeros((channels,), jnp.float32),
        "bn4_g": jnp.ones((2 * channels,), jnp.float32),
        "bn4_b": jnp.zeros((2 * channels,), jnp.float32),
        "bn7_g": jnp.ones((pn2,), jnp.float32),
        "bn7_b": jnp.zeros((pn2,), jnp.float32),
    }


# ------------------------------- reference -----------------------------------

def _ref_forward(params, input_src, input_thick, input_thin):
    """Pure-JAX reference (lax conv + training-mode BN + ReLU + softmax)."""
    x = jnp.concatenate((input_src, input_thick, input_thin), axis=1)  # NCHW

    def conv(x, w, b=None):
        y = jax.lax.conv_general_dilated(
            x, w, window_strides=(1, 1), padding="SAME",
            dimension_numbers=("NCHW", "OIHW", "NCHW"))
        if b is not None:
            y = y + b[None, :, None, None]
        return y

    def bn_relu_ref(x, g, b):
        mean = jnp.mean(x, axis=(0, 2, 3), keepdims=True)
        var = jnp.mean(jnp.square(x - mean), axis=(0, 2, 3), keepdims=True)
        y = (x - mean) / jnp.sqrt(var + BN_EPS)
        y = y * g[None, :, None, None] + b[None, :, None, None]
        return jnp.maximum(y, 0.0)

    y = bn_relu_ref(conv(x, params["conv1_w"]), params["bn1_g"], params["bn1_b"])
    y = bn_relu_ref(conv(y, params["conv4_w"]), params["bn4_g"], params["bn4_b"])
    y = bn_relu_ref(conv(y, params["conv7_w"], params["conv7_b"]),
                    params["bn7_g"], params["bn7_b"])
    return jax.nn.softmax(y, axis=1)


if __name__ == "__main__":
    key = jax.random.PRNGKey(0)
    kp, k_src, k_thick, k_thin = jax.random.split(key, 4)

    channels, pn_size = 8, 5
    N, H, W = 2, 16, 16

    params = make_params(kp, channels=channels, pn_size=pn_size)

    input_src = jax.random.uniform(k_src, (N, 1, H, W), jnp.float32)
    input_thick = jax.random.uniform(k_thick, (N, 1, H, W), jnp.float32)
    input_thin = jax.random.uniform(k_thin, (N, 1, H, W), jnp.float32)

    fwd = jax.jit(base_pc_forward)
    out = jax.block_until_ready(fwd(params, input_src, input_thick, input_thin))
    assert out.shape == (N, pn_size * pn_size, H, W), out.shape

    ref = jax.block_until_ready(
        _ref_forward(params, input_src, input_thick, input_thin))
    max_err = float(jnp.max(jnp.abs(out - ref)))
    assert jnp.allclose(out, ref, rtol=2e-4, atol=2e-5), max_err
    # softmax over channels sums to 1
    assert jnp.allclose(jnp.sum(out, axis=1), 1.0, atol=1e-5)

    print("KERNEL_OK")
</pallas_src>

<mosaic_0001>
module attributes {stable_mosaic.version = 11 : i64} {
  func.func @_base_pc_kernel(%arg0: i32, %arg1: memref<3x512xf32, #tpu.memory_space<vmem>>, %arg2: memref<9x512xf32, #tpu.memory_space<vmem>>, %arg3: memref<8x27xf32, #tpu.memory_space<vmem>>, %arg4: memref<16x72xf32, #tpu.memory_space<vmem>>, %arg5: memref<25x144xf32, #tpu.memory_space<vmem>>, %arg6: memref<192x1xf32, #tpu.memory_space<vmem>>, %arg7: memref<2x25x256xf32, #tpu.memory_space<vmem>>, %arg8: memref<144x512xf32, #tpu.memory_space<vmem>>) attributes {dimension_semantics = [#tpu.dimension_semantics<arbitrary>], iteration_bounds = array<i64: 1>, scalar_prefetch = 0 : i64, scratch_operands = 1 : i64, tpu.core_type = #tpu.core_type<tc>, window_params = [{pipeline_mode = #tpu.pipeline_mode<synchronous>, transform_indices = @transform_0, window_bounds = array<i64: 3, 512>}, {pipeline_mode = #tpu.pipeline_mode<synchronous>, transform_indices = @transform_1, window_bounds = array<i64: 9, 512>}, {pipeline_mode = #tpu.pipeline_mode<synchronous>, transform_indices = @transform_2, window_bounds = array<i64: 8, 27>}, {pipeline_mode = #tpu.pipeline_mode<synchronous>, transform_indices = @transform_3, window_bounds = array<i64: 16, 72>}, {pipeline_mode = #tpu.pipeline_mode<synchronous>, transform_indices = @transform_4, window_bounds = array<i64: 25, 144>}, {pipeline_mode = #tpu.pipeline_mode<synchronous>, transform_indices = @transform_5, window_bounds = array<i64: 192, 1>}, {pipeline_mode = #tpu.pipeline_mode<synchronous>, transform_indices = @transform_6, window_bounds = array<i64: 2, 25, 256>}]} {
    %c0 = arith.constant 0 : index
    %c0_0 = arith.constant 0 : index
    %0 = vector.load %arg1[%c0, %c0_0] : memref<3x512xf32, #tpu.memory_space<vmem>>, vector<3x512xf32>
    %c17_i32 = arith.constant 17 : i32
    %1 = tpu.dynamic_rotate %0 by %c17_i32 dim 1 : vector<3x512xf32>, i32 -> vector<3x512xf32>
    %c0_1 = arith.constant 0 : index
    %c0_2 = arith.constant 0 : index
    %2 = vector.load %arg2[%c0_1, %c0_2] : memref<9x512xf32, #tpu.memory_space<vmem>>, vector<1x512xf32>
    %3 = vector.broadcast %2 : vector<1x512xf32> to vector<3x512xf32>
    %4 = arith.mulf %1, %3 : vector<3x512xf32>
    %c0_3 = arith.constant 0 : index
    %c0_4 = arith.constant 0 : index
    %5 = vector.load %arg8[%c0_3, %c0_4] : memref<144x512xf32, #tpu.memory_space<vmem>>, vector<3x512xf32>
    tpu.vector_store %arg8[%c0_3, %c0_4], %4 {strides = array<i32>} : memref<144x512xf32, #tpu.memory_space<vmem>>, vector<3x512xf32>,
    %c16_i32 = arith.constant 16 : i32
    %6 = tpu.dynamic_rotate %0 by %c16_i32 dim 1 : vector<3x512xf32>, i32 -> vector<3x512xf32>
    %c1 = arith.constant 1 : index
    %c0_5 = arith.constant 0 : index
    %7 = vector.load %arg2[%c1, %c0_5] : memref<9x512xf32, #tpu.memory_space<vmem>>, vector<1x512xf32>
    %8 = vector.broadcast %7 : vector<1x512xf32> to vector<3x512xf32>
    %9 = arith.mulf %6, %8 : vector<3x512xf32>
    %c3 = arith.constant 3 : index
    %c0_6 = arith.constant 0 : index
    %10 = vector.load %arg8[%c3, %c0_6] : memref<144x512xf32, #tpu.memory_space<vmem>>, vector<3x512xf32>
    tpu.vector_store %arg8[%c3, %c0_6], %9 {strides = array<i32>} : memref<144x512xf32, #tpu.memory_space<vmem>>, vector<3x512xf32>,
    %c15_i32 = arith.constant 15 : i32
    %11 = tpu.dynamic_rotate %0 by %c15_i32 dim 1 : vector<3x512xf32>, i32 -> vector<3x512xf32>
    %c2 = arith.constant 2 : index
    %c0_7 = arith.constant 0 : index
    %12 = vector.load %arg2[%c2, %c0_7] : memref<9x512xf32, #tpu.memory_space<vmem>>, vector<1x512xf32>
    %13 = vector.broadcast %12 : vector<1x512xf32> to vector<3x512xf32>
    %14 = arith.mulf %11, %13 : vector<3x512xf32>
    %c6 = arith.constant 6 : index
    %c0_8 = arith.constant 0 : index
    %15 = vector.load %arg8[%c6, %c0_8] : memref<144x512xf32, #tpu.memory_space<vmem>>, vector<3x512xf32>
    tpu.vector_store %arg8[%c6, %c0_8], %14 {strides = array<i32>} : memref<144x512xf32, #tpu.memory_space<vmem>>, vector<3x512xf32>,
    %c1_i32 = arith.constant 1 : i32
    %16 = tpu.dynamic_rotate %0 by %c1_i32 dim 1 : vector<3x512xf32>, i32 -> vector<3x512xf32>
    %c3_9 = arith.constant 3 : index
    %c0_10 = arith.constant 0 : index
    %17 = vector.load %arg2[%c3_9, %c0_10] : memref<9x512xf32, #tpu.memory_space<vmem>>, vector<1x512xf32>
    %18 = vector.broadcast %17 : vector<1x512xf32> to vector<3x512xf32>
    %19 = arith.mulf %16, %18 : vector<3x512xf32>
    %c9 = arith.constant 9 : index
    %c0_11 = arith.constant 0 : index
    %20 = vector.load %arg8[%c9, %c0_11] : memref<144x512xf32, #tpu.memory_space<vmem>>, vector<3x512xf32>
    tpu.vector_store %arg8[%c9, %c0_11], %19 {strides = array<i32>} : memref<144x512xf32, #tpu.memory_space<vmem>>, vector<3x512xf32>,
    %c12 = arith.constant 12 : index
    %c0_12 = arith.constant 0 : index
    %21 = vector.load %arg8[%c12, %c0_12] : memref<144x512xf32, #tpu.memory_space<vmem>>, vector<3x512xf32>
    tpu.vector_store %arg8[%c12, %c0_12], %0 {strides = array<i32>} : memref<144x512xf32, #tpu.memory_space<vmem>>, vector<3x512xf32>,
    %c511_i32 = arith.constant 511 : i32
    %22 = tpu.dynamic_rotate %0 by %c511_i32 dim 1 : vector<3x512xf32>, i32 -> vector<3x512xf32>
    %c5 = arith.constant 5 : index
    %c0_13 = arith.constant 0 : index
    %23 = vector.load %arg2[%c5, %c0_13] : memref<9x512xf32, #tpu.memory_space<vmem>>, vector<1x512xf32>
    %24 = vector.broadcast %23 : vector<1x512xf32> to vector<3x512xf32>
    %25 = arith.mulf %22, %24 : vector<3x512xf32>
    %c15 = arith.constant 15 : index
    %c0_14 = arith.constant 0 : index
    %26 = vector.load %arg8[%c15, %c0_14] : memref<144x512xf32, #tpu.memory_space<vmem>>, vector<3x512xf32>
    tpu.vector_store %arg8[%c15, %c0_14], %25 {strides = array<i32>} : memref<144x512xf32, #tpu.memory_space<vmem>>, vector<3x512xf32>,
    %c497_i32 = arith.constant 497 : i32
    %27 = tpu.dynamic_rotate %0 by %c497_i32 dim 1 : vector<3x512xf32>, i32 -> vector<3x512xf32>
    %c6_15 = arith.constant 6 : index
    %c0_16 = arith.constant 0 : index
    %28 = vector.load %arg2[%c6_15, %c0_16] : memref<9x512xf32, #tpu.memory_space<vmem>>, vector<1x512xf32>
    %29 = vector.broadcast %28 : vector<1x512xf32> to vector<3x512xf32>
    %30 = arith.mulf %27, %29 : vector<3x512xf32>
    %c18 = arith.constant 18 : index
    %c0_17 = arith.constant 0 : index
    %31 = vector.load %arg8[%c18, %c0_17] : memref<144x512xf32, #tpu.memory_space<vmem>>, vector<3x512xf32>
    tpu.vector_store %arg8[%c18, %c0_17], %30 {strides = array<i32>} : memref<144x512xf32, #tpu.memory_space<vmem>>, vector<3x512xf32>,
    %c496_i32 = arith.constant 496 : i32
    %32 = tpu.dynamic_rotate %0 by %c496_i32 dim 1 : vector<3x512xf32>, i32 -> vector<3x512xf32>
    %c7 = arith.constant 7 : index
    %c0_18 = arith.constant 0 : index
    %33 = vector.load %arg2[%c7, %c0_18] : memref<9x512xf32, #tpu.memory_space<vmem>>, vector<1x512xf32>
    %34 = vector.broadcast %33 : vector<1x512xf32> to vector<3x512xf32>
    %35 = arith.mulf %32, %34 : vector<3x512xf32>
    %c21 = arith.constant 21 : index
    %c0_19 = arith.constant 0 : index
    %36 = vector.load %arg8[%c21, %c0_19] : memref<144x512xf32, #tpu.memory_space<vmem>>, vector<3x512xf32>
    tpu.vector_store %arg8[%c21, %c0_19], %35 {strides = array<i32>} : memref<144x512xf32, #tpu.memory_space<vmem>>, vector<3x512xf32>,
    %c495_i32 = arith.constant 495 : i32
    %37 = tpu.dynamic_rotate %0 by %c495_i32 dim 1 : vector<3x512xf32>, i32 -> vector<3x512xf32>
    %c8 = arith.constant 8 : index
    %c0_20 = arith.constant 0 : index
    %38 = vector.load %arg2[%c8, %c0_20] : memref<9x512xf32, #tpu.memory_space<vmem>>, vector<1x512xf32>
    %39 = vector.broadcast %38 : vector<1x512xf32> to vector<3x512xf32>
    %40 = arith.mulf %37, %39 : vector<3x512xf32>
    %c24 = arith.constant 24 : index
    %c0_21 = arith.constant 0 : index
    %41 = vector.load %arg8[%c24, %c0_21] : memref<144x512xf32, #tpu.memory_space<vmem>>, vector<3x512xf32>
    tpu.vector_store %arg8[%c24, %c0_21], %40 {strides = array<i32>} : memref<144x512xf32, #tpu.memory_space<vmem>>, vector<3x512xf32>,
    %c0_22 = arith.constant 0 : index
    %c0_23 = arith.constant 0 : index
    %42 = vector.load %arg3[%c0_22, %c0_23] : memref<8x27xf32, #tpu.memory_space<vmem>>, vector<8x27xf32>
    %c0_24 = arith.constant 0 : index
    %c0_25 = arith.constant 0 : index
    %43 = vector.load %arg8[%c0_24, %c0_25] : memref<144x512xf32, #tpu.memory_space<vmem>>, vector<27x512xf32>
    %cst = arith.constant dense<0.000000e+00> : vector<8x512xf32>
    %44 = tpu.matmul %42, %43, %cst {dimension_numbers = #tpu.dot_dimension_numbers<[1], [0], [0], [1], [0, 0, 1, 1], [], []>} : vector<8x27xf32>, vector<27x512xf32>, vector<8x512xf32> -> vector<8x512xf32>
    %c0_26 = arith.constant 0 : index
    %c0_27 = arith.constant 0 : index
    %45 = vector.load %arg6[%c0_26, %c0_27] : memref<192x1xf32, #tpu.memory_space<vmem>>, vector<8x1xf32>
    %c32 = arith.constant 32 : index
    %c0_28 = arith.constant 0 : index
    %46 = vector.load %arg6[%c32, %c0_28] : memref<192x1xf32, #tpu.memory_space<vmem>>, vector<8x1xf32>
    %cst_29 = arith.constant dense<0.000000e+00> : vector<8xf32>
    %47 = vector.multi_reduction <add>, %44, %cst_29 [1] : vector<8x512xf32> to vector<8xf32>
    %48 = vector.shape_cast %47 : vector<8xf32> to vector<8x1xf32>
    %cst_30 = arith.constant 0.001953125 : f32
    %49 = vector.broadcast %cst_30 : f32 to vector<8x1xf32>
    %50 = arith.mulf %48, %49 : vector<8x1xf32>
    %51 = arith.mulf %44, %44 : vector<8x512xf32>
    %cst_31 = arith.constant dense<0.000000e+00> : vector<8xf32>
    %52 = vector.multi_reduction <add>, %51, %cst_31 [1] : vector<8x512xf32> to vector<8xf32>
    %53 = vector.shape_cast %52 : vector<8xf32> to vector<8x1xf32>
    %cst_32 = arith.constant 0.001953125 : f32
    %54 = vector.broadcast %cst_32 : f32 to vector<8x1xf32>
    %55 = arith.mulf %53, %54 : vector<8x1xf32>
    %56 = arith.mulf %50, %50 : vector<8x1xf32>
    %57 = arith.subf %55, %56 : vector<8x1xf32>
    %cst_33 = arith.constant 0.000000e+00 : f32
    %58 = vector.broadcast %cst_33 : f32 to vector<8x1xf32>
    %59 = arith.maximumf %57, %58 : vector<8x1xf32>
    %cst_34 = arith.constant 9.99999974E-6 : f32
    %60 = vector.broadcast %cst_34 : f32 to vector<8x1xf32>
    %61 = arith.addf %59, %60 : vector<8x1xf32>
    %62 = math.rsqrt %61 : vector<8x1xf32>
    %63 = arith.mulf %45, %62 : vector<8x1xf32>
    %64 = arith.mulf %50, %63 : vector<8x1xf32>
    %65 = arith.subf %46, %64 : vector<8x1xf32>
    %66 = vector.broadcast %63 : vector<8x1xf32> to vector<8x512xf32>
    %67 = arith.mulf %44, %66 : vector<8x512xf32>
    %68 = vector.broadcast %65 : vector<8x1xf32> to vector<8x512xf32>
    %69 = arith.addf %67, %68 : vector<8x512xf32>
    %cst_35 = arith.constant 0.000000e+00 : f32
    %70 = vector.broadcast %cst_35 : f32 to vector<8x512xf32>
    %71 = arith.maximumf %69, %70 : vector<8x512xf32>
    %c17_i32_36 = arith.constant 17 : i32
    %72 = tpu.dynamic_rotate %71 by %c17_i32_36 dim 1 : vector<8x512xf32>, i32 -> vector<8x512xf32>
    %c0_37 = arith.constant 0 : index
    %c0_38 = arith.constant 0 : index
    %73 = vector.load %arg2[%c0_37, %c0_38] : memref<9x512xf32, #tpu.memory_space<vmem>>, vector<1x512xf32>
    %74 = vector.broadcast %73 : vector<1x512xf32> to vector<8x512xf32>
    %75 = arith.mulf %72, %74 : vector<8x512xf32>
    %c0_39 = arith.constant 0 : index
    %c0_40 = arith.constant 0 : index
    %76 = vector.load %arg8[%c0_39, %c0_40] : memref<144x512xf32, #tpu.memory_space<vmem>>, vector<8x512xf32>
    tpu.vector_store %arg8[%c0_39, %c0_40], %75 {strides = array<i32>} : memref<144x512xf32, #tpu.memory_space<vmem>>, vector<8x512xf32>,
    %c16_i32_41 = arith.constant 16 : i32
    %77 = tpu.dynamic_rotate %71 by %c16_i32_41 dim 1 : vector<8x512xf32>, i32 -> vector<8x512xf32>
    %c1_42 = arith.constant 1 : index
    %c0_43 = arith.constant 0 : index
    %78 = vector.load %arg2[%c1_42, %c0_43] : memref<9x512xf32, #tpu.memory_space<vmem>>, vector<1x512xf32>
    %79 = vector.broadcast %78 : vector<1x512xf32> to vector<8x512xf32>
    %80 = arith.mulf %77, %79 : vector<8x512xf32>
    %c8_44 = arith.constant 8 : index
    %c0_45 = arith.constant 0 : index
    %81 = vector.load %arg8[%c8_44, %c0_45] : memref<144x512xf32, #tpu.memory_space<vmem>>, vector<8x512xf32>
    tpu.vector_store %arg8[%c8_44, %c0_45], %80 {strides = array<i32>} : memref<144x512xf32, #tpu.memory_space<vmem>>, vector<8x512xf32>,
    %c15_i32_46 = arith.constant 15 : i32
    %82 = tpu.dynamic_rotate %71 by %c15_i32_46 dim 1 : vector<8x512xf32>, i32 -> vector<8x512xf32>
    %c2_47 = arith.constant 2 : index
    %c0_48 = arith.constant 0 : index
    %83 = vector.load %arg2[%c2_47, %c0_48] : memref<9x512xf32, #tpu.memory_space<vmem>>, vector<1x512xf32>
    %84 = vector.broadcast %83 : vector<1x512xf32> to vector<8x512xf32>
    %85 = arith.mulf %82, %84 : vector<8x512xf32>
    %c16 = arith.constant 16 : index
    %c0_49 = arith.constant 0 : index
    %86 = vector.load %arg8[%c16, %c0_49] : memref<144x512xf32, #tpu.memory_space<vmem>>, vector<8x512xf32>
    tpu.vector_store %arg8[%c16, %c0_49], %85 {strides = array<i32>} : memref<144x512xf32, #tpu.memory_space<vmem>>, vector<8x512xf32>,
    %c1_i32_50 = arith.constant 1 : i32
    %87 = tpu.dynamic_rotate %71 by %c1_i32_50 dim 1 : vector<8x512xf32>, i32 -> vector<8x512xf32>
    %c3_51 = arith.constant 3 : index
    %c0_52 = arith.constant 0 : index
    %88 = vector.load %arg2[%c3_51, %c0_52] : memref<9x512xf32, #tpu.memory_space<vmem>>, vector<1x512xf32>
    %89 = vector.broadcast %88 : vector<1x512xf32> to vector<8x512xf32>
    %90 = arith.mulf %87, %89 : vector<8x512xf32>
    %c24_53 = arith.constant 24 : index
    %c0_54 = arith.constant 0 : index
    %91 = vector.load %arg8[%c24_53, %c0_54] : memref<144x512xf32, #tpu.memory_space<vmem>>, vector<8x512xf32>
    tpu.vector_store %arg8[%c24_53, %c0_54], %90 {strides = array<i32>} : memref<144x512xf32, #tpu.memory_space<vmem>>, vector<8x512xf32>,
    %c32_55 = arith.constant 32 : index
    %c0_56 = arith.constant 0 : index
    %92 = vector.load %arg8[%c32_55, %c0_56] : memref<144x512xf32, #tpu.memory_space<vmem>>, vector<8x512xf32>
    tpu.vector_store %arg8[%c32_55, %c0_56], %71 {strides = array<i32>} : memref<144x512xf32, #tpu.memory_space<vmem>>, vector<8x512xf32>,
    %c511_i32_57 = arith.constant 511 : i32
    %93 = tpu.dynamic_rotate %71 by %c511_i32_57 dim 1 : vector<8x512xf32>, i32 -> vector<8x512xf32>
    %c5_58 = arith.constant 5 : index
    %c0_59 = arith.constant 0 : index
    %94 = vector.load %arg2[%c5_58, %c0_59] : memref<9x512xf32, #tpu.memory_space<vmem>>, vector<1x512xf32>
    %95 = vector.broadcast %94 : vector<1x512xf32> to vector<8x512xf32>
    %96 = arith.mulf %93, %95 : vector<8x512xf32>
    %c40 = arith.constant 40 : index
    %c0_60 = arith.constant 0 : index
    %97 = vector.load %arg8[%c40, %c0_60] : memref<144x512xf32, #tpu.memory_space<vmem>>, vector<8x512xf32>
    tpu.vector_store %arg8[%c40, %c0_60], %96 {strides = array<i32>} : memref<144x512xf32, #tpu.memory_space<vmem>>, vector<8x512xf32>,
    %c497_i32_61 = arith.constant 497 : i32
    %98 = tpu.dynamic_rotate %71 by %c497_i32_61 dim 1 : vector<8x512xf32>, i32 -> vector<8x512xf32>
    %c6_62 = arith.constant 6 : index
    %c0_63 = arith.constant 0 : index
    %99 = vector.load %arg2[%c6_62, %c0_63] : memref<9x512xf32, #tpu.memory_space<vmem>>, vector<1x512xf32>
    %100 = vector.broadcast %99 : vector<1x512xf32> to vector<8x512xf32>
    %101 = arith.mulf %98, %100 : vector<8x512xf32>
    %c48 = arith.constant 48 : index
    %c0_64 = arith.constant 0 : index
    %102 = vector.load %arg8[%c48, %c0_64] : memref<144x512xf32, #tpu.memory_space<vmem>>, vector<8x512xf32>
    tpu.vector_store %arg8[%c48, %c0_64], %101 {strides = array<i32>} : memref<144x512xf32, #tpu.memory_space<vmem>>, vector<8x512xf32>,
    %c496_i32_65 = arith.constant 496 : i32
    %103 = tpu.dynamic_rotate %71 by %c496_i32_65 dim 1 : vector<8x512xf32>, i32 -> vector<8x512xf32>
    %c7_66 = arith.constant 7 : index
    %c0_67 = arith.constant 0 : index
    %104 = vector.load %arg2[%c7_66, %c0_67] : memref<9x512xf32, #tpu.memory_space<vmem>>, vector<1x512xf32>
    %105 = vector.broadcast %104 : vector<1x512xf32> to vector<8x512xf32>
    %106 = arith.mulf %103, %105 : vector<8x512xf32>
    %c56 = arith.constant 56 : index
    %c0_68 = arith.constant 0 : index
    %107 = vector.load %arg8[%c56, %c0_68] : memref<144x512xf32, #tpu.memory_space<vmem>>, vector<8x512xf32>
    tpu.vector_store %arg8[%c56, %c0_68], %106 {strides = array<i32>} : memref<144x512xf32, #tpu.memory_space<vmem>>, vector<8x512xf32>,
    %c495_i32_69 = arith.constant 495 : i32
    %108 = tpu.dynamic_rotate %71 by %c495_i32_69 dim 1 : vector<8x512xf32>, i32 -> vector<8x512xf32>
    %c8_70 = arith.constant 8 : index
    %c0_71 = arith.constant 0 : index
    %109 = vector.load %arg2[%c8_70, %c0_71] : memref<9x512xf32, #tpu.memory_space<vmem>>, vector<1x512xf32>
    %110 = vector.broadcast %109 : vector<1x512xf32> to vector<8x512xf32>
    %111 = arith.mulf %108, %110 : vector<8x512xf32>
    %c64 = arith.constant 64 : index
    %c0_72 = arith.constant 0 : index
    %112 = vector.load %arg8[%c64, %c0_72] : memref<144x512xf32, #tpu.memory_space<vmem>>, vector<8x512xf32>
    tpu.vector_store %arg8[%c64, %c0_72], %111 {strides = array<i32>} : memref<144x512xf32, #tpu.memory_space<vmem>>, vector<8x512xf32>,
    %c0_73 = arith.constant 0 : index
    %c0_74 = arith.constant 0 : index
    %113 = vector.load %arg4[%c0_73, %c0_74] : memref<16x72xf32, #tpu.memory_space<vmem>>, vector<16x72xf32>
    %c0_75 = arith.constant 0 : index
    %c0_76 = arith.constant 0 : index
    %114 = vector.load %arg8[%c0_75, %c0_76] : memref<144x512xf32, #tpu.memory_space<vmem>>, vector<72x512xf32>
    %cst_77 = arith.constant dense<0.000000e+00> : vector<16x512xf32>
    %115 = tpu.matmul %113, %114, %cst_77 {dimension_numbers = #tpu.dot_dimension_numbers<[1], [0], [0], [1], [0, 0, 1, 1], [], []>} : vector<16x72xf32>, vector<72x512xf32>, vector<16x512xf32> -> vector<16x512xf32>
    %c64_78 = arith.constant 64 : index
    %c0_79 = arith.constant 0 : index
    %116 = vector.load %arg6[%c64_78, %c0_79] : memref<192x1xf32, #tpu.memory_space<vmem>>, vector<16x1xf32>
    %c96 = arith.constant 96 : index
    %c0_80 = arith.constant 0 : index
    %117 = vector.load %arg6[%c96, %c0_80] : memref<192x1xf32, #tpu.memory_space<vmem>>, vector<16x1xf32>
    %cst_81 = arith.constant dense<0.000000e+00> : vector<16xf32>
    %118 = vector.multi_reduction <add>, %115, %cst_81 [1] : vector<16x512xf32> to vector<16xf32>
    %119 = vector.shape_cast %118 : vector<16xf32> to vector<16x1xf32>
    %cst_82 = arith.constant 0.001953125 : f32
    %120 = vector.broadcast %cst_82 : f32 to vector<16x1xf32>
    %121 = arith.mulf %119, %120 : vector<16x1xf32>
    %122 = arith.mulf %115, %115 : vector<16x512xf32>
    %cst_83 = arith.constant dense<0.000000e+00> : vector<16xf32>
    %123 = vector.multi_reduction <add>, %122, %cst_83 [1] : vector<16x512xf32> to vector<16xf32>
    %124 = vector.shape_cast %123 : vector<16xf32> to vector<16x1xf32>
    %cst_84 = arith.constant 0.001953125 : f32
    %125 = vector.broadcast %cst_84 : f32 to vector<16x1xf32>
    %126 = arith.mulf %124, %125 : vector<16x1xf32>
    %127 = arith.mulf %121, %121 : vector<16x1xf32>
    %128 = arith.subf %126, %127 : vector<16x1xf32>
    %cst_85 = arith.constant 0.000000e+00 : f32
    %129 = vector.broadcast %cst_85 : f32 to vector<16x1xf32>
    %130 = arith.maximumf %128, %129 : vector<16x1xf32>
    %cst_86 = arith.constant 9.99999974E-6 : f32
    %131 = vector.broadcast %cst_86 : f32 to vector<16x1xf32>
    %132 = arith.addf %130, %131 : vector<16x1xf32>
    %133 = math.rsqrt %132 : vector<16x1xf32>
    %134 = arith.mulf %116, %133 : vector<16x1xf32>
    %135 = arith.mulf %121, %134 : vector<16x1xf32>
    %136 = arith.subf %117, %135 : vector<16x1xf32>
    %137 = vector.broadcast %134 : vector<16x1xf32> to vector<16x512xf32>
    %138 = arith.mulf %115, %137 : vector<16x512xf32>
    %139 = vector.broadcast %136 : vector<16x1xf32> to vector<16x512xf32>
    %140 = arith.addf %138, %139 : vector<16x512xf32>
    %cst_87 = arith.constant 0.000000e+00 : f32
    %141 = vector.broadcast %cst_87 : f32 to vector<16x512xf32>
    %142 = arith.maximumf %140, %141 : vector<16x512xf32>
    %c17_i32_88 = arith.constant 17 : i32
    %143 = tpu.dynamic_rotate %142 by %c17_i32_88 dim 1 : vector<16x512xf32>, i32 -> vector<16x512xf32>
    %c0_89 = arith.constant 0 : index
    %c0_90 = arith.constant 0 : index
    %144 = vector.load %arg2[%c0_89, %c0_90] : memref<9x512xf32, #tpu.memory_space<vmem>>, vector<1x512xf32>
    %145 = vector.broadcast %144 : vector<1x512xf32> to vector<16x512xf32>
    %146 = arith.mulf %143, %145 : vector<16x512xf32>
    %c0_91 = arith.constant 0 : index
    %c0_92 = arith.constant 0 : index
    %147 = vector.load %arg8[%c0_91, %c0_92] : memref<144x512xf32, #tpu.memory_space<vmem>>, vector<16x512xf32>
    tpu.vector_store %arg8[%c0_91, %c0_92], %146 {strides = array<i32>} : memref<144x512xf32, #tpu.memory_space<vmem>>, vector<16x512xf32>,
    %c16_i32_93 = arith.constant 16 : i32
    %148 = tpu.dynamic_rotate %142 by %c16_i32_93 dim 1 : vector<16x512xf32>, i32 -> vector<16x512xf32>
    %c1_94 = arith.constant 1 : index
    %c0_95 = arith.constant 0 : index
    %149 = vector.load %arg2[%c1_94, %c0_95] : memref<9x512xf32, #tpu.memory_space<vmem>>, vector<1x512xf32>
    %150 = vector.broadcast %149 : vector<1x512xf32> to vector<16x512xf32>
    %151 = arith.mulf %148, %150 : vector<16x512xf32>
    %c16_96 = arith.constant 16 : index
    %c0_97 = arith.constant 0 : index
    %152 = vector.load %arg8[%c16_96, %c0_97] : memref<144x512xf32, #tpu.memory_space<vmem>>, vector<16x512xf32>
    tpu.vector_store %arg8[%c16_96, %c0_97], %151 {strides = array<i32>} : memref<144x512xf32, #tpu.memory_space<vmem>>, vector<16x512xf32>,
    %c15_i32_98 = arith.constant 15 : i32
    %153 = tpu.dynamic_rotate %142 by %c15_i32_98 dim 1 : vector<16x512xf32>, i32 -> vector<16x512xf32>
    %c2_99 = arith.constant 2 : index
    %c0_100 = arith.constant 0 : index
    %154 = vector.load %arg2[%c2_99, %c0_100] : memref<9x512xf32, #tpu.memory_space<vmem>>, vector<1x512xf32>
    %155 = vector.broadcast %154 : vector<1x512xf32> to vector<16x512xf32>
    %156 = arith.mulf %153, %155 : vector<16x512xf32>
    %c32_101 = arith.constant 32 : index
    %c0_102 = arith.constant 0 : index
    %157 = vector.load %arg8[%c32_101, %c0_102] : memref<144x512xf32, #tpu.memory_space<vmem>>, vector<16x512xf32>
    tpu.vector_store %arg8[%c32_101, %c0_102], %156 {strides = array<i32>} : memref<144x512xf32, #tpu.memory_space<vmem>>, vector<16x512xf32>,
    %c1_i32_103 = arith.constant 1 : i32
    %158 = tpu.dynamic_rotate %142 by %c1_i32_103 dim 1 : vector<16x512xf32>, i32 -> vector<16x512xf32>
    %c3_104 = arith.constant 3 : index
    %c0_105 = arith.constant 0 : index
    %159 = vector.load %arg2[%c3_104, %c0_105] : memref<9x512xf32, #tpu.memory_space<vmem>>, vector<1x512xf32>
    %160 = vector.broadcast %159 : vector<1x512xf32> to vector<16x512xf32>
    %161 = arith.mulf %158, %160 : vector<16x512xf32>
    %c48_106 = arith.constant 48 : index
    %c0_107 = arith.constant 0 : index
    %162 = vector.load %arg8[%c48_106, %c0_107] : memref<144x512xf32, #tpu.memory_space<vmem>>, vector<16x512xf32>
    tpu.vector_store %arg8[%c48_106, %c0_107], %161 {strides = array<i32>} : memref<144x512xf32, #tpu.memory_space<vmem>>, vector<16x512xf32>,
    %c64_108 = arith.constant 64 : index
    %c0_109 = arith.constant 0 : index
    %163 = vector.load %arg8[%c64_108, %c0_109] : memref<144x512xf32, #tpu.memory_space<vmem>>, vector<16x512xf32>
    tpu.vector_store %arg8[%c64_108, %c0_109], %142 {strides = array<i32>} : memref<144x512xf32, #tpu.memory_space<vmem>>, vector<16x512xf32>,
    %c511_i32_110 = arith.constant 511 : i32
    %164 = tpu.dynamic_rotate %142 by %c511_i32_110 dim 1 : vector<16x512xf32>, i32 -> vector<16x512xf32>
    %c5_111 = arith.constant 5 : index
    %c0_112 = arith.constant 0 : index
    %165 = vector.load %arg2[%c5_111, %c0_112] : memref<9x512xf32, #tpu.memory_space<vmem>>, vector<1x512xf32>
    %166 = vector.broadcast %165 : vector<1x512xf32> to vector<16x512xf32>
    %167 = arith.mulf %164, %166 : vector<16x512xf32>
    %c80 = arith.constant 80 : index
    %c0_113 = arith.constant 0 : index
    %168 = vector.load %arg8[%c80, %c0_113] : memref<144x512xf32, #tpu.memory_space<vmem>>, vector<16x512xf32>
    tpu.vector_store %arg8[%c80, %c0_113], %167 {strides = array<i32>} : memref<144x512xf32, #tpu.memory_space<vmem>>, vector<16x512xf32>,
    %c497_i32_114 = arith.constant 497 : i32
    %169 = tpu.dynamic_rotate %142 by %c497_i32_114 dim 1 : vector<16x512xf32>, i32 -> vector<16x512xf32>
    %c6_115 = arith.constant 6 : index
    %c0_116 = arith.constant 0 : index
    %170 = vector.load %arg2[%c6_115, %c0_116] : memref<9x512xf32, #tpu.memory_space<vmem>>, vector<1x512xf32>
    %171 = vector.broadcast %170 : vector<1x512xf32> to vector<16x512xf32>
    %172 = arith.mulf %169, %171 : vector<16x512xf32>
    %c96_117 = arith.constant 96 : index
    %c0_118 = arith.constant 0 : index
    %173 = vector.load %arg8[%c96_117, %c0_118] : memref<144x512xf32, #tpu.memory_space<vmem>>, vector<16x512xf32>
    tpu.vector_store %arg8[%c96_117, %c0_118], %172 {strides = array<i32>} : memref<144x512xf32, #tpu.memory_space<vmem>>, vector<16x512xf32>,
    %c496_i32_119 = arith.constant 496 : i32
    %174 = tpu.dynamic_rotate %142 by %c496_i32_119 dim 1 : vector<16x512xf32>, i32 -> vector<16x512xf32>
    %c7_120 = arith.constant 7 : index
    %c0_121 = arith.constant 0 : index
    %175 = vector.load %arg2[%c7_120, %c0_121] : memref<9x512xf32, #tpu.memory_space<vmem>>, vector<1x512xf32>
    %176 = vector.broadcast %175 : vector<1x512xf32> to vector<16x512xf32>
    %177 = arith.mulf %174, %176 : vector<16x512xf32>
    %c112 = arith.constant 112 : index
    %c0_122 = arith.constant 0 : index
    %178 = vector.load %arg8[%c112, %c0_122] : memref<144x512xf32, #tpu.memory_space<vmem>>, vector<16x512xf32>
    tpu.vector_store %arg8[%c112, %c0_122], %177 {strides = array<i32>} : memref<144x512xf32, #tpu.memory_space<vmem>>, vector<16x512xf32>,
    %c495_i32_123 = arith.constant 495 : i32
    %179 = tpu.dynamic_rotate %142 by %c495_i32_123 dim 1 : vector<16x512xf32>, i32 -> vector<16x512xf32>
    %c8_124 = arith.constant 8 : index
    %c0_125 = arith.constant 0 : index
    %180 = vector.load %arg2[%c8_124, %c0_125] : memref<9x512xf32, #tpu.memory_space<vmem>>, vector<1x512xf32>
    %181 = vector.broadcast %180 : vector<1x512xf32> to vector<16x512xf32>
    %182 = arith.mulf %179, %181 : vector<16x512xf32>
    %c128 = arith.constant 128 : index
    %c0_126 = arith.constant 0 : index
    %183 = vector.load %arg8[%c128, %c0_126] : memref<144x512xf32, #tpu.memory_space<vmem>>, vector<16x512xf32>
    tpu.vector_store %arg8[%c128, %c0_126], %182 {strides = array<i32>} : memref<144x512xf32, #tpu.memory_space<vmem>>, vector<16x512xf32>,
    %c0_127 = arith.constant 0 : index
    %c0_128 = arith.constant 0 : index
    %184 = vector.load %arg5[%c0_127, %c0_128] : memref<25x144xf32, #tpu.memory_space<vmem>>, vector<25x144xf32>
    %c0_129 = arith.constant 0 : index
    %c0_130 = arith.constant 0 : index
    %185 = vector.load %arg8[%c0_129, %c0_130] : memref<144x512xf32, #tpu.memory_space<vmem>>, vector<144x512xf32>
    %cst_131 = arith.constant dense<0.000000e+00> : vector<25x512xf32>
    %186 = tpu.matmul %184, %185, %cst_131 {dimension_numbers = #tpu.dot_dimension_numbers<[1], [0], [0], [1], [0, 0, 1, 1], [], []>} : vector<25x144xf32>, vector<144x512xf32>, vector<25x512xf32> -> vector<25x512xf32>
    %c128_132 = arith.constant 128 : index
    %c0_133 = arith.constant 0 : index
    %187 = vector.load %arg6[%c128_132, %c0_133] : memref<192x1xf32, #tpu.memory_space<vmem>>, vector<25x1xf32>
    %c160 = arith.constant 160 : index
    %c0_134 = arith.constant 0 : index
    %188 = vector.load %arg6[%c160, %c0_134] : memref<192x1xf32, #tpu.memory_space<vmem>>, vector<25x1xf32>
    %cst_135 = arith.constant dense<0.000000e+00> : vector<25xf32>
    %189 = vector.multi_reduction <add>, %186, %cst_135 [1] : vector<25x512xf32> to vector<25xf32>
    %190 = vector.shape_cast %189 : vector<25xf32> to vector<25x1xf32>
    %cst_136 = arith.constant 0.001953125 : f32
    %191 = vector.broadcast %cst_136 : f32 to vector<25x1xf32>
    %192 = arith.mulf %190, %191 : vector<25x1xf32>
    %193 = arith.mulf %186, %186 : vector<25x512xf32>
    %cst_137 = arith.constant dense<0.000000e+00> : vector<25xf32>
    %194 = vector.multi_reduction <add>, %193, %cst_137 [1] : vector<25x512xf32> to vector<25xf32>
    %195 = vector.shape_cast %194 : vector<25xf32> to vector<25x1xf32>
    %cst_138 = arith.constant 0.001953125 : f32
    %196 = vector.broadcast %cst_138 : f32 to vector<25x1xf32>
    %197 = arith.mulf %195, %196 : vector<25x1xf32>
    %198 = arith.mulf %192, %192 : vector<25x1xf32>
    %199 = arith.subf %197, %198 : vector<25x1xf32>
    %cst_139 = arith.constant 0.000000e+00 : f32
    %200 = vector.broadcast %cst_139 : f32 to vector<25x1xf32>
    %201 = arith.maximumf %199, %200 : vector<25x1xf32>
    %cst_140 = arith.constant 9.99999974E-6 : f32
    %202 = vector.broadcast %cst_140 : f32 to vector<25x1xf32>
    %203 = arith.addf %201, %202 : vector<25x1xf32>
    %204 = math.rsqrt %203 : vector<25x1xf32>
    %205 = arith.mulf %187, %204 : vector<25x1xf32>
    %206 = arith.mulf %192, %205 : vector<25x1xf32>
    %207 = arith.subf %188, %206 : vector<25x1xf32>
    %208 = vector.broadcast %205 : vector<25x1xf32> to vector<25x512xf32>
    %209 = arith.mulf %186, %208 : vector<25x512xf32>
    %210 = vector.broadcast %207 : vector<25x1xf32> to vector<25x512xf32>
    %211 = arith.addf %209, %210 : vector<25x512xf32>
    %cst_141 = arith.constant 0.000000e+00 : f32
    %212 = vector.broadcast %cst_141 : f32 to vector<25x512xf32>
    %213 = arith.maximumf %211, %212 : vector<25x512xf32>
    %cst_142 = arith.constant dense<0xFF800000> : vector<512xf32>
    %214 = vector.multi_reduction <maximumf>, %213, %cst_142 [0] : vector<25x512xf32> to vector<512xf32>
    %215 = vector.shape_cast %214 : vector<512xf32> to vector<1x512xf32>
    %216 = vector.broadcast %215 : vector<1x512xf32> to vector<25x512xf32>
    %217 = arith.subf %213, %216 : vector<25x512xf32>
    %218 = math.exp %217 : vector<25x512xf32>
    %cst_143 = arith.constant dense<0.000000e+00> : vector<512xf32>
    %219 = vector.multi_reduction <add>, %218, %cst_143 [0] : vector<25x512xf32> to vector<512xf32>
    %220 = vector.shape_cast %219 : vector<512xf32> to vector<1x512xf32>
    %221 = tpu.reciprocal %220 : vector<1x512xf32> -> vector<1x512xf32>
    %222 = vector.broadcast %221 : vector<1x512xf32> to vector<25x512xf32>
    %223 = arith.mulf %218, %222 : vector<25x512xf32>
    %224 = vector.extract_strided_slice %223 {offsets = [0, 0], sizes = [25, 256], strides = [1, 1]} : vector<25x512xf32> to vector<25x256xf32>
    %c0_144 = arith.constant 0 : index
    %c0_145 = arith.constant 0 : index
    %c0_146 = arith.constant 0 : index
    %225 = vector.load %arg7[%c0_144, %c0_145, %c0_146] : memref<2x25x256xf32, #tpu.memory_space<vmem>>, vector<1x25x256xf32>
    %226 = vector.shape_cast %225 : vector<1x25x256xf32> to vector<25x256xf32>
    %227 = vector.shape_cast %224 : vector<25x256xf32> to vector<1x25x256xf32>
    tpu.vector_store %arg7[%c0_144, %c0_145, %c0_146], %227 {strides = array<i32>} : memref<2x25x256xf32, #tpu.memory_space<vmem>>, vector<1x25x256xf32>,
    %228 = vector.extract_strided_slice %223 {offsets = [0, 256], sizes = [25, 256], strides = [1, 1]} : vector<25x512xf32> to vector<25x256xf32>
    %c1_147 = arith.constant 1 : index
    %c0_148 = arith.constant 0 : index
    %c0_149 = arith.constant 0 : index
    %229 = vector.load %arg7[%c1_147, %c0_148, %c0_149] : memref<2x25x256xf32, #tpu.memory_space<vmem>>, vector<1x25x256xf32>
    %230 = vector.shape_cast %229 : vector<1x25x256xf32> to vector<25x256xf32>
    %231 = vector.shape_cast %228 : vector<25x256xf32> to vector<1x25x256xf32>
    tpu.vector_store %arg7[%c1_147, %c0_148, %c0_149], %231 {strides = array<i32>} : memref<2x25x256xf32, #tpu.memory_space<vmem>>, vector<1x25x256xf32>,
    return
  }
  func.func @transform_0(%arg0: i32) -> (i32, i32) {
    %c0_i32 = arith.constant 0 : i32
    %c0_i32_0 = arith.constant 0 : i32
    %c0_i32_1 = arith.constant 0 : i32
    return %c0_i32, %c0_i32_0 : i32, i32
  }
  func.func @transform_1(%arg0: i32) -> (i32, i32) {
    %c0_i32 = arith.constant 0 : i32
    %c0_i32_0 = arith.constant 0 : i32
    %c0_i32_1 = arith.constant 0 : i32
    return %c0_i32, %c0_i32_0 : i32, i32
  }
  func.func @transform_2(%arg0: i32) -> (i32, i32) {
    %c0_i32 = arith.constant 0 : i32
    %c0_i32_0 = arith.constant 0 : i32
    %c0_i32_1 = arith.constant 0 : i32
    return %c0_i32, %c0_i32_0 : i32, i32
  }
  func.func @transform_3(%arg0: i32) -> (i32, i32) {
    %c0_i32 = arith.constant 0 : i32
    %c0_i32_0 = arith.constant 0 : i32
    %c0_i32_1 = arith.constant 0 : i32
    return %c0_i32, %c0_i32_0 : i32, i32
  }
  func.func @transform_4(%arg0: i32) -> (i32, i32) {
    %c0_i32 = arith.constant 0 : i32
    %c0_i32_0 = arith.constant 0 : i32
    %c0_i32_1 = arith.constant 0 : i32
    return %c0_i32, %c0_i32_0 : i32, i32
  }
  func.func @transform_5(%arg0: i32) -> (i32, i32) {
    %c0_i32 = arith.constant 0 : i32
    %c0_i32_0 = arith.constant 0 : i32
    %c0_i32_1 = arith.constant 0 : i32
    return %c0_i32, %c0_i32_0 : i32, i32
  }
  func.func @transform_6(%arg0: i32) -> (i32, i32, i32) {
    %c0_i32 = arith.constant 0 : i32
    %c0_i32_0 = arith.constant 0 : i32
    %c0_i32_1 = arith.constant 0 : i32
    %c0_i32_2 = arith.constant 0 : i32
    return %c0_i32, %c0_i32_0, %c0_i32_1 : i32, i32, i32
  }
}

</mosaic_0001>

<bundles_post_ra>
// kernel: base_pc_forward.1
= control target key start
LH: loop header
LB: loop body
LE: loop exit
PB: predicated region body
PF: predicated region fallthrough
CT: control target
= control target key end

     0   :  { %s2452_s25 = smov 16   ;;  %s2454_s26 = smov 17   ;;  %v46_v40 = vlaneseq  ;;  %vm489_vm8 = vcmask 1042432   ;;  %vm485_vm9 = vcmask 220160   ;;  %vm921_vm13 = vcmask 588800   ;;  %s4175_s0 = inlined_call_operand.vmem [shape: f32[3,512], index: 0, kind: input, shape index: {}]   ;;  %s4176_s1 = inlined_call_operand.vmem [shape: f32[9,512], index: 1, kind: input, shape index: {}]   ;;  %s4177_s2 = inlined_call_operand.vmem [shape: f32[8,27], index: 2, kind: input, shape index: {}]   ;;  %s4178_s5 = inlined_call_operand.vmem [shape: f32[192,1], index: 5, kind: input, shape index: {}]   ;;  %s4179_s3 = inlined_call_operand.vmem [shape: f32[16,72], index: 3, kind: input, shape index: {}]   ;;  %s4180_s4 = inlined_call_operand.vmem [shape: f32[25,144], index: 4, kind: input, shape index: {}]   ;;  %s4181_s6 = inlined_call_operand.vmem [shape: f32[2,25,256], index: 6, kind: output, shape index: {}]  }
   0x1   :  { %v2499_v0 = vld [vmem:[%s4175_s0 + $0x8] sm:$0x77]  ;;  %v2504_v1 = vld [vmem:[%s4175_s0] sm:$0x77]  ;;  %s2453_s0 = smov 15   ;;  %s2455_s27 = smov 1  }
   0x2   :  { %29 = vst [vmem:[#allocation1 + $0x10] ss:$2 sm:$0xff] %v2499_v0  ;;  %s2456_s28 = smov 127   ;;  %s2457_s29 = smov 113   ;;  %v2567_v42 = vand.u32 127, %v46_v40 }
   0x3   :  { %27 = vst [vmem:[#allocation1] ss:$2 sm:$0xff] %v2504_v1  ;;  %s2458_s30 = smov 112   ;;  %s2459_s7 = smov 111  }
   0x4   :  { %v2572_v43 = vld [vmem:[%s4176_s1 + $0x1] ss:$8 sm:$0xf]  ;;  %vm90_vm0 = vcmp.lt.s32.totalorder %v2567_v42, 16  ;;  %vm145_vm1 = vcmp.lt.s32.totalorder %v2567_v42, 15  ;;  %vm48_vm2 = vcmp.lt.s32.totalorder %v2567_v42, 17 }
   0x5   :  { %v100_v44 = vperm.slane %v2572_v43, 2  ;;  %v2326_v50 = vld [vmem:[%s4176_s1 + $0x2] ss:$8 sm:$0xf]  ;;  %vm204_vm3 = vcmp.lt.s32.totalorder %v2567_v42, 1  ;;  %vm389_vm4 = vcmp.lt.s32.totalorder %v2567_v42, 112 }
   0x6   :  { %v155_v51 = vperm.slane %v2326_v50, 2  ;;  %v156_v52 = vperm.slane %v2326_v50, 3  ;;  %v153_v54 = vperm.slane %v2326_v50, 0  ;;  %v154_v55 = vperm.slane %v2326_v50, 1 }
   0x7   :  { %vm275_vm5 = vcmp.lt.s32.totalorder %v2567_v42, 127  ;;  %vm334_vm6 = vcmp.lt.s32.totalorder %v2567_v42, 113  ;;  %vm444_vm7 = vcmp.lt.s32.totalorder %v2567_v42, 111 }
   0x9   :  { %v32_v2 = vld.sshfl [vmem:[#allocation1 + $0x10] sm:$0xff pattern:$0x75316420]  ;;  %v2508_v3 = vld.sshfl [vmem:[#allocation1 + $0x18] sm:$0xff pattern:$0x75316420] }
   0xa   :  { %73 = vst [vmem:[#allocation1 + $0x10] ss:$2 sm:$0xff] %v2499_v0  ;;  %v2511_v4 = vld.sshfl [vmem:[#allocation1] sm:$0xff pattern:$0x75316420] }
   0xb   :  { %v31_v5 = vld.sshfl [vmem:[#allocation1 + $0x8] sm:$0xff pattern:$0x75316420] }
   0xc   :  { %71 = vst [vmem:[#allocation1] ss:$2 sm:$0xff] %v2504_v1 }
  0x11   :  { %v76_v6 = vld.sshfl [vmem:[#allocation1 + $0x10] sm:$0xff pattern:$0x75316420]  ;;  %v2514_v7 = vld.sshfl [vmem:[#allocation1 + $0x18] sm:$0xff pattern:$0x75316420] }
  0x12   :  { %86 = vrot.lane.b32.xlu0 %v76_v6, %s2452_s25  ;;  %128 = vst [vmem:[#allocation1 + $0x10] ss:$2 sm:$0xff] %v2499_v0 }
  0x13   :  { %v75_v8 = vld.sshfl [vmem:[#allocation1 + $0x8] sm:$0xff pattern:$0x75316420]  ;;  %v74_v9 = vld.sshfl [vmem:[#allocation1] sm:$0xff pattern:$0x75316420] }
  0x14   :  { %84 = vrot.lane.b32.xlu2 %v75_v8, %s2452_s25  ;;  %126 = vst [vmem:[#allocation1] ss:$2 sm:$0xff] %v2504_v1 }
  0x19   :  { %v131_v10 = vld.sshfl [vmem:[#allocation1 + $0x10] sm:$0xff pattern:$0x75316420]  ;;  %v132_v11 = vld.sshfl [vmem:[#allocation1 + $0x18] sm:$0xff pattern:$0x75316420] }
  0x1a   :  { %141 = vrot.lane.b32.xlu0 %v131_v10, %s2453_s0  ;;  %187 = vst [vmem:[#allocation1 + $0x10] ss:$2 sm:$0xff] %v2499_v0 }
  0x1b   :  { %v130_v12 = vld.sshfl [vmem:[#allocation1 + $0x8] sm:$0xff pattern:$0x75316420]  ;;  %v129_v13 = vld.sshfl [vmem:[#allocation1] sm:$0xff pattern:$0x75316420] }
  0x1c   :  { %139 = vrot.lane.b32.xlu2 %v130_v12, %s2453_s0  ;;  %137 = vrot.lane.b32.xlu1 %v129_v13, %s2453_s0  ;;  %185 = vst [vmem:[#allocation1] ss:$2 sm:$0xff] %v2504_v1 }
  0x21   :  { %v190_v14 = vld.sshfl [vmem:[#allocation1 + $0x10] sm:$0xff pattern:$0x75316420]  ;;  %v191_v15 = vld.sshfl [vmem:[#allocation1 + $0x18] sm:$0xff pattern:$0x75316420] }
  0x22   :  { %42 = vrot.lane.b32.xlu0 %v32_v2, %s2454_s26  ;;  %243 = vst [vmem:[#allocation1 + $0x11] ss:$2 sm:$0xff] %v2499_v0 }
  0x23   :  { %v189_v16 = vld.sshfl [vmem:[#allocation1 + $0x8] sm:$0xff pattern:$0x75316420]  ;;  %v188_v17 = vld.sshfl [vmem:[#allocation1] sm:$0xff pattern:$0x75316420] }
  0x24   :  { %143 = vrot.lane.b32.xlu2 %v132_v11, %s2453_s0  ;;  %198 = vrot.lane.b32.xlu1 %v189_v16, %s2455_s27  ;;  %241 = vst [vmem:[#allocation1 + $0x1] ss:$2 sm:$0xff] %v2504_v1 }
  0x29   :  { %v246_v18 = vld.sshfl [vmem:[#allocation1 + $0x10] sm:$0xff pattern:$0x75316420]  ;;  %v247_v21 = vld.sshfl [vmem:[#allocation1 + $0x18] sm:$0xff pattern:$0x75316420] }
  0x2a   :  { %196 = vrot.lane.b32.xlu0 %v188_v17, %s2455_s27  ;;  %254 = vst [vmem:[#allocation2 + $0x70] sm:$0x70] %v246_v18 }
  0x2b   :  { %v244_v19 = vld.sshfl [vmem:[#allocation1] sm:$0xff pattern:$0x75316420]  ;;  %v245_v20 = vld.sshfl [vmem:[#allocation1 + $0x8] sm:$0xff pattern:$0x75316420] }
  0x2c   :  { %200 = vrot.lane.b32.xlu2 %v190_v14, %s2455_s27  ;;  %82 = vrot.lane.b32.xlu1 %v74_v9, %s2452_s25  ;;  %252 = vst [vmem:[#allocation2 + $0xe8] sm:$0x70] %v244_v19  ;;  %v99_v19 = vperm.slane %v2572_v43, 1 }
  0x2d   :  { %253 = vst [vmem:[#allocation2 + $0xf0] sm:$0x70] %v245_v20 }
  0x2e   :  { %256 = vst [vmem:[#allocation1] ss:$2 sm:$0xff] %v2504_v1 }
  0x2f   :  { %255 = vst [vmem:[#allocation2 + $0x120] sm:$0x70] %v247_v21 }
  0x30   :  { %258 = vst [vmem:[#allocation1 + $0x10] ss:$2 sm:$0xff] %v2499_v0 }
  0x34   :  { %40 = vrot.lane.b32.xlu2 %v31_v5, %s2454_s26  ;;  %202 = vrot.lane.b32.xlu1 %v191_v15, %s2455_s27  ;;  %v2327_v5 = vld [vmem:[%s4176_s1 + $0x3] ss:$8 sm:$0xf] }
  0x35   :  { %v260_v22 = vld.sshfl [vmem:[#allocation1 + $0x8] sm:$0xff pattern:$0x75316420]  ;;  %v259_v23 = vld.sshfl [vmem:[#allocation1] sm:$0xff pattern:$0x75316420] }
  0x36   :  { %315 = vst [vmem:[#allocation1] ss:$2 sm:$0xff] %v2504_v1  ;;  %v214_v10 = vperm.slane %v2327_v5, 2  ;;  %v213_v18 = vperm.slane %v2327_v5, 1 }
  0x37   :  { %v261_v24 = vld.sshfl [vmem:[#allocation1 + $0x10] sm:$0xff pattern:$0x75316420]  ;;  %v262_v25 = vld.sshfl [vmem:[#allocation1 + $0x18] sm:$0xff pattern:$0x75316420] }
  0x38   :  { %271 = vrot.lane.b32.xlu0 %v261_v24, %s2456_s28  ;;  %317 = vst [vmem:[#allocation1 + $0x10] ss:$2 sm:$0xff] %v2499_v0 }
  0x3c   :  { %269 = vrot.lane.b32.xlu1 %v260_v22, %s2456_s28 }
  0x3d   :  { %v318_v26 = vld.sshfl [vmem:[#allocation1] sm:$0xff pattern:$0x75316420]  ;;  %v319_v27 = vld.sshfl [vmem:[#allocation1 + $0x8] sm:$0xff pattern:$0x75316420] }
  0x3e   :  { %326 = vrot.lane.b32.xlu2 %v318_v26, %s2457_s29  ;;  %370 = vst [vmem:[#allocation1] ss:$2 sm:$0xff] %v2504_v1 }
  0x3f   :  { %v320_v28 = vld.sshfl [vmem:[#allocation1 + $0x10] sm:$0xff pattern:$0x75316420]  ;;  %v321_v29 = vld.sshfl [vmem:[#allocation1 + $0x18] sm:$0xff pattern:$0x75316420] }
  0x40   :  { %273 = vrot.lane.b32.xlu0 %v262_v25, %s2456_s28  ;;  %372 = vst [vmem:[#allocation1 + $0x10] ss:$2 sm:$0xff] %v2499_v0 }
  0x44   :  { %330 = vrot.lane.b32.xlu1 %v320_v28, %s2457_s29 }
  0x45   :  { %v374_v30 = vld.sshfl [vmem:[#allocation1 + $0x8] sm:$0xff pattern:$0x75316420]  ;;  %v373_v31 = vld.sshfl [vmem:[#allocation1] sm:$0xff pattern:$0x75316420] }
  0x46   :  { %425 = vst [vmem:[#allocation1] ss:$2 sm:$0xff] %v2504_v1 }
  0x47   :  { %v375_v32 = vld.sshfl [vmem:[#allocation1 + $0x10] sm:$0xff pattern:$0x75316420]  ;;  %v376_v33 = vld.sshfl [vmem:[#allocation1 + $0x18] sm:$0xff pattern:$0x75316420] }
  0x48   :  { %267 = vrot.lane.b32.xlu0 %v259_v23, %s2456_s28  ;;  %385 = vrot.lane.b32.xlu2 %v375_v32, %s2458_s30  ;;  %427 = vst [vmem:[#allocation1 + $0x10] ss:$2 sm:$0xff] %v2499_v0  ;;  %v2601_v0 = vld [vmem:[%s4176_s1] ss:$8 sm:$0xf] }
  0x4c   :  { %332 = vrot.lane.b32.xlu1 %v321_v29, %s2457_s29  ;;  %v212_v29 = vperm.slane %v2327_v5, 0 }
  0x4d   :  { %v428_v36 = vld.sshfl [vmem:[#allocation1] sm:$0xff pattern:$0x75316420]  ;;  %v429_v37 = vld.sshfl [vmem:[#allocation1 + $0x8] sm:$0xff pattern:$0x75316420] }
  0x4f   :  { %v430_v34 = vld.sshfl [vmem:[#allocation1 + $0x10] sm:$0xff pattern:$0x75316420]  ;;  %v431_v35 = vld.sshfl [vmem:[#allocation1 + $0x18] sm:$0xff pattern:$0x75316420] }
  0x50   :  { %328 = vrot.lane.b32.xlu0 %v319_v27, %s2457_s29  ;;  %387 = vrot.lane.b32.xlu2 %v376_v33, %s2458_s30 }
  0x54   :  { %381 = vrot.lane.b32.xlu1 %v373_v31, %s2458_s30  ;;  %v2632_v31 = vld [vmem:[%s4176_s1 + $0x7] ss:$8 sm:$0xf] }
  0x58   :  { %440 = vrot.lane.b32.xlu0 %v430_v34, %s2459_s7  ;;  %383 = vrot.lane.b32.xlu2 %v374_v30, %s2458_s30  ;;  %v215_v30 = vperm.slane %v2327_v5, 3 }
  0x5c   :  { %442 = vrot.lane.b32.xlu1 %v431_v35, %s2459_s7 }
  0x60   :  { %88 = vrot.lane.b32.xlu2 %v2514_v7, %s2452_s25  ;;  %436 = vrot.lane.b32.xlu0 %v428_v36, %s2459_s7  ;;  %v57_v7 = vperm.slane %v2601_v0, 2 }
  0x64   :  { %438 = vrot.lane.b32.xlu1 %v429_v37, %s2459_s7  ;;  %v399_v37 = vperm.slane %v2632_v31, 2 }
  0x68   :  { %38 = vrot.lane.b32.xlu0 %v2511_v4, %s2454_s26 }
  0x6c   :  { %44 = vrot.lane.b32.xlu1 %v2508_v3, %s2454_s26 }
  0x6e   :  { %v2565_v38 = vpop.permute.xlu2 %84 }
  0x76   :  { %v140_v39 = vpop.permute.xlu2 %139 }
  0x7e   :  { %v144_v41 = vpop.permute.xlu2 %143 }
  0x84   :  { %v2576_v45 = vpop.permute.xlu0 %86 }
  0x85   :  { %v92_v46 = vsel %vm90_vm0, %v2565_v38, %v2576_v45 }
  0x86   :  { %v108_v47 = vmul.f32 %v100_v44, %v92_v46  ;;  %v2582_v48 = vpop.permute.xlu2 %200 }
  0x88   :  { %v116_v49 = vrot.slane %v108_v47, 5 }
  0x8a   :  { %124 = vst [vmem:[#allocation2 + $0x40] sm:$0x38] %v116_v49 }
  0x8c   :  { %v142_v53 = vpop.permute.xlu0 %141 }
  0x8d   :  { %v146_v56 = vsel %vm145_vm1, %v142_v53, %v144_v41  ;;  %v147_v57 = vsel %vm145_vm1, %v140_v39, %v142_v53 }
  0x8e   :  { %v163_v58 = vmul.f32 %v155_v51, %v147_v57  ;;  %v164_v59 = vmul.f32 %v156_v52, %v146_v56  ;;  %v2592_v60 = vpop.permute.xlu2 %40  ;;  %v138_v61 = vpop.permute.xlu1 %137 }
  0x8f   :  { %v148_v62 = vsel %vm145_vm1, %v138_v61, %v140_v39  ;;  %v149_v63 = vsel %vm145_vm1, %v144_v41, %v138_v61 }
  0x90   :  { %v171_v1 = vrot.slane %v163_v58, 2  ;;  %v172_v2 = vrot.slane %v164_v59, 2  ;;  %v161_v3 = vmul.f32 %v153_v54, %v149_v63  ;;  %v162_v4 = vmul.f32 %v154_v55, %v148_v62 }
  0x91   :  { %v398_v54 = vperm.slane %v2632_v31, 1 }
  0x92   :  { %179 = vst [vmem:[#allocation2 + $0x40] sm:$0xc0] %v171_v1  ;;  %v169_v6 = vrot.slane %v161_v3, 2  ;;  %v170_v8 = vrot.slane %v162_v4, 2 }
  0x93   :  { %180 = vst [vmem:[#allocation2 + $0x28] sm:$0xc0] %v172_v2  ;;  %v2329_v3 = vld [vmem:[%s4176_s1 + $0x6] ss:$8 sm:$0xf] }
  0x94   :  { %183 = vst [vmem:[#allocation2 + $0x70] sm:$0x1] %v171_v1  ;;  %v2608_v9 = vpop.permute.xlu0 %42 }
  0x95   :  { %184 = vst [vmem:[#allocation2 + $0x120] sm:$0x1] %v172_v2  ;;  %v50_v11 = vsel %vm48_vm2, %v2592_v60, %v2608_v9 }
  0x96   :  { %177 = vst [vmem:[#allocation2 + $0xc8] sm:$0xc0] %v169_v6  ;;  %v65_v12 = vmul.f32 %v57_v7, %v50_v11  ;;  %v199_v13 = vpop.permute.xlu1 %198  ;;  %v101_v7 = vperm.slane %v2572_v43, 3  ;;  %v344_v11 = vperm.slane %v2329_v3, 2 }
  0x97   :  { %178 = vst [vmem:[#allocation2 + $0x8] sm:$0xc0] %v170_v8  ;;  %v206_v14 = vsel %vm204_vm3, %v199_v13, %v2582_v48 }
  0x98   :  { %181 = vst [vmem:[#allocation2 + $0xe8] sm:$0x1] %v169_v6  ;;  %v222_v15 = vmul.f32 %v214_v10, %v206_v14  ;;  %v2618_v16 = vpop.permute.xlu2 %326  ;;  %v98_v6 = vperm.slane %v2572_v43, 0 }
  0x99   :  { %182 = vst [vmem:[#allocation2 + $0xf0] sm:$0x1] %v170_v8 }
  0x9a   :  { %69 = vst [vmem:[#allocation2 + $0x40] sm:$0x7] %v65_v12  ;;  %v230_v17 = vrot.slane %v222_v15, 7 }
  0x9c   :  { %238 = vst [vmem:[#allocation2 + $0x70] sm:$0xe] %v230_v17  ;;  %v197_v20 = vpop.permute.xlu0 %196 }
  0x9d   :  { %v207_v21 = vsel %vm204_vm3, %v197_v20, %v199_v13 }
  0x9e   :  { %v2623_v22 = vpop.permute.xlu1 %82  ;;  %v221_v23 = vmul.f32 %v213_v18, %v207_v21 }
  0x9f   :  { %v93_v24 = vsel %vm90_vm0, %v2623_v22, %v2565_v38  ;;  %v2328_v38 = vld [vmem:[%s4176_s1 + $0x5] ss:$8 sm:$0xf] }
  0xa0   :  { %v107_v25 = vmul.f32 %v99_v19, %v93_v24  ;;  %v229_v26 = vrot.slane %v221_v23, 7  ;;  %v285_v52 = vperm.slane %v2328_v38, 2  ;;  %v283_v4 = vperm.slane %v2328_v38, 0 }
  0xa1   :  { %v286_v5 = vperm.slane %v2328_v38, 3  ;;  %v345_v19 = vperm.slane %v2329_v3, 3 }
  0xa2   :  { %v115_v27 = vrot.slane %v107_v25, 5  ;;  %237 = vst [vmem:[#allocation2 + $0xf0] sm:$0xe] %v229_v26  ;;  %v386_v28 = vpop.permute.xlu2 %385 }
  0xa4   :  { %123 = vst [vmem:[#allocation2 + $0x8] sm:$0x38] %v115_v27 }
  0xa6   :  { %v203_v32 = vpop.permute.xlu1 %202 }
  0xa7   :  { %v205_v33 = vsel %vm204_vm3, %v2582_v48, %v203_v32  ;;  %v208_v34 = vsel %vm204_vm3, %v203_v32, %v197_v20  ;;  %v284_v48 = vperm.slane %v2328_v38, 1 }
  0xa8   :  { %v220_v35 = vmul.f32 %v212_v29, %v208_v34  ;;  %v223_v36 = vmul.f32 %v215_v30, %v205_v33  ;;  %v343_v29 = vperm.slane %v2329_v3, 1 }
  0xaa   :  { %v228_v39 = vrot.slane %v220_v35, 7  ;;  %v231_v40 = vrot.slane %v223_v36, 7  ;;  %v272_v41 = vpop.permute.xlu0 %271  ;;  %v2644_v44 = vpop.permute.xlu2 %387 }
  0xab   :  { %v390_v46 = vsel %vm389_vm4, %v386_v28, %v2644_v44 }
  0xac   :  { %236 = vst [vmem:[#allocation2 + $0xe8] sm:$0xe] %v228_v39  ;;  %v407_v47 = vmul.f32 %v399_v37, %v390_v46  ;;  %v397_v39 = vperm.slane %v2632_v31, 0 }
  0xad   :  { %239 = vst [vmem:[#allocation2 + $0x120] sm:$0xe] %v231_v40  ;;  %v400_v40 = vperm.slane %v2632_v31, 3  ;;  %v2331_v31 = vld [vmem:[%s4176_s1 + $0x20] ss:$8 sm:$0xf] }
  0xae   :  { %v415_v49 = vrot.slane %v407_v47, 3  ;;  %v270_v50 = vpop.permute.xlu1 %269 }
  0xaf   :  { %v277_v51 = vsel %vm275_vm5, %v270_v50, %v272_v41 }
  0xb0   :  { %423 = vst [vmem:[#allocation2 + $0xb0] sm:$0xe0] %v415_v49  ;;  %v292_v53 = vmul.f32 %v284_v48, %v277_v51 }
  0xb2   :  { %v274_v55 = vpop.permute.xlu0 %273  ;;  %v300_v56 = vrot.slane %v292_v53, 1  ;;  %v2653_v57 = vpop.permute.xlu2 %383 }
  0xb3   :  { %v276_v58 = vsel %vm275_vm5, %v272_v41, %v274_v55  ;;  %v391_v59 = vsel %vm389_vm4, %v2653_v57, %v386_v28 }
  0xb4   :  { %v293_v61 = vmul.f32 %v285_v52, %v276_v58  ;;  %308 = vst [vmem:[#allocation2 + $0xf0] sm:$0x80] %v300_v56  ;;  %v406_v62 = vmul.f32 %v398_v54, %v391_v59  ;;  %v454_v54 = vperm.slane %v2331_v31, 2 }
  0xb5   :  { %312 = vst [vmem:[#allocation2 + $0x18] sm:$0x3] %v300_v56 }
  0xb6   :  { %v301_v63 = vrot.slane %v293_v61, 1  ;;  %v414_v1 = vrot.slane %v406_v62, 3  ;;  %v331_v2 = vpop.permute.xlu1 %330  ;;  %v452_v62 = vperm.slane %v2331_v31, 0 }
  0xb8   :  { %309 = vst [vmem:[#allocation2 + $0x70] sm:$0x80] %v301_v63 }
  0xb9   :  { %313 = vst [vmem:[#allocation2 + $0xb0] sm:$0x3] %v301_v63  ;;  %v453_v63 = vperm.slane %v2331_v31, 1 }
  0xba   :  { %422 = vst [vmem:[#allocation2 + $0x18] sm:$0xe0] %v414_v1  ;;  %v268_v8 = vpop.permute.xlu0 %267  ;;  %v89_v10 = vpop.permute.xlu2 %88 }
  0xbb   :  { %v278_v12 = vsel %vm275_vm5, %v268_v8, %v270_v50  ;;  %v279_v13 = vsel %vm275_vm5, %v274_v55, %v268_v8  ;;  %v91_v14 = vsel %vm90_vm0, %v2576_v45, %v89_v10  ;;  %v94_v43 = vsel %vm90_vm0, %v89_v10, %v2623_v22 }
  0xbc   :  { %v291_v15 = vmul.f32 %v283_v4, %v278_v12  ;;  %v294_v17 = vmul.f32 %v286_v5, %v279_v13  ;;  %v106_v18 = vmul.f32 %v98_v6, %v94_v43  ;;  %v109_v20 = vmul.f32 %v101_v7, %v91_v14 }
  0xbd   :  { %v342_v45 = vperm.slane %v2329_v3, 0  ;;  %v56_v6 = vperm.slane %v2601_v0, 1  ;;  %v55_v13 = vperm.slane %v2601_v0, 0  ;;  %v58_v14 = vperm.slane %v2601_v0, 3 }
  0xbe   :  { %v299_v21 = vrot.slane %v291_v15, 1  ;;  %v302_v23 = vrot.slane %v294_v17, 1  ;;  %v333_v24 = vpop.permute.xlu1 %332  ;;  %v114_v27 = vrot.slane %v106_v18, 5  ;;  %v117_v30 = vrot.slane %v109_v20, 5 }
  0xbf   :  { %v335_v25 = vsel %vm334_vm6, %v331_v2, %v333_v24  ;;  %v338_v26 = vsel %vm334_vm6, %v333_v24, %v2618_v16  ;;  %v475_v43 = vld [vmem:[#allocation2 + $0x70] sm:$0xff] }
  0xc0   :  { %307 = vst [vmem:[#allocation2 + $0xe8] sm:$0x80] %v299_v21  ;;  %v352_v28 = vmul.f32 %v344_v11, %v335_v25  ;;  %v353_v22 = vmul.f32 %v345_v19, %v338_v26  ;;  %v471_v19 = vld [vmem:[#allocation2 + $0x40] sm:$0xff] }
  0xc1   :  { %310 = vst [vmem:[#allocation2 + $0x120] sm:$0x80] %v302_v23 }
  0xc2   :  { %311 = vst [vmem:[#allocation2 + $0xd8] sm:$0x3] %v299_v21  ;;  %v360_v32 = vrot.slane %v352_v28, 6  ;;  %v329_v33 = vpop.permute.xlu0 %328  ;;  %v361_v34 = vrot.slane %v353_v22, 6 }
  0xc3   :  { %314 = vst [vmem:[#allocation2 + $0x158] sm:$0x3] %v302_v23  ;;  %v336_v35 = vsel %vm334_vm6, %v329_v33, %v331_v2  ;;  %v337_v36 = vsel %vm334_vm6, %v2618_v16, %v329_v33 }
  0xc4   :  { %122 = vst [vmem:[#allocation2 + $0xc8] sm:$0x38] %v114_v27  ;;  %v350_v37 = vmul.f32 %v342_v45, %v337_v36  ;;  %v351_v38 = vmul.f32 %v343_v29, %v336_v35  ;;  %v474_v29 = vld [vmem:[#allocation2 + $0xf0] sm:$0xff] }
  0xc5   :  { %125 = vst [vmem:[#allocation2 + $0x28] sm:$0x38] %v117_v30 }
  0xc6   :  { %368 = vst [vmem:[#allocation2 + $0xb0] sm:$0x1c] %v360_v32  ;;  %v358_v41 = vrot.slane %v350_v37, 6  ;;  %v359_v46 = vrot.slane %v351_v38, 6  ;;  %v382_v47 = vpop.permute.xlu1 %381 }
  0xc7   :  { %369 = vst [vmem:[#allocation2 + $0x158] sm:$0x1c] %v361_v34  ;;  %v392_v48 = vsel %vm389_vm4, %v382_v47, %v2653_v57  ;;  %v393_v16 = vsel %vm389_vm4, %v2644_v44, %v382_v47  ;;  %v455_v57 = vperm.slane %v2331_v31, 3  ;;  %v473_v26 = vld [vmem:[#allocation2 + $0xe8] sm:$0xff] }
  0xc8   :  { %366 = vst [vmem:[#allocation2 + $0xd8] sm:$0x1c] %v358_v41  ;;  %v405_v49 = vmul.f32 %v397_v39, %v392_v48  ;;  %v408_v50 = vmul.f32 %v400_v40, %v393_v16  ;;  %v476_v25 = vld [vmem:[#allocation2 + $0x120] sm:$0xff] }
  0xc9   :  { %367 = vst [vmem:[#allocation2 + $0x18] sm:$0x1c] %v359_v46 }
  0xca   :  { %v441_v51 = vpop.permute.xlu0 %440  ;;  %v413_v52 = vrot.slane %v405_v49, 3  ;;  %v416_v53 = vrot.slane %v408_v50, 3  ;;  %v2460_v49 = vmov 0  }
  0xcb   :  { %2395 = vset.pattern.permute.xlu1 %v2460_v49  ;;  %2396 = vset.pattern.permute.xlu2 %v2460_v49 }
  0xcc   :  { %421 = vst [vmem:[#allocation2 + $0xd8] sm:$0xe0] %v413_v52  ;;  %2397 = vset.pattern.permute.xlu0 %v2460_v49 }
  0xcd   :  { %424 = vst [vmem:[#allocation2 + $0x158] sm:$0xe0] %v416_v53  ;;  %v479_v11 = vld [vmem:[#allocation2 + $0xb0] sm:$0xff] }
  0xce   :  { %v443_v55 = vpop.permute.xlu1 %442 }
  0xcf   :  { %v445_v44 = vsel %vm444_vm7, %v441_v51, %v443_v55 }
  0xd0   :  { %v462_v56 = vmul.f32 %v454_v54, %v445_v44  ;;  %v478_v22 = vld [vmem:[#allocation2 + $0x18] sm:$0xff] }
  0xd2   :  { %466 = vst [vmem:[#allocation2 + $0x1f8] sm:$0x7] %v462_v56  ;;  %v437_v58 = vpop.permute.xlu0 %436 }
  0xd3   :  { %v448_v59 = vsel %vm444_vm7, %v443_v55, %v437_v58  ;;  %v477_v24 = vld [vmem:[#allocation2 + $0xd8] sm:$0xff] }
  0xd4   :  { %v463_v61 = vmul.f32 %v455_v57, %v448_v59 }
  0xd6   :  { %467 = vst [vmem:[#allocation2 + $0xb8] sm:$0x7] %v463_v61  ;;  %v439_v1 = vpop.permute.xlu1 %438 }
  0xd7   :  { %v446_v2 = vsel %vm444_vm7, %v439_v1, %v441_v51  ;;  %v447_v3 = vsel %vm444_vm7, %v437_v58, %v439_v1 }
  0xd8   :  { %v460_v4 = vmul.f32 %v452_v62, %v447_v3  ;;  %v461_v5 = vmul.f32 %v453_v63, %v446_v2  ;;  %v582_v62 = vld [vmem:[%s4178_s5] sm:$0xff] }
  0xd9   :  { %v483_v7 = vld [vmem:[#allocation2 + $0x1f8] sm:$0x7] }
  0xda   :  { %464 = vst [vmem:[#allocation2 + $0x108] sm:$0x7] %v460_v4  ;;  %v39_v8 = vpop.permute.xlu0 %38  ;;  %2336 = vmatpush.msk.msra.mxu3 %vm489_vm8, %v483_v7  ;;  %v583_v4 = vld [vmem:[%s4178_s5 + $0x20] sm:$0xff] }
  0xdb   :  { %465 = vst [vmem:[#allocation2 + $0x110] sm:$0x7] %v461_v5  ;;  %v51_v10 = vsel %vm48_vm2, %v39_v8, %v2592_v60  ;;  %v468_v60 = vld [vmem:[%s4177_s2] sm:$0xff] }
  0xdc   :  { %v64_v12 = vmul.f32 %v56_v6, %v51_v10  ;;  %555 = vmatpush.msra.mxu3 %v479_v11 }
  0xdd   :  { %v484_v0 = vld [vmem:[#allocation2 + $0xb8] sm:$0x7] }
  0xde   :  { %68 = vst [vmem:[#allocation2 + $0x8] sm:$0x7] %v64_v12  ;;  %556 = vmatpush.msra.mxu3 %v475_v43  ;;  %v45_v15 = vpop.permute.xlu1 %44 }
  0xdf   :  { %v49_v17 = vsel %vm48_vm2, %v2608_v9, %v45_v15  ;;  %v52_v18 = vsel %vm48_vm2, %v45_v15, %v39_v8  ;;  %v480_v9 = vld [vmem:[#allocation2 + $0x158] sm:$0xff] }
  0xe0   :  { %v63_v20 = vmul.f32 %v55_v13, %v52_v18  ;;  %v66_v21 = vmul.f32 %v58_v14, %v49_v17  ;;  %557 = vmatpush.msra.mxu3 %v471_v19 }
  0xe1   :  { %v481_v23 = vld [vmem:[#allocation2 + $0x108] sm:$0x7]  ;;  %2337 = vmatmul.msk.f32.vlgmr.msra.gmra.mxu3 %vm485_vm9, %v468_v60 }
  0xe2   :  { %2338 = vmatpush.msk.msrb.mxu3 %vm489_vm8, %v484_v0  ;;  %67 = vst [vmem:[#allocation2 + $0xc8] sm:$0x7] %v63_v20  ;;  %2332 = vmatpush.msk.msra.mxu1 %vm489_vm8, %v481_v23  ;;  %v482_v28 = vld [vmem:[#allocation2 + $0x110] sm:$0x7] }
  0xe3   :  { %70 = vst [vmem:[#allocation2 + $0x28] sm:$0x7] %v66_v21  ;;  %v2346_v0 = vld [vmem:[%s4176_s1 + $0x20] ss:$8 sm:$0xf] }
  0xe4   :  { %575 = vmatpush.msrb.mxu3 %v480_v9  ;;  %515 = vmatpush.msra.mxu1 %v477_v24  ;;  %v868_v9 = vperm.slane %v2346_v0, 1 }
  0xe5   :  { %v470_v30 = vld [vmem:[#allocation2 + $0x8] sm:$0xff] }
  0xe6   :  { %576 = vmatpush.msrb.mxu3 %v476_v25  ;;  %516 = vmatpush.msra.mxu1 %v473_v26 }
  0xe9   :  { %v469_v45 = vld [vmem:[#allocation2 + $0xc8] sm:$0xff] }
  0xea   :  { %517 = vmatpush.msra.mxu1 %v469_v45  ;;  %v472_v27 = vld [vmem:[#allocation2 + $0x28] sm:$0xff] }
  0xeb   :  { %577 = vmatpush.msrb.mxu3 %v472_v27  ;;  %2333 = vmatmul.msk.f32.vlgmr.msra.gmra.mxu1 %vm485_vm9, %v468_v60 }
  0xec   :  { %2334 = vmatpush.msk.msrb.mxu1 %vm489_vm8, %v482_v28  ;;  %2339 = vmatmul.msk.f32.vlgmr.msrb.gmra.mxu3 %vm485_vm9, %v468_v60  ;;  %v869_v28 = vperm.slane %v2346_v0, 2 }
  0xee   :  { %535 = vmatpush.msrb.mxu1 %v478_v22 }
  0xf0   :  { %536 = vmatpush.msrb.mxu1 %v474_v29 }
  0xf2   :  { %537 = vmatpush.msrb.mxu1 %v470_v30 }
  0xf3   :  { %2335 = vmatmul.msk.f32.vlgmr.msrb.gmra.mxu1 %vm485_vm9, %v468_v60 }
 0x164   :  { %v559_v32 = vpop.f32.mrf.mxu3 }
 0x165   :  { %v592_v39 = vmul.f32 %v559_v32, %v559_v32 }
 0x168   :  { %v519_v33 = vpop.f32.mrf.mxu1 }
 0x169   :  { %v590_v36 = vmul.f32 %v519_v33, %v519_v33 }
 0x16f   :  { %v579_v35 = vpop.f32.mrf.mxu3 }
 0x170   :  { %v539_v34 = vpop.f32.mrf.mxu1  ;;  %v593_v41 = vmul.f32 %v579_v35, %v579_v35 }
 0x171   :  { %v584_v37 = vadd.f32 %v539_v34, %v519_v33  ;;  %v591_v38 = vmul.f32 %v539_v34, %v539_v34 }
 0x173   :  { %v585_v40 = vadd.f32 %v584_v37, %v559_v32  ;;  %v594_v46 = vadd.f32 %v591_v38, %v590_v36  ;;  %v2826_v37 = vld [vmem:[%s4176_s1 + $0x5] ss:$8 sm:$0xf] }
 0x175   :  { %v586_v47 = vadd.f32 %v585_v40, %v579_v35  ;;  %v595_v48 = vadd.f32 %v594_v46, %v592_v39 }
 0x177   :  { %587 = vadd.xlane.f32.xlu2 %v586_v47  ;;  %v596_v16 = vadd.f32 %v595_v48, %v593_v41 }
 0x179   :  { %597 = vadd.xlane.f32.xlu0 %v596_v16  ;;  %v778_v16 = vperm.slane %v2826_v37, 1 }
 0x1ea   :  { %v588_v50 = vpop.xlane.xlu2 %587 }
 0x1eb   :  { %v589_v31 = vmul.f32 0.001953125, %v588_v50 }
 0x1ec   :  { %v598_v51 = vpop.xlane.xlu0 %597 }
 0x1ed   :  { %v600_v52 = vmul.f32 %v589_v31, %v589_v31  ;;  %v599_v53 = vmul.f32 0.001953125, %v598_v51 }
 0x1ef   :  { %v601_v54 = vsub.f32 %v599_v53, %v600_v52  ;;  %v867_v53 = vperm.slane %v2346_v0, 0 }
 0x1f1   :  { %v602_v55 = vmax.f32 %v601_v54, 0.0  ;;  %v870_v54 = vperm.slane %v2346_v0, 3 }
 0x1f3   :  { %v603_v44 = vadd.f32 1e-05, %v602_v55 }
 0x1f5   :  { %2398 = vrsqrt.f32 %v603_v44  ;;  %vm610_vm11 = vweird.f32 %v603_v44 }
 0x1fb   :  { %v2399_v56 = vpop.eup %2398 }
 0x1fc   :  { %v605_v57 = vmul.f32 %v2399_v56, %v603_v44  ;;  %vm611_vm10 = vweird.f32 %v2399_v56 }
 0x1fd   :  { %vm612_vm12 = vmor %vm610_vm11, %vm611_vm10 }
 0x1fe   :  { %v606_v58 = vmul.f32 %v2399_v56, %v605_v57 }
 0x200   :  { %v607_v59 = vmul.f32 0.5, %v606_v58 }
 0x202   :  { %v608_v61 = vsub.f32 1.5, %v607_v59 }
 0x204   :  { %v609_v63 = vmul.f32 %v2399_v56, %v608_v61 }
 0x206   :  { %v613_v1 = vsel %vm612_vm12, %v2399_v56, %v609_v63  ;;  %vm1622_vm12 = vcmask 130048  }
 0x207   :  { %v614_v2 = vmul.f32 %v613_v1, %v582_v62 }
 0x209   :  { %619 = vperm.xlu1 %2395, %v614_v2   ;;  %v615_v3 = vmul.f32 %v614_v2, %v589_v31 }
 0x20b   :  { %v616_v5 = vsub.f32 %v583_v4, %v615_v3 }
 0x211   :  { %628 = vperm.xlu1 %2395, %v616_v5  }
 0x27b   :  { %v620_v6 = vpop.permute.xlu1 %619 }
 0x27c   :  { %v624_v7 = vmul.f32 %v620_v6, %v559_v32  ;;  %v625_v8 = vmul.f32 %v620_v6, %v579_v35  ;;  %v623_v43 = vmul.f32 %v620_v6, %v539_v34  ;;  %v622_v18 = vmul.f32 %v620_v6, %v519_v33  ;;  %v2345_v33 = vld [vmem:[%s4176_s1 + $0x7] ss:$8 sm:$0xf]  ;;  %v2344_v34 = vld [vmem:[%s4176_s1 + $0x6] ss:$8 sm:$0xf] }
 0x27d   :  { %v839_v35 = vperm.slane %v2345_v33, 2  ;;  %v838_v36 = vperm.slane %v2345_v33, 1  ;;  %v808_v39 = vperm.slane %v2344_v34, 1  ;;  %v809_v61 = vperm.slane %v2344_v34, 2 }
 0x27e   :  { %v837_v3 = vperm.slane %v2345_v33, 0  ;;  %v840_v4 = vperm.slane %v2345_v33, 3  ;;  %v807_v6 = vperm.slane %v2344_v34, 0 }
 0x283   :  { %v629_v10 = vpop.permute.xlu1 %628 }
 0x284   :  { %v633_v11 = vadd.f32 %v629_v10, %v624_v7  ;;  %v634_v12 = vadd.f32 %v629_v10, %v625_v8  ;;  %v632_v15 = vadd.f32 %v629_v10, %v623_v43  ;;  %v631_v19 = vadd.f32 %v629_v10, %v622_v18  ;;  %v2342_v18 = vld [vmem:[%s4176_s1 + $0x3] ss:$8 sm:$0xf] }
 0x285   :  { %v810_v7 = vperm.slane %v2344_v34, 3  ;;  %v744_v0 = vperm.slane %v2342_v18, 1 }
 0x286   :  { %v2734_v13 = vmax.f32 %v633_v11, 0.0  ;;  %v2736_v14 = vmax.f32 %v634_v12, 0.0  ;;  %v2744_v17 = vmax.f32 %v632_v15, 0.0  ;;  %v2752_v60 = vmax.f32 %v631_v19, 0.0 }
 0x288   :  { %829 = vrot.lane.b32.xlu2 %v2736_v14, %s2458_s30  ;;  %797 = vrot.lane.b32.xlu0 %v2734_v13, %s2457_s29 }
 0x289   :  { %857 = vrot.lane.b32.xlu1 %v2734_v13, %s2459_s7 }
 0x290   :  { %767 = vrot.lane.b32.xlu0 %v2734_v13, %s2456_s28  ;;  %855 = vrot.lane.b32.xlu2 %v2744_v17, %s2459_s7 }
 0x291   :  { %859 = vrot.lane.b32.xlu1 %v2736_v14, %s2459_s7 }
 0x298   :  { %825 = vrot.lane.b32.xlu0 %v2744_v17, %s2458_s30  ;;  %793 = vrot.lane.b32.xlu2 %v2752_v60, %s2457_s29 }
 0x299   :  { %827 = vrot.lane.b32.xlu1 %v2734_v13, %s2458_s30 }
 0x2a0   :  { %731 = vrot.lane.b32.xlu0 %v2744_v17, %s2455_s27  ;;  %795 = vrot.lane.b32.xlu2 %v2744_v17, %s2457_s29 }
 0x2a1   :  { %853 = vrot.lane.b32.xlu1 %v2752_v60, %s2459_s7 }
 0x2a8   :  { %701 = vrot.lane.b32.xlu0 %v2744_v17, %s2453_s0  ;;  %765 = vrot.lane.b32.xlu2 %v2744_v17, %s2456_s28 }
 0x2a9   :  { %799 = vrot.lane.b32.xlu1 %v2736_v14, %s2457_s29 }
 0x2b0   :  { %671 = vrot.lane.b32.xlu0 %v2744_v17, %s2452_s25  ;;  %735 = vrot.lane.b32.xlu2 %v2736_v14, %s2455_s27 }
 0x2b1   :  { %823 = vrot.lane.b32.xlu1 %v2752_v60, %s2458_s30 }
 0x2b8   :  { %729 = vrot.lane.b32.xlu0 %v2752_v60, %s2455_s27  ;;  %705 = vrot.lane.b32.xlu2 %v2736_v14, %s2453_s0 }
 0x2b9   :  { %769 = vrot.lane.b32.xlu1 %v2736_v14, %s2456_s28 }
 0x2c0   :  { %675 = vrot.lane.b32.xlu0 %v2736_v14, %s2452_s25  ;;  %643 = vrot.lane.b32.xlu2 %v2734_v13, %s2454_s26 }
 0x2c1   :  { %763 = vrot.lane.b32.xlu1 %v2752_v60, %s2456_s28 }
 0x2c8   :  { %669 = vrot.lane.b32.xlu0 %v2752_v60, %s2452_s25  ;;  %645 = vrot.lane.b32.xlu2 %v2736_v14, %s2454_s26 }
 0x2c9   :  { %733 = vrot.lane.b32.xlu1 %v2734_v13, %s2455_s27 }
 0x2d1   :  { %703 = vrot.lane.b32.xlu1 %v2734_v13, %s2453_s0 }
 0x2d9   :  { %673 = vrot.lane.b32.xlu1 %v2734_v13, %s2452_s25 }
 0x2e1   :  { %641 = vrot.lane.b32.xlu1 %v2744_v17, %s2454_s26 }
 0x2e2   :  { %v2802_v20 = vpop.permute.xlu2 %829 }
 0x2e9   :  { %699 = vrot.lane.b32.xlu1 %v2752_v60, %s2453_s0 }
 0x2ea   :  { %v856_v21 = vpop.permute.xlu2 %855 }
 0x2f1   :  { %639 = vrot.lane.b32.xlu1 %v2752_v60, %s2454_s26 }
 0x2f2   :  { %v794_v23 = vpop.permute.xlu2 %793 }
 0x2fa   :  { %v798_v24 = vpop.permute.xlu0 %797  ;;  %v796_v27 = vpop.permute.xlu2 %795 }
 0x2fb   :  { %v858_v25 = vpop.permute.xlu1 %857  ;;  %v802_v46 = vsel %vm334_vm6, %v796_v27, %v798_v24  ;;  %v803_v10 = vsel %vm334_vm6, %v794_v23, %v796_v27 }
 0x2fc   :  { %v862_v26 = vsel %vm444_vm7, %v856_v21, %v858_v25  ;;  %v816_v51 = vmul.f32 %v808_v39, %v802_v46  ;;  %v815_v19 = vmul.f32 %v807_v6, %v803_v10  ;;  %v746_v39 = vperm.slane %v2342_v18, 3 }
 0x2fd   :  { %v876_v45 = vmul.f32 %v868_v9, %v862_v26 }
 0x2ff   :  { %958 = vmatpush.msra.mxu1 %v876_v45 }
 0x302   :  { %v2813_v22 = vpop.permute.xlu0 %767  ;;  %v2828_v40 = vpop.permute.xlu2 %765 }
 0x303   :  { %v860_v29 = vpop.permute.xlu1 %859  ;;  %v772_v31 = vsel %vm275_vm5, %v2828_v40, %v2813_v22 }
 0x304   :  { %v861_v30 = vsel %vm444_vm7, %v858_v25, %v860_v29  ;;  %v786_v52 = vmul.f32 %v778_v16, %v772_v31  ;;  %v2341_v16 = vld [vmem:[%s4176_s1 + $0x2] ss:$8 sm:$0xf] }
 0x305   :  { %v877_v32 = vmul.f32 %v869_v28, %v861_v30  ;;  %v777_v28 = vperm.slane %v2826_v37, 0 }
 0x307   :  { %981 = vmatpush.msra.mxu2 %v877_v32 }
 0x30a   :  { %v826_v38 = vpop.permute.xlu0 %825 }
 0x30b   :  { %v828_v41 = vpop.permute.xlu1 %827 }
 0x30c   :  { %v831_v47 = vsel %vm389_vm4, %v828_v41, %v2802_v20  ;;  %v832_v48 = vsel %vm389_vm4, %v826_v38, %v828_v41 }
 0x30d   :  { %v847_v49 = vmul.f32 %v839_v35, %v831_v47  ;;  %v846_v50 = vmul.f32 %v838_v36, %v832_v48 }
 0x30f   :  { %959 = vmatpush.msra.mxu1 %v846_v50  ;;  %982 = vmatpush.msra.mxu2 %v847_v49 }
 0x311   :  { %960 = vmatpush.msra.mxu1 %v816_v51 }
 0x312   :  { %v2842_v55 = vpop.permute.xlu0 %731 }
 0x313   :  { %v854_v44 = vpop.permute.xlu1 %853  ;;  %961 = vmatpush.msra.mxu1 %v786_v52 }
 0x314   :  { %v863_v56 = vsel %vm444_vm7, %v854_v44, %v856_v21  ;;  %v864_v57 = vsel %vm444_vm7, %v860_v29, %v854_v44  ;;  %v780_v29 = vperm.slane %v2826_v37, 3 }
 0x315   :  { %v875_v58 = vmul.f32 %v867_v53, %v863_v56  ;;  %v878_v59 = vmul.f32 %v870_v54, %v864_v57  ;;  %962 = vmatpush.msra.mxu1 %v2744_v17  ;;  %v651_v54 = vld [vmem:[%s4176_s1] ss:$8 sm:$0xf] }
 0x317   :  { %935 = vmatpush.msra.mxu0 %v875_v58  ;;  %1004 = vmatpush.msra.mxu3 %v878_v59  ;;  %v656_v58 = vperm.slane %v651_v54, 3 }
 0x31a   :  { %v2849_v62 = vpop.permute.xlu0 %701 }
 0x31b   :  { %v800_v63 = vpop.permute.xlu1 %799 }
 0x31c   :  { %v801_v1 = vsel %vm334_vm6, %v798_v24, %v800_v63  ;;  %v804_v11 = vsel %vm334_vm6, %v800_v63, %v794_v23  ;;  %v779_v23 = vperm.slane %v2826_v37, 2  ;;  %v736_v24 = vpop.permute.xlu2 %735 }
 0x31d   :  { %v817_v2 = vmul.f32 %v809_v61, %v801_v1  ;;  %v818_v21 = vmul.f32 %v810_v7, %v804_v11  ;;  %v655_v7 = vperm.slane %v651_v54, 2 }
 0x31f   :  { %983 = vmatpush.msra.mxu2 %v817_v2 }
 0x322   :  { %v2853_v5 = vpop.permute.xlu0 %671 }
 0x323   :  { %v824_v8 = vpop.permute.xlu1 %823 }
 0x324   :  { %v833_v12 = vsel %vm389_vm4, %v824_v8, %v826_v38  ;;  %v834_v43 = vsel %vm389_vm4, %v2802_v20, %v824_v8  ;;  %v2882_v34 = vpop.permute.xlu2 %705  ;;  %v883_v8 = vld [vmem:[%s4179_s3] sm:$0xff] }
 0x325   :  { %v845_v15 = vmul.f32 %v837_v3, %v833_v12  ;;  %v848_v17 = vmul.f32 %v840_v4, %v834_v43 }
 0x327   :  { %936 = vmatpush.msra.mxu0 %v845_v15  ;;  %1005 = vmatpush.msra.mxu3 %v848_v17  ;;  %v713_v15 = vperm.slane %v2341_v16, 0  ;;  %v714_v17 = vperm.slane %v2341_v16, 1 }
 0x329   :  { %937 = vmatpush.msra.mxu0 %v815_v19  ;;  %1006 = vmatpush.msra.mxu3 %v818_v21 }
 0x32a   :  { %v730_v9 = vpop.permute.xlu0 %729 }
 0x32b   :  { %v739_v20 = vsel %vm204_vm3, %v730_v9, %v2842_v55  ;;  %v770_v25 = vpop.permute.xlu1 %769  ;;  %v740_v38 = vsel %vm204_vm3, %v736_v24, %v730_v9 }
 0x32c   :  { %v752_v26 = vmul.f32 %v744_v0, %v739_v20  ;;  %v771_v45 = vsel %vm275_vm5, %v2813_v22, %v770_v25  ;;  %v743_v22 = vperm.slane %v2342_v18, 0  ;;  %v644_v49 = vpop.permute.xlu2 %643 }
 0x32d   :  { %v787_v27 = vmul.f32 %v779_v23, %v771_v45 }
 0x32e   :  { %963 = vmatpush.msra.mxu1 %v752_v26  ;;  %v751_v37 = vmul.f32 %v743_v22, %v740_v38 }
 0x32f   :  { %984 = vmatpush.msra.mxu2 %v787_v27 }
 0x331   :  { %985 = vmatpush.msra.mxu2 %v2734_v13  ;;  %v745_v13 = vperm.slane %v2342_v18, 2  ;;  %v884_v18 = vld [vmem:[%s4179_s3 + $0x8] sm:$0xff] }
 0x332   :  { %v676_v59 = vpop.permute.xlu0 %675 }
 0x333   :  { %v764_v30 = vpop.permute.xlu1 %763 }
 0x334   :  { %v773_v32 = vsel %vm275_vm5, %v764_v30, %v2828_v40  ;;  %v774_v33 = vsel %vm275_vm5, %v770_v25, %v764_v30  ;;  %v646_v44 = vpop.permute.xlu2 %645 }
 0x335   :  { %v785_v35 = vmul.f32 %v777_v28, %v773_v32  ;;  %v788_v36 = vmul.f32 %v780_v29, %v774_v33  ;;  %v647_v63 = vsel %vm48_vm2, %v644_v49, %v646_v44  ;;  %v654_v28 = vperm.slane %v651_v54, 1 }
 0x336   :  { %v664_v6 = vmul.f32 %v656_v58, %v647_v63 }
 0x337   :  { %938 = vmatpush.msra.mxu0 %v785_v35  ;;  %1007 = vmatpush.msra.mxu3 %v788_v36 }
 0x339   :  { %939 = vmatpush.msra.mxu0 %v2752_v60  ;;  %1008 = vmatpush.msra.mxu3 %v2736_v14  ;;  %v715_v60 = vperm.slane %v2341_v16, 2  ;;  %v716_v14 = vperm.slane %v2341_v16, 3 }
 0x33a   :  { %v670_v43 = vpop.permute.xlu0 %669 }
 0x33b   :  { %v734_v40 = vpop.permute.xlu1 %733  ;;  %940 = vmatpush.msra.mxu0 %v751_v37  ;;  %v679_v23 = vsel %vm90_vm0, %v670_v43, %v2853_v5  ;;  %v680_v9 = vsel %vm90_vm0, %v676_v59, %v670_v43 }
 0x33c   :  { %v737_v41 = vsel %vm204_vm3, %v734_v40, %v736_v24  ;;  %v738_v46 = vsel %vm204_vm3, %v2842_v55, %v734_v40  ;;  %v2340_v55 = vld [vmem:[%s4176_s1 + $0x1] ss:$8 sm:$0xf] }
 0x33d   :  { %v753_v47 = vmul.f32 %v745_v13, %v738_v46  ;;  %v754_v48 = vmul.f32 %v746_v39, %v737_v41  ;;  %v685_v56 = vperm.slane %v2340_v55, 2  ;;  %v686_v57 = vperm.slane %v2340_v55, 3 }
 0x33e   :  { %v683_v19 = vperm.slane %v2340_v55, 0  ;;  %v684_v21 = vperm.slane %v2340_v55, 1 }
 0x33f   :  { %986 = vmatpush.msra.mxu2 %v753_v47  ;;  %1009 = vmatpush.msra.mxu3 %v754_v48 }
 0x340   :  { %v691_v45 = vmul.f32 %v683_v19, %v680_v9  ;;  %v692_v27 = vmul.f32 %v684_v21, %v679_v23  ;;  %v1020_v9 = vld [vmem:[%s4178_s5 + $0x40] sm:$0xff] }
 0x343   :  { %v704_v50 = vpop.permute.xlu1 %703 }
 0x344   :  { %v707_v31 = vsel %vm145_vm1, %v704_v50, %v2882_v34  ;;  %v708_v51 = vsel %vm145_vm1, %v2849_v62, %v704_v50 }
 0x345   :  { %v723_v52 = vmul.f32 %v715_v60, %v708_v51  ;;  %v724_v53 = vmul.f32 %v716_v14, %v707_v31 }
 0x347   :  { %987 = vmatpush.msra.mxu2 %v723_v52  ;;  %1010 = vmatpush.msra.mxu3 %v724_v53 }
 0x34b   :  { %v674_v61 = vpop.permute.xlu1 %673 }
 0x34c   :  { %v677_v1 = vsel %vm90_vm0, %v674_v61, %v676_v59  ;;  %v678_v2 = vsel %vm90_vm0, %v2853_v5, %v674_v61  ;;  %v653_v5 = vperm.slane %v651_v54, 0 }
 0x34d   :  { %v693_v3 = vmul.f32 %v685_v56, %v678_v2  ;;  %v694_v4 = vmul.f32 %v686_v57, %v677_v1 }
 0x34f   :  { %988 = vmatpush.msra.mxu2 %v693_v3  ;;  %1011 = vmatpush.msra.mxu3 %v694_v4 }
 0x351   :  { %1012 = vmatpush.msra.mxu3 %v664_v6 }
 0x352   :  { %2353 = vmatmul.msk.f32.vlgmr.msra.gmra.mxu3 %vm921_vm13, %v883_v8 }
 0x353   :  { %v642_v10 = vpop.permute.xlu1 %641 }
 0x354   :  { %v648_v11 = vsel %vm48_vm2, %v642_v10, %v644_v49 }
 0x355   :  { %v663_v12 = vmul.f32 %v655_v7, %v648_v11 }
 0x357   :  { %989 = vmatpush.msra.mxu2 %v663_v12 }
 0x358   :  { %2351 = vmatmul.msk.f32.vlgmr.msra.gmra.mxu2 %vm921_vm13, %v883_v8 }
 0x35a   :  { %2354 = vmatmul.msk.f32.gmra.mxu3 %vm921_vm13, %v884_v18 }
 0x35b   :  { %v700_v0 = vpop.permute.xlu1 %699 }
 0x35c   :  { %v709_v24 = vsel %vm145_vm1, %v700_v0, %v2849_v62  ;;  %v710_v20 = vsel %vm145_vm1, %v2882_v34, %v700_v0 }
 0x35d   :  { %v721_v25 = vmul.f32 %v713_v15, %v710_v20  ;;  %v722_v26 = vmul.f32 %v714_v17, %v709_v24 }
 0x35f   :  { %941 = vmatpush.msra.mxu0 %v721_v25  ;;  %964 = vmatpush.msra.mxu1 %v722_v26 }
 0x360   :  { %2352 = vmatmul.msk.f32.gmra.mxu2 %vm921_vm13, %v884_v18 }
 0x361   :  { %942 = vmatpush.msra.mxu0 %v691_v45  ;;  %965 = vmatpush.msra.mxu1 %v692_v27 }
 0x363   :  { %v640_v29 = vpop.permute.xlu1 %639 }
 0x364   :  { %v649_v62 = vsel %vm48_vm2, %v640_v29, %v642_v10  ;;  %v650_v30 = vsel %vm48_vm2, %v646_v44, %v640_v29 }
 0x365   :  { %v661_v32 = vmul.f32 %v653_v5, %v650_v30  ;;  %v662_v33 = vmul.f32 %v654_v28, %v649_v62  ;;  %v1022_v5 = vld [vmem:[%s4178_s5 + $0x60] sm:$0xff] }
 0x367   :  { %943 = vmatpush.msra.mxu0 %v661_v32  ;;  %966 = vmatpush.msra.mxu1 %v662_v33  ;;  %v1021_v32 = vld [vmem:[%s4178_s5 + $0x48] sm:$0xff] }
 0x368   :  { %2347 = vmatmul.msk.f32.vlgmr.msra.gmra.mxu0 %vm921_vm13, %v883_v8  ;;  %2349 = vmatmul.msk.f32.vlgmr.msra.gmra.mxu1 %vm921_vm13, %v883_v8 }
 0x370   :  { %2348 = vmatmul.msk.f32.gmra.mxu0 %vm921_vm13, %v884_v18  ;;  %2350 = vmatmul.msk.f32.gmra.mxu1 %vm921_vm13, %v884_v18 }
 0x3d5   :  { %v2948_v22 = vpop.f32.mrf.mxu3 }
 0x3d6   :  { %v1039_v41 = vmul.f32 %v2948_v22, %v2948_v22 }
 0x3db   :  { %v2946_v34 = vpop.f32.mrf.mxu2 }
 0x3dc   :  { %v1038_v39 = vmul.f32 %v2946_v34, %v2946_v34 }
 0x3dd   :  { %v2968_v60 = vpop.f32.mrf.mxu3 }
 0x3de   :  { %v1043_v55 = vmul.f32 %v2968_v60, %v2968_v60 }
 0x3e3   :  { %v2966_v16 = vpop.f32.mrf.mxu2 }
 0x3e4   :  { %v1042_v53 = vmul.f32 %v2966_v16, %v2966_v16 }
 0x3e5   :  { %v2950_v35 = vpop.f32.mrf.mxu0  ;;  %v2952_v36 = vpop.f32.mrf.mxu1 }
 0x3e6   :  { %v1036_v38 = vmul.f32 %v2950_v35, %v2950_v35  ;;  %v1024_v37 = vadd.f32 %v2952_v36, %v2950_v35  ;;  %v1037_v13 = vmul.f32 %v2952_v36, %v2952_v36 }
 0x3e8   :  { %v1025_v40 = vadd.f32 %v1024_v37, %v2946_v34  ;;  %v1044_v46 = vadd.f32 %v1037_v13, %v1036_v38  ;;  %v1023_v13 = vld [vmem:[%s4178_s5 + $0x68] sm:$0xff] }
 0x3ea   :  { %v1026_v47 = vadd.f32 %v1025_v40, %v2948_v22  ;;  %v1045_v48 = vadd.f32 %v1044_v46, %v1038_v39 }
 0x3ec   :  { %1027 = vadd.xlane.f32.xlu0 %v1026_v47  ;;  %v1046_v49 = vadd.f32 %v1045_v48, %v1039_v41 }
 0x3ed   :  { %v2970_v14 = vpop.f32.mrf.mxu0  ;;  %v2972_v50 = vpop.f32.mrf.mxu1 }
 0x3ee   :  { %1047 = vadd.xlane.f32.xlu2 %v1046_v49  ;;  %v1040_v31 = vmul.f32 %v2970_v14, %v2970_v14  ;;  %v1029_v51 = vadd.f32 %v2972_v50, %v2970_v14  ;;  %v1041_v52 = vmul.f32 %v2972_v50, %v2972_v50 }
 0x3f0   :  { %v1030_v54 = vadd.f32 %v1029_v51, %v2966_v16  ;;  %v1049_v44 = vadd.f32 %v1041_v52, %v1040_v31 }
 0x3f2   :  { %v1031_v56 = vadd.f32 %v1030_v54, %v2968_v60  ;;  %v1050_v57 = vadd.f32 %v1049_v44, %v1042_v53 }
 0x3f4   :  { %v1051_v58 = vadd.f32 %v1050_v57, %v1043_v55 }
 0x3f6   :  { %1032 = vadd.xlane.f32.xlu2 %v1031_v56  ;;  %1052 = vadd.xlane.f32.xlu1 %v1051_v58 }
 0x45f   :  { %v1028_v59 = vpop.xlane.xlu0 %1027 }
 0x460   :  { %v1034_v61 = vmul.f32 0.001953125, %v1028_v59 }
 0x461   :  { %v1048_v63 = vpop.xlane.xlu2 %1047 }
 0x462   :  { %v1056_v1 = vmul.f32 %v1034_v61, %v1034_v61  ;;  %v1054_v2 = vmul.f32 0.001953125, %v1048_v63 }
 0x464   :  { %v1058_v3 = vsub.f32 %v1054_v2, %v1056_v1 }
 0x466   :  { %v1060_v4 = vmax.f32 %v1058_v3, 0.0 }
 0x468   :  { %v1062_v6 = vadd.f32 1e-05, %v1060_v4 }
 0x469   :  { %v1033_v7 = vpop.xlane.xlu2 %1032  ;;  %v1053_v8 = vpop.xlane.xlu1 %1052 }
 0x46a   :  { %2400 = vrsqrt.f32 %v1062_v6  ;;  %v1035_v10 = vmul.f32 0.001953125, %v1033_v7  ;;  %v1055_v11 = vmul.f32 0.001953125, %v1053_v8  ;;  %vm1070_vm15 = vweird.f32 %v1062_v6  ;;  %v3115_v7 = vld [vmem:[%s4176_s1 + $0x7] ss:$8 sm:$0xf] }
 0x46b   :  { %v1469_v8 = vperm.slane %v3115_v7, 1 }
 0x46c   :  { %v1057_v12 = vmul.f32 %v1035_v10, %v1035_v10 }
 0x46e   :  { %v1059_v43 = vsub.f32 %v1055_v11, %v1057_v12 }
 0x470   :  { %v2401_v15 = vpop.eup %2400  ;;  %v1061_v17 = vmax.f32 %v1059_v43, 0.0 }
 0x471   :  { %v1065_v18 = vmul.f32 %v2401_v15, %v1062_v6  ;;  %vm1071_vm14 = vweird.f32 %v2401_v15 }
 0x472   :  { %v1063_v19 = vadd.f32 1e-05, %v1061_v17  ;;  %vm1072_vm8 = vmor %vm1070_vm15, %vm1071_vm14  ;;  %v3138_v17 = vld [vmem:[%s4176_s1 + $0x6] ss:$8 sm:$0xf] }
 0x473   :  { %v1066_v21 = vmul.f32 %v2401_v15, %v1065_v18  ;;  %v1419_v18 = vperm.slane %v3138_v17, 1 }
 0x474   :  { %2402 = vrsqrt.f32 %v1063_v19  ;;  %vm1080_vm9 = vweird.f32 %v1063_v19 }
 0x475   :  { %v1067_v0 = vmul.f32 0.5, %v1066_v21 }
 0x477   :  { %v1068_v23 = vsub.f32 1.5, %v1067_v0 }
 0x479   :  { %v1069_v24 = vmul.f32 %v2401_v15, %v1068_v23 }
 0x47a   :  { %v2403_v20 = vpop.eup %2402 }
 0x47b   :  { %v1075_v25 = vmul.f32 %v2403_v20, %v1063_v19  ;;  %v1073_v26 = vsel %vm1072_vm8, %v2401_v15, %v1069_v24  ;;  %vm1081_vm10 = vweird.f32 %v2403_v20  ;;  %v4191_v19 = vperm.slane %v3115_v7, 0 }
 0x47c   :  { %v1084_v45 = vmul.f32 %v1073_v26, %v1020_v9  ;;  %vm1082_vm11 = vmor %vm1080_vm9, %vm1081_vm10  ;;  %v3169_v26 = vld [vmem:[%s4176_s1 + $0x5] ss:$8 sm:$0xf] }
 0x47d   :  { %v1076_v27 = vmul.f32 %v2403_v20, %v1075_v25 }
 0x47e   :  { %1092 = vperm.xlu1 %2395, %v1084_v45   ;;  %v1086_v28 = vmul.f32 %v1084_v45, %v1034_v61  ;;  %v4192_v45 = vperm.slane %v3169_v26, 0 }
 0x47f   :  { %v1077_v29 = vmul.f32 0.5, %v1076_v27  ;;  %v1369_v27 = vperm.slane %v3169_v26, 1 }
 0x480   :  { %v1088_v62 = vsub.f32 %v1022_v5, %v1086_v28 }
 0x481   :  { %v1078_v30 = vsub.f32 1.5, %v1077_v29 }
 0x482   :  { %1110 = vperm.xlu2 %2396, %v1088_v62  }
 0x483   :  { %v1079_v33 = vmul.f32 %v2403_v20, %v1078_v30 }
 0x485   :  { %v1083_v38 = vsel %vm1082_vm11, %v2403_v20, %v1079_v33 }
 0x486   :  { %v1085_v37 = vmul.f32 %v1083_v38, %v1021_v32  ;;  %v3198_v38 = vld [vmem:[%s4176_s1 + $0x3] ss:$8 sm:$0xf] }
 0x488   :  { %1097 = vperm.xlu0 %2397, %v1085_v37   ;;  %v1087_v39 = vmul.f32 %v1085_v37, %v1035_v10  ;;  %v4190_v37 = vperm.slane %v3138_v17, 0 }
 0x48a   :  { %v1089_v40 = vsub.f32 %v1023_v13, %v1087_v39  ;;  %v4185_v13 = vperm.slane %v3198_v38, 0 }
 0x48c   :  { %1115 = vperm.xlu2 %2396, %v1089_v40  }
 0x4dc   :  { %v1111_v31 = vpop.permute.xlu2 %1110 }
 0x4e6   :  { %v1116_v59 = vpop.permute.xlu2 %1115 }
 0x4f0   :  { %v1093_v41 = vpop.permute.xlu1 %1092 }
 0x4f1   :  { %v1100_v46 = vmul.f32 %v1093_v41, %v2950_v35  ;;  %v1101_v47 = vmul.f32 %v1093_v41, %v2952_v36  ;;  %v1102_v48 = vmul.f32 %v1093_v41, %v2946_v34  ;;  %v1103_v49 = vmul.f32 %v1093_v41, %v2948_v22 }
 0x4f3   :  { %v1118_v51 = vadd.f32 %v1111_v31, %v1100_v46  ;;  %v1119_v52 = vadd.f32 %v1111_v31, %v1101_v47  ;;  %v1120_v53 = vadd.f32 %v1111_v31, %v1102_v48  ;;  %v1121_v54 = vadd.f32 %v1111_v31, %v1103_v49 }
 0x4f4   :  { %v4189_v31 = vperm.slane %v3198_v38, 1 }
 0x4f5   :  { %v3002_v55 = vmax.f32 %v1118_v51, 0.0  ;;  %v3004_v44 = vmax.f32 %v1119_v52, 0.0  ;;  %v3006_v56 = vmax.f32 %v1120_v53, 0.0  ;;  %v3008_v57 = vmax.f32 %v1121_v54, 0.0 }
 0x4f7   :  { %1400 = vrot.lane.b32.xlu2 %v3006_v56, %s2457_s29  ;;  %1450 = vrot.lane.b32.xlu0 %v3006_v56, %s2458_s30 }
 0x4f8   :  { %1446 = vrot.lane.b32.xlu1 %v3004_v44, %s2458_s30 }
 0x4fa   :  { %v1098_v34 = vpop.permute.xlu0 %1097 }
 0x4fb   :  { %v1104_v22 = vmul.f32 %v1098_v34, %v2970_v14  ;;  %v1105_v35 = vmul.f32 %v1098_v34, %v2972_v50  ;;  %v1106_v36 = vmul.f32 %v1098_v34, %v2966_v16  ;;  %v1107_v58 = vmul.f32 %v1098_v34, %v2968_v60 }
 0x4fd   :  { %v1122_v61 = vadd.f32 %v1116_v59, %v1104_v22  ;;  %v1123_v63 = vadd.f32 %v1116_v59, %v1105_v35  ;;  %v1124_v1 = vadd.f32 %v1116_v59, %v1106_v36  ;;  %v1125_v2 = vadd.f32 %v1116_v59, %v1107_v58  ;;  %v3247_v22 = vld [vmem:[%s4176_s1 + $0x2] ss:$8 sm:$0xf]  ;;  %v3252_v35 = vld [vmem:[%s4176_s1] ss:$8 sm:$0xf] }
 0x4fe   :  { %v3257_v36 = vld [vmem:[%s4176_s1 + $0x20] ss:$8 sm:$0xf]  ;;  %v4184_v58 = vperm.slane %v3247_v22, 0  ;;  %v4186_v59 = vperm.slane %v3247_v22, 1 }
 0x4ff   :  { %v3020_v3 = vmax.f32 %v1122_v61, 0.0  ;;  %v3022_v4 = vmax.f32 %v1123_v63, 0.0  ;;  %v3024_v6 = vmax.f32 %v1124_v1, 0.0  ;;  %1350 = vrot.lane.b32.xlu2 %v3006_v56, %s2456_s28  ;;  %1396 = vrot.lane.b32.xlu0 %v3004_v44, %s2457_s29  ;;  %v3030_v16 = vmax.f32 %v1125_v2, 0.0 }
 0x500   :  { %1442 = vrot.lane.b32.xlu1 %v3002_v55, %s2458_s30  ;;  %v4183_v61 = vperm.slane %v3252_v35, 1  ;;  %v4182_v63 = vperm.slane %v3257_v36, 0 }
 0x507   :  { %1346 = vrot.lane.b32.xlu0 %v3004_v44, %s2456_s28  ;;  %1342 = vrot.lane.b32.xlu2 %v3002_v55, %s2456_s28 }
 0x508   :  { %1284 = vrot.lane.b32.xlu1 %v3002_v55, %s2455_s27 }
 0x50f   :  { %1238 = vrot.lane.b32.xlu2 %v3004_v44, %s2453_s0  ;;  %1392 = vrot.lane.b32.xlu0 %v3002_v55, %s2457_s29 }
 0x510   :  { %1296 = vrot.lane.b32.xlu1 %v3008_v57, %s2455_s27 }
 0x517   :  { %1188 = vrot.lane.b32.xlu2 %v3004_v44, %s2452_s25  ;;  %1288 = vrot.lane.b32.xlu0 %v3004_v44, %s2455_s27 }
 0x518   :  { %1496 = vrot.lane.b32.xlu1 %v3004_v44, %s2459_s7 }
 0x51f   :  { %1246 = vrot.lane.b32.xlu2 %v3008_v57, %s2453_s0  ;;  %1234 = vrot.lane.b32.xlu0 %v3002_v55, %s2453_s0 }
 0x520   :  { %1138 = vrot.lane.b32.xlu1 %v3004_v44, %s2454_s26 }
 0x527   :  { %1134 = vrot.lane.b32.xlu2 %v3002_v55, %s2454_s26  ;;  %1184 = vrot.lane.b32.xlu0 %v3002_v55, %s2452_s25 }
 0x528   :  { %1146 = vrot.lane.b32.xlu1 %v3008_v57, %s2454_s26 }
 0x52f   :  { %1196 = vrot.lane.b32.xlu2 %v3008_v57, %s2452_s25  ;;  %1500 = vrot.lane.b32.xlu0 %v3006_v56, %s2459_s7 }
 0x530   :  { %1448 = vrot.lane.b32.xlu1 %v3022_v4, %s2458_s30 }
 0x537   :  { %1492 = vrot.lane.b32.xlu2 %v3002_v55, %s2459_s7  ;;  %1348 = vrot.lane.b32.xlu0 %v3022_v4, %s2456_s28 }
 0x538   :  { %1402 = vrot.lane.b32.xlu1 %v3024_v6, %s2457_s29 }
 0x53f   :  { %1452 = vrot.lane.b32.xlu2 %v3024_v6, %s2458_s30  ;;  %1290 = vrot.lane.b32.xlu0 %v3022_v4, %s2455_s27 }
 0x540   :  { %1444 = vrot.lane.b32.xlu1 %v3020_v3, %s2458_s30 }
 0x547   :  { %1398 = vrot.lane.b32.xlu2 %v3022_v4, %s2457_s29  ;;  %1186 = vrot.lane.b32.xlu0 %v3020_v3, %s2452_s25 }
 0x548   :  { %1394 = vrot.lane.b32.xlu1 %v3020_v3, %s2457_s29 }
 0x54f   :  { %1352 = vrot.lane.b32.xlu2 %v3024_v6, %s2456_s28  ;;  %1498 = vrot.lane.b32.xlu0 %v3022_v4, %s2459_s7 }
 0x550   :  { %1286 = vrot.lane.b32.xlu1 %v3020_v3, %s2455_s27 }
 0x551   :  { %v3094_v60 = vpop.permute.xlu2 %1400 }
 0x557   :  { %1404 = vrot.lane.b32.xlu0 %v3008_v57, %s2457_s29  ;;  %1344 = vrot.lane.b32.xlu2 %v3020_v3, %s2456_s28 }
 0x558   :  { %1240 = vrot.lane.b32.xlu1 %v3022_v4, %s2453_s0 }
 0x559   :  { %v3102_v14 = vpop.permute.xlu2 %1350 }
 0x55f   :  { %1140 = vrot.lane.b32.xlu0 %v3022_v4, %s2454_s26  ;;  %1236 = vrot.lane.b32.xlu2 %v3020_v3, %s2453_s0 }
 0x560   :  { %1298 = vrot.lane.b32.xlu1 %v3030_v16, %s2455_s27 }
 0x561   :  { %v3110_v50 = vpop.permute.xlu2 %1342 }
 0x567   :  { %1198 = vrot.lane.b32.xlu0 %v3030_v16, %s2452_s25  ;;  %1190 = vrot.lane.b32.xlu2 %v3022_v4, %s2452_s25 }
 0x568   :  { %1248 = vrot.lane.b32.xlu1 %v3030_v16, %s2453_s0 }
 0x569   :  { %v3124_v10 = vpop.permute.xlu0 %1450  ;;  %v3126_v11 = vpop.permute.xlu2 %1238 }
 0x56a   :  { %v1447_v12 = vpop.permute.xlu1 %1446 }
 0x56b   :  { %v1460_v43 = vsel %vm389_vm4, %v1447_v12, %v3124_v10 }
 0x56c   :  { %v3133_v15 = vmul.f32 %v1469_v8, %v1460_v43 }
 0x56f   :  { %1148 = vrot.lane.b32.xlu0 %v3030_v16, %s2454_s26  ;;  %1502 = vrot.lane.b32.xlu2 %v3024_v6, %s2459_s7 }
 0x570   :  { %1354 = vrot.lane.b32.xlu1 %v3008_v57, %s2456_s28 }
 0x571   :  { %v1397_v21 = vpop.permute.xlu0 %1396  ;;  %v3148_v0 = vpop.permute.xlu2 %1188 }
 0x572   :  { %v1410_v23 = vsel %vm334_vm6, %v1397_v21, %v3094_v60  ;;  %v3153_v9 = vpop.permute.xlu1 %1442 }
 0x573   :  { %v3157_v24 = vmul.f32 %v1419_v18, %v1410_v23  ;;  %v1462_v20 = vsel %vm389_vm4, %v3153_v9, %v1447_v12 }
 0x574   :  { %v3164_v25 = vmul.f32 %v4191_v19, %v1462_v20 }
 0x577   :  { %1456 = vrot.lane.b32.xlu0 %v3030_v16, %s2458_s30  ;;  %1454 = vrot.lane.b32.xlu2 %v3008_v57, %s2458_s30 }
 0x578   :  { %1136 = vrot.lane.b32.xlu1 %v3020_v3, %s2454_s26 }
 0x579   :  { %v1347_v5 = vpop.permute.xlu0 %1346  ;;  %v3179_v28 = vpop.permute.xlu2 %1246 }
 0x57a   :  { %v1360_v29 = vsel %vm275_vm5, %v1347_v5, %v3102_v14  ;;  %v1362_v62 = vsel %vm275_vm5, %v3110_v50, %v1347_v5  ;;  %v1285_v30 = vpop.permute.xlu1 %1284 }
 0x57b   :  { %v3189_v32 = vmul.f32 %v4192_v45, %v1362_v62  ;;  %v3193_v33 = vmul.f32 %v1369_v27, %v1360_v29 }
 0x57f   :  { %1242 = vrot.lane.b32.xlu0 %v3006_v56, %s2453_s0  ;;  %1356 = vrot.lane.b32.xlu2 %v3030_v16, %s2456_s28 }
 0x580   :  { %1494 = vrot.lane.b32.xlu1 %v3020_v3, %s2459_s7 }
 0x581   :  { %v3208_v39 = vpop.permute.xlu0 %1392  ;;  %v1135_v40 = vpop.permute.xlu2 %1134 }
 0x582   :  { %v1412_v41 = vsel %vm334_vm6, %v3208_v39, %v1397_v21  ;;  %v3213_v46 = vpop.permute.xlu1 %1296 }
 0x583   :  { %v3217_v47 = vmul.f32 %v4190_v37, %v1412_v41  ;;  %v1306_v48 = vsel %vm204_vm3, %v3213_v46, %v1285_v30  ;;  %v3304_v41 = vld [vmem:[%s4176_s1 + $0x1] ss:$8 sm:$0xf] }
 0x584   :  { %v3224_v49 = vmul.f32 %v4185_v13, %v1306_v48  ;;  %v4188_v48 = vperm.slane %v3304_v41, 0 }
 0x587   :  { %1294 = vrot.lane.b32.xlu0 %v3024_v6, %s2455_s27  ;;  %1292 = vrot.lane.b32.xlu2 %v3006_v56, %s2455_s27 }
 0x588   :  { %1406 = vrot.lane.b32.xlu1 %v3030_v16, %s2457_s29 }
 0x589   :  { %v3233_v51 = vpop.permute.xlu0 %1288  ;;  %v3235_v52 = vpop.permute.xlu2 %1196 }
 0x58a   :  { %v1304_v53 = vsel %vm204_vm3, %v1285_v30, %v3233_v51  ;;  %v1497_v54 = vpop.permute.xlu1 %1496 }
 0x58b   :  { %v3242_v34 = vmul.f32 %v4189_v31, %v1304_v53  ;;  %v1211_v53 = vperm.slane %v3304_v41, 1 }
 0x58f   :  { %1504 = vrot.lane.b32.xlu0 %v3008_v57, %s2459_s7  ;;  %1506 = vrot.lane.b32.xlu2 %v3030_v16, %s2459_s7 }
 0x590   :  { %1244 = vrot.lane.b32.xlu1 %v3024_v6, %s2453_s0 }
 0x591   :  { %v1235_v1 = vpop.permute.xlu0 %1234  ;;  %v3269_v2 = vpop.permute.xlu2 %1492 }
 0x592   :  { %v1254_v12 = vsel %vm145_vm1, %v1235_v1, %v3126_v11  ;;  %v1256_v43 = vsel %vm145_vm1, %v3179_v28, %v1235_v1  ;;  %v3277_v21 = vpop.permute.xlu1 %1138  ;;  %v1512_v23 = vsel %vm444_vm7, %v3269_v2, %v1497_v54  ;;  %v4187_v1 = vperm.slane %v3252_v35, 0 }
 0x593   :  { %4197 = vst [vmem:[#allocation3_spill] sm:$0xff] %v3277_v21  ;;  %v3284_v20 = vmul.f32 %v4184_v58, %v1256_v43  ;;  %v3288_v5 = vmul.f32 %v4186_v59, %v1254_v12  ;;  %v1154_v29 = vsel %vm48_vm2, %v1135_v40, %v3277_v21  ;;  %v3299_v30 = vmul.f32 %v4182_v63, %v1512_v23 }
 0x594   :  { %v3295_v62 = vmul.f32 %v4183_v61, %v1154_v29 }
 0x596   :  { %1177 = vst [vmem:[#allocation2 + $0x8] sm:$0xff] %v3295_v62 }
 0x597   :  { %1142 = vrot.lane.b32.xlu0 %v3006_v56, %s2454_s26  ;;  %1192 = vrot.lane.b32.xlu2 %v3006_v56, %s2452_s25 }
 0x598   :  { %1194 = vrot.lane.b32.xlu1 %v3024_v6, %s2452_s25 }
 0x599   :  { %v1185_v12 = vpop.permute.xlu0 %1184  ;;  %v3316_v43 = vpop.permute.xlu2 %1452 }
 0x59a   :  { %v1204_v23 = vsel %vm90_vm0, %v1185_v12, %v3148_v0  ;;  %v1206_v29 = vsel %vm90_vm0, %v3235_v52, %v1185_v12  ;;  %v3324_v63 = vpop.permute.xlu1 %1146  ;;  %v4193_v12 = vperm.slane %v3257_v36, 1 }
 0x59b   :  { %v3328_v61 = vmul.f32 %v4188_v48, %v1206_v29  ;;  %v3330_v58 = vmul.f32 %v1211_v53, %v1204_v23  ;;  %v1156_v13 = vsel %vm48_vm2, %v3324_v63, %v1135_v40 }
 0x59c   :  { %v3337_v59 = vmul.f32 %v4187_v1, %v1156_v13 }
 0x59d   :  { %1226 = vst [vmem:[#allocation2 + $0xd8] sm:$0xff] %v3328_v61 }
 0x59e   :  { %1227 = vst [vmem:[#allocation2 + $0x18] sm:$0xff] %v3330_v58 }
 0x59f   :  { %1176 = vst [vmem:[#allocation2 + $0xc8] sm:$0xff] %v3337_v59 }
 0x5a0   :  { %1144 = vrot.lane.b32.xlu1 %v3024_v6, %s2454_s26 }
 0x5a1   :  { %v3345_v23 = vpop.permute.xlu0 %1500  ;;  %v1399_v29 = vpop.permute.xlu2 %1398 }
 0x5a2   :  { %v1510_v40 = vsel %vm444_vm7, %v1497_v54, %v3345_v23  ;;  %v1449_v13 = vpop.permute.xlu1 %1448 }
 0x5a3   :  { %v3352_v1 = vmul.f32 %v4193_v12, %v1510_v40  ;;  %v1461_v48 = vsel %vm389_vm4, %v1449_v13, %v3316_v43 }
 0x5a4   :  { %v1481_v31 = vmul.f32 %v1469_v8, %v1461_v48 }
 0x5a6   :  { %1693 = vmatpush.msrb.mxu2 %v1481_v31 }
 0x5a8   :  { %1694 = vmatpush.msrb.mxu2 %v3133_v15 }
 0x5a9   :  { %v1349_v37 = vpop.permute.xlu0 %1348  ;;  %v3360_v19 = vpop.permute.xlu2 %1352 }
 0x5aa   :  { %v3362_v45 = vpop.permute.xlu1 %1402  ;;  %v1361_v54 = vsel %vm275_vm5, %v1349_v37, %v3360_v19 }
 0x5ab   :  { %v1411_v40 = vsel %vm334_vm6, %v1399_v29, %v3362_v45  ;;  %v1381_v12 = vmul.f32 %v1369_v27, %v1361_v54 }
 0x5ac   :  { %v1431_v8 = vmul.f32 %v1419_v18, %v1411_v40  ;;  %v4198_v18 = vperm.slane %v3169_v26, 0 }
 0x5ae   :  { %1695 = vmatpush.msrb.mxu2 %v1431_v8 }
 0x5b0   :  { %1696 = vmatpush.msrb.mxu2 %v3157_v24  ;;  %v4199_v24 = vperm.slane %v3115_v7, 0 }
 0x5b1   :  { %v3375_v15 = vpop.permute.xlu0 %1290  ;;  %v3377_v31 = vpop.permute.xlu2 %1344 }
 0x5b2   :  { %v3379_v48 = vpop.permute.xlu1 %1444  ;;  %v1363_v21 = vsel %vm275_vm5, %v3377_v31, %v1349_v37  ;;  %1697 = vmatpush.msrb.mxu2 %v1381_v12 }
 0x5b3   :  { %v1463_v27 = vsel %vm389_vm4, %v3379_v48, %v1449_v13  ;;  %v1380_v54 = vmul.f32 %v4198_v18, %v1363_v21  ;;  %v4200_v13 = vperm.slane %v3138_v17, 0 }
 0x5b4   :  { %v1480_v40 = vmul.f32 %v4199_v24, %v1463_v27  ;;  %1698 = vmatpush.msrb.mxu2 %v3193_v33  ;;  %v4201_v24 = vperm.slane %v3198_v38, 1 }
 0x5b6   :  { %1635 = vmatpush.msrb.mxu0 %v1480_v40  ;;  %1699 = vmatpush.msrb.mxu2 %v3022_v4 }
 0x5b8   :  { %1636 = vmatpush.msrb.mxu0 %v3164_v25  ;;  %1700 = vmatpush.msrb.mxu2 %v3004_v44 }
 0x5b9   :  { %v1187_v37 = vpop.permute.xlu0 %1186  ;;  %v3395_v12 = vpop.permute.xlu2 %1236 }
 0x5ba   :  { %v3397_v8 = vpop.permute.xlu1 %1394 }
 0x5bb   :  { %v1413_v21 = vsel %vm334_vm6, %v3397_v8, %v1399_v29 }
 0x5bc   :  { %v1430_v27 = vmul.f32 %v4200_v13, %v1413_v21  ;;  %v4195_v21 = vperm.slane %v3138_v17, 3 }
 0x5be   :  { %1637 = vmatpush.msrb.mxu0 %v1430_v27 }
 0x5c0   :  { %1638 = vmatpush.msrb.mxu0 %v3217_v47  ;;  %v4196_v47 = vperm.slane %v3138_v17, 2 }
 0x5c1   :  { %v3405_v4 = vpop.permute.xlu0 %1498  ;;  %v3407_v25 = vpop.permute.xlu2 %1190 }
 0x5c2   :  { %v1287_v44 = vpop.permute.xlu1 %1286  ;;  %v1205_v33 = vsel %vm90_vm0, %v1187_v37, %v3407_v25  ;;  %1639 = vmatpush.msrb.mxu0 %v1380_v54 }
 0x5c3   :  { %v1305_v29 = vsel %vm204_vm3, %v1287_v44, %v3375_v15  ;;  %v1223_v18 = vmul.f32 %v1211_v53, %v1205_v33 }
 0x5c4   :  { %v1323_v40 = vmul.f32 %v4201_v24, %v1305_v29  ;;  %1640 = vmatpush.msrb.mxu0 %v3189_v32  ;;  %v4203_v29 = vperm.slane %v3247_v22, 1 }
 0x5c5   :  { %1231 = vst [vmem:[#allocation2 + $0x110] sm:$0xff] %v1223_v18 }
 0x5c6   :  { %1641 = vmatpush.msrb.mxu0 %v3020_v3  ;;  %1701 = vmatpush.msrb.mxu2 %v1323_v40  ;;  %v1470_v40 = vperm.slane %v3115_v7, 2 }
 0x5c8   :  { %1642 = vmatpush.msrb.mxu0 %v3002_v55  ;;  %1702 = vmatpush.msrb.mxu2 %v3242_v34 }
 0x5c9   :  { %v1405_v54 = vpop.permute.xlu0 %1404  ;;  %v3423_v13 = vpop.permute.xlu2 %1502 }
 0x5ca   :  { %v1408_v53 = vsel %vm334_vm6, %v3094_v60, %v1405_v54  ;;  %v1414_v3 = vsel %vm334_vm6, %v1405_v54, %v3208_v39  ;;  %v3431_v32 = vpop.permute.xlu1 %1240  ;;  %v1511_v55 = vsel %vm444_vm7, %v3405_v4, %v3423_v13  ;;  %v4202_v39 = vperm.slane %v3257_v36, 1 }
 0x5cb   :  { %v3439_v34 = vmul.f32 %v4196_v47, %v1408_v53  ;;  %v3443_v27 = vmul.f32 %v4195_v21, %v1414_v3  ;;  %v1255_v60 = vsel %vm145_vm1, %v3395_v12, %v3431_v32  ;;  %v1471_v54 = vperm.slane %v3115_v7, 3  ;;  %v3589_v7 = vld [vmem:[%s4180_s4] sm:$0xff] }
 0x5cc   :  { %v1531_v33 = vmul.f32 %v4202_v39, %v1511_v55  ;;  %v1273_v24 = vmul.f32 %v4203_v29, %v1255_v60 }
 0x5ce   :  { %1736 = vmatpush.msrb.mxu3 %v1531_v33  ;;  %1703 = vmatpush.msrb.mxu2 %v1273_v24  ;;  %v4204_v33 = vperm.slane %v3198_v38, 0  ;;  %v3489_v24 = vld [vmem:[%s4180_s4 + $0x8] sm:$0xff] }
 0x5d0   :  { %1737 = vmatpush.msrb.mxu3 %v3352_v1  ;;  %1704 = vmatpush.msrb.mxu2 %v3288_v5 }
 0x5d1   :  { %v3457_v53 = vpop.permute.xlu0 %1140  ;;  %v1455_v3 = vpop.permute.xlu2 %1454  ;;  %2366 = vmatmul.msk.f32.vlgmr.msrb.gmra.mxu3 %vm1622_vm12, %v3489_v24 }
 0x5d2   :  { %v3459_v21 = vpop.permute.xlu1 %1298  ;;  %v1458_v55 = vsel %vm389_vm4, %v3124_v10, %v1455_v3  ;;  %v1464_v60 = vsel %vm389_vm4, %v1455_v3, %v3153_v9  ;;  %1705 = vmatpush.msrb.mxu2 %v1223_v18  ;;  %v1370_v9 = vperm.slane %v3169_v26, 2  ;;  %v1371_v18 = vperm.slane %v3169_v26, 3 }
 0x5d3   :  { %v1307_v1 = vsel %vm204_vm3, %v3459_v21, %v1287_v44  ;;  %v3472_v5 = vmul.f32 %v1470_v40, %v1458_v55  ;;  %v3476_v39 = vmul.f32 %v1471_v54, %v1464_v60  ;;  %v4205_v55 = vperm.slane %v3304_v41, 0 }
 0x5d4   :  { %v1322_v10 = vmul.f32 %v4204_v33, %v1307_v1  ;;  %1706 = vmatpush.msrb.mxu2 %v3330_v58  ;;  %v4206_v33 = vperm.slane %v3247_v22, 0 }
 0x5d6   :  { %1643 = vmatpush.msrb.mxu0 %v1322_v10 }
 0x5d8   :  { %1644 = vmatpush.msrb.mxu0 %v3224_v49 }
 0x5d9   :  { %v3484_v44 = vpop.permute.xlu0 %1198  ;;  %v1357_v29 = vpop.permute.xlu2 %1356 }
 0x5da   :  { %v1207_v58 = vsel %vm90_vm0, %v3484_v44, %v1187_v37  ;;  %v3494_v3 = vpop.permute.xlu1 %1248  ;;  %v1359_v26 = vsel %vm275_vm5, %v3360_v19, %v1357_v29  ;;  %v1365_v49 = vsel %vm275_vm5, %v1357_v29, %v3377_v31  ;;  %v1312_v31 = vperm.slane %v3198_v38, 2 }
 0x5db   :  { %v1222_v60 = vmul.f32 %v4205_v55, %v1207_v58  ;;  %v1257_v37 = vsel %vm145_vm1, %v3494_v3, %v3395_v12  ;;  %v3510_v1 = vmul.f32 %v1370_v9, %v1359_v26  ;;  %v3514_v10 = vmul.f32 %v1371_v18, %v1365_v49  ;;  %v3524_v12 = vld [vmem:[%s4180_s4 + $0x18] sm:$0xff] }
 0x5dc   :  { %v1272_v19 = vmul.f32 %v4206_v33, %v1257_v37  ;;  %v1313_v29 = vperm.slane %v3198_v38, 3  ;;  %2367 = vmatmul.msk.f32.gmra.mxu3 %vm1622_vm12, %v3524_v12  ;;  %v3679_v38 = vld [vmem:[%s4180_s4 + $0x20] sm:$0xff] }
 0x5dd   :  { %1230 = vst [vmem:[#allocation2 + $0x108] sm:$0xff] %v1222_v60 }
 0x5de   :  { %1645 = vmatpush.msrb.mxu0 %v1272_v19 }
 0x5e0   :  { %1646 = vmatpush.msrb.mxu0 %v3284_v20 }
 0x5e1   :  { %v3519_v58 = vpop.permute.xlu0 %1148  ;;  %v1293_v55 = vpop.permute.xlu2 %1292 }
 0x5e2   :  { %v1355_v26 = vpop.permute.xlu1 %1354  ;;  %v1300_v49 = vsel %vm204_vm3, %v1293_v55, %v3213_v46  ;;  %v1302_v37 = vsel %vm204_vm3, %v3233_v51, %v1293_v55  ;;  %1647 = vmatpush.msrb.mxu0 %v1222_v60 }
 0x5e3   :  { %v1358_v20 = vsel %vm275_vm5, %v3102_v14, %v1355_v26  ;;  %v1364_v33 = vsel %vm275_vm5, %v1355_v26, %v3110_v50  ;;  %v3542_v19 = vmul.f32 %v1312_v31, %v1302_v37  ;;  %v3550_v51 = vmul.f32 %v1313_v29, %v1300_v49  ;;  %v3557_v50 = vld [vmem:[%s4180_s4 + $0x28] sm:$0xff] }
 0x5e4   :  { %v3544_v46 = vmul.f32 %v1370_v9, %v1358_v20  ;;  %v3546_v47 = vmul.f32 %v1371_v18, %v1364_v33  ;;  %1648 = vmatpush.msrb.mxu0 %v3328_v61  ;;  %v1520_v14 = vperm.slane %v3257_v36, 2  ;;  %2368 = vmatmul.msk.f32.gmra.mxu3 %vm1622_vm12, %v3557_v50  ;;  %v4207_v20 = vperm.slane %v3252_v35, 0 }
 0x5e5   :  { %v4208_v33 = vperm.slane %v3252_v35, 1 }
 0x5e9   :  { %v1457_v60 = vpop.permute.xlu0 %1456  ;;  %v1507_v55 = vpop.permute.xlu2 %1506 }
 0x5ea   :  { %v1459_v9 = vsel %vm389_vm4, %v3316_v43, %v1457_v60  ;;  %v1465_v18 = vsel %vm389_vm4, %v1457_v60, %v3379_v48  ;;  %v1137_v26 = vpop.permute.xlu1 %1136  ;;  %v1509_v61 = vsel %vm444_vm7, %v3423_v13, %v1507_v55 }
 0x5eb   :  { %v1482_v49 = vmul.f32 %v1470_v40, %v1459_v9  ;;  %v1483_v37 = vmul.f32 %v1471_v54, %v1465_v18  ;;  %v1155_v43 = vsel %vm48_vm2, %v1137_v26, %v3457_v53  ;;  %v1157_v48 = vsel %vm48_vm2, %v3519_v58, %v1137_v26 }
 0x5ec   :  { %v1172_v13 = vmul.f32 %v4207_v20, %v1157_v48  ;;  %v1173_v60 = vmul.f32 %v4208_v33, %v1155_v43  ;;  %v1532_v40 = vmul.f32 %v1520_v14, %v1509_v61  ;;  %v1262_v54 = vperm.slane %v3247_v22, 2  ;;  %v3602_v20 = vld [vmem:[%s4180_s4 + $0x38] sm:$0x1] }
 0x5ed   :  { %v1263_v9 = vperm.slane %v3247_v22, 3  ;;  %v1521_v18 = vperm.slane %v3257_v36, 3  ;;  %v1212_v61 = vperm.slane %v3304_v41, 2  ;;  %v1213_v43 = vperm.slane %v3304_v41, 3  ;;  %2369 = vmatmul.msk.f32.gmra.mxu3 %vm1622_vm12, %v3602_v20 }
 0x5ee   :  { %1649 = vmatpush.msrb.mxu0 %v1172_v13  ;;  %1707 = vmatpush.msrb.mxu2 %v1173_v60  ;;  %1180 = vst [vmem:[#allocation2 + $0xe8] sm:$0xff] %v1172_v13 }
 0x5ef   :  { %1794 = vmatpush.msra.mxu3 %v1532_v40  ;;  %1181 = vst [vmem:[#allocation2 + $0xf0] sm:$0xff] %v1173_v60 }
 0x5f0   :  { %1650 = vmatpush.msrb.mxu0 %v3337_v59  ;;  %1708 = vmatpush.msrb.mxu2 %v3295_v62 }
 0x5f1   :  { %v1243_v26 = vpop.permute.xlu0 %1242  ;;  %v1193_v48 = vpop.permute.xlu2 %1192  ;;  %1709 = vmatmul.f32.vlgmr.msrb.gmra.mxu2 %v3589_v7  ;;  %1651 = vmatmul.f32.vlgmr.msrb.gmra.mxu0 %v3589_v7 }
 0x5f2   :  { %1809 = vmatpush.msra.mxu0 %v1483_v37  ;;  %v1250_v59 = vsel %vm145_vm1, %v1243_v26, %v3179_v28  ;;  %v1252_v62 = vsel %vm145_vm1, %v3126_v11, %v1243_v26  ;;  %v1495_v13 = vpop.permute.xlu1 %1494  ;;  %v1200_v37 = vsel %vm90_vm0, %v1193_v48, %v3235_v52  ;;  %v1202_v33 = vsel %vm90_vm0, %v3148_v0, %v1193_v48 }
 0x5f3   :  { %v3619_v60 = vmul.f32 %v1262_v54, %v1252_v62  ;;  %v3623_v28 = vmul.f32 %v1263_v9, %v1250_v59  ;;  %v1513_v11 = vsel %vm444_vm7, %v1495_v13, %v3405_v4  ;;  %v1515_v52 = vsel %vm444_vm7, %v1507_v55, %v1495_v13  ;;  %v3646_v4 = vld [vmem:[%s4180_s4 + $0x10] sm:$0xff] }
 0x5f4   :  { %1810 = vmatpush.msra.mxu0 %v3476_v39  ;;  %v4209_v0 = vperm.slane %v3257_v36, 0  ;;  %v1533_v26 = vmul.f32 %v1521_v18, %v1515_v52  ;;  %v3637_v48 = vmul.f32 %v1212_v61, %v1202_v33  ;;  %v3641_v59 = vmul.f32 %v1213_v43, %v1200_v37  ;;  %v1548_v36 = vld [vmem:[%s4180_s4 + $0x30] sm:$0x1] }
 0x5f6   :  { %v1530_v40 = vmul.f32 %v4209_v0, %v1513_v11  ;;  %1852 = vmatpush.msra.mxu2 %v1533_v26  ;;  %1228 = vst [vmem:[#allocation2 + $0xb0] sm:$0xff] %v3637_v48 }
 0x5f7   :  { %1229 = vst [vmem:[#allocation2 + $0x158] sm:$0xff] %v3641_v59 }
 0x5f8   :  { %1678 = vmatpush.msrb.mxu1 %v1530_v40 }
 0x5f9   :  { %v1295_v39 = vpop.permute.xlu0 %1294  ;;  %1712 = vmatmul.f32.gmra.mxu2 %v3646_v4  ;;  %1654 = vmatmul.f32.gmra.mxu0 %v3646_v4 }
 0x5fa   :  { %1679 = vmatpush.msrb.mxu1 %v3299_v30  ;;  %v1301_v55 = vsel %vm204_vm3, %v1295_v39, %v3459_v21  ;;  %v1303_v62 = vsel %vm204_vm3, %v3375_v15, %v1295_v39  ;;  %v1407_v13 = vpop.permute.xlu1 %1406  ;;  %v4210_v15 = vperm.slane %v3138_v17, 2 }
 0x5fb   :  { %2362 = vmatmul.msk.f32.vlgmr.msrb.gmra.mxu1 %vm1622_vm12, %v3489_v24  ;;  %v1324_v30 = vmul.f32 %v1312_v31, %v1303_v62  ;;  %v1325_v37 = vmul.f32 %v1313_v29, %v1301_v55  ;;  %v1409_v33 = vsel %vm334_vm6, %v3362_v45, %v1407_v13  ;;  %v1415_v21 = vsel %vm334_vm6, %v1407_v13, %v3397_v8 }
 0x5fc   :  { %1751 = vmatpush.msra.mxu1 %v1482_v49  ;;  %v1432_v11 = vmul.f32 %v4210_v15, %v1409_v33  ;;  %v4211_v49 = vperm.slane %v3138_v17, 3 }
 0x5fe   :  { %v1433_v52 = vmul.f32 %v4211_v49, %v1415_v21  ;;  %1752 = vmatpush.msra.mxu1 %v3472_v5 }
 0x600   :  { %1753 = vmatpush.msra.mxu1 %v1432_v11  ;;  %1811 = vmatpush.msra.mxu0 %v1433_v52 }
 0x601   :  { %v1505_v45 = vpop.permute.xlu0 %1504  ;;  %1715 = vmatmul.f32.gmra.mxu2 %v3679_v38  ;;  %1657 = vmatmul.f32.gmra.mxu0 %v3679_v38 }
 0x602   :  { %1754 = vmatpush.msra.mxu1 %v3439_v34  ;;  %1812 = vmatpush.msra.mxu0 %v3443_v27  ;;  %v1508_v17 = vsel %vm444_vm7, %v3345_v23, %v1505_v45  ;;  %v1514_v8 = vsel %vm444_vm7, %v1505_v45, %v3269_v2  ;;  %v1245_v5 = vpop.permute.xlu1 %1244 }
 0x603   :  { %2363 = vmatmul.msk.f32.gmra.mxu1 %vm1622_vm12, %v3524_v12  ;;  %v1528_v34 = vmul.f32 %v1520_v14, %v1508_v17  ;;  %v1529_v27 = vmul.f32 %v1521_v18, %v1514_v8  ;;  %v1251_v31 = vsel %vm145_vm1, %v1245_v5, %v3494_v3  ;;  %v1253_v23 = vsel %vm145_vm1, %v3431_v32, %v1245_v5 }
 0x604   :  { %1755 = vmatpush.msra.mxu1 %v3510_v1  ;;  %1813 = vmatpush.msra.mxu0 %v3514_v10  ;;  %v1274_v2 = vmul.f32 %v1262_v54, %v1253_v23  ;;  %v1275_v1 = vmul.f32 %v1263_v9, %v1251_v31  ;;  %v1162_v32 = vperm.slane %v3252_v35, 2  ;;  %v1163_v3 = vperm.slane %v3252_v35, 3 }
 0x605   :  { %1795 = vmatpush.msra.mxu3 %v1528_v34  ;;  %1853 = vmatpush.msra.mxu2 %v1529_v27 }
 0x606   :  { %1756 = vmatpush.msra.mxu1 %v3544_v46  ;;  %1814 = vmatpush.msra.mxu0 %v3546_v47 }
 0x607   :  { %2370 = vmatmul.msk.f32.vlgmr.msra.gmra.mxu3 %vm1622_vm12, %v3489_v24 }
 0x608   :  { %1757 = vmatpush.msra.mxu1 %v3024_v6  ;;  %1815 = vmatpush.msra.mxu0 %v3030_v16  ;;  %v4212_v16 = vld [vmem:[#allocation3_spill] sm:$0xff] }
 0x609   :  { %v1143_v22 = vpop.permute.xlu0 %1142  ;;  %1718 = vmatmul.f32.gmra.mxu2 %v1548_v36  ;;  %1660 = vmatmul.f32.gmra.mxu0 %v1548_v36 }
 0x60a   :  { %1758 = vmatpush.msra.mxu1 %v3006_v56  ;;  %1816 = vmatpush.msra.mxu0 %v3008_v57  ;;  %v1150_v6 = vsel %vm48_vm2, %v1143_v22, %v3324_v63  ;;  %v1152_v35 = vsel %vm48_vm2, %v4212_v16, %v1143_v22  ;;  %v1195_v47 = vpop.permute.xlu1 %1194 }
 0x60b   :  { %2364 = vmatmul.msk.f32.gmra.mxu1 %vm1622_vm12, %v3557_v50  ;;  %v1170_v10 = vmul.f32 %v1162_v32, %v1152_v35  ;;  %v1171_v56 = vmul.f32 %v1163_v3, %v1150_v6  ;;  %v1201_v57 = vsel %vm90_vm0, %v1195_v47, %v3484_v44  ;;  %v1203_v29 = vsel %vm90_vm0, %v3407_v25, %v1195_v47 }
 0x60c   :  { %1759 = vmatpush.msra.mxu1 %v1324_v30  ;;  %1817 = vmatpush.msra.mxu0 %v1325_v37  ;;  %v1224_v63 = vmul.f32 %v1212_v61, %v1203_v29  ;;  %v1225_v46 = vmul.f32 %v1213_v43, %v1201_v57  ;;  %vm1890_vm0 = vcmask 1040384  }
 0x60d   :  { %1178 = vst [vmem:[#allocation2 + $0x40] sm:$0xff] %v1170_v10 }
 0x60e   :  { %1760 = vmatpush.msra.mxu1 %v3542_v19  ;;  %1818 = vmatpush.msra.mxu0 %v3550_v51  ;;  %1179 = vst [vmem:[#allocation2 + $0x28] sm:$0xff] %v1171_v56 }
 0x60f   :  { %1232 = vst [vmem:[#allocation2 + $0x1f8] sm:$0xff] %v1224_v63  ;;  %2371 = vmatmul.msk.f32.gmra.mxu3 %vm1622_vm12, %v3524_v12 }
 0x610   :  { %1761 = vmatpush.msra.mxu1 %v1274_v2  ;;  %1819 = vmatpush.msra.mxu0 %v1275_v1  ;;  %1233 = vst [vmem:[#allocation2 + $0xb8] sm:$0xff] %v1225_v46 }
 0x611   :  { %2374 = vmatmul.msk.f32.vlgmr.msra.gmra.mxu2 %vm1622_vm12, %v3489_v24 }
 0x612   :  { %1762 = vmatpush.msra.mxu1 %v3619_v60  ;;  %1820 = vmatpush.msra.mxu0 %v3623_v28  ;;  %v1145_v41 = vpop.permute.xlu1 %1144 }
 0x613   :  { %2365 = vmatmul.msk.f32.gmra.mxu1 %vm1622_vm12, %v3602_v20  ;;  %v1151_v25 = vsel %vm48_vm2, %v1145_v41, %v3519_v58  ;;  %v1153_v44 = vsel %vm48_vm2, %v3457_v53, %v1145_v41 }
 0x614   :  { %1763 = vmatpush.msra.mxu1 %v1224_v63  ;;  %1821 = vmatpush.msra.mxu0 %v1225_v46  ;;  %v1174_v19 = vmul.f32 %v1162_v32, %v1153_v44  ;;  %v1175_v51 = vmul.f32 %v1163_v3, %v1151_v25 }
 0x616   :  { %1764 = vmatpush.msra.mxu1 %v3637_v48  ;;  %1822 = vmatpush.msra.mxu0 %v3641_v59  ;;  %1182 = vst [vmem:[#allocation2 + $0x70] sm:$0xff] %v1174_v19 }
 0x617   :  { %1183 = vst [vmem:[#allocation2 + $0x120] sm:$0xff] %v1175_v51  ;;  %2372 = vmatmul.msk.f32.gmra.mxu3 %vm1622_vm12, %v3557_v50 }
 0x618   :  { %1765 = vmatpush.msra.mxu1 %v1174_v19  ;;  %1823 = vmatpush.msra.mxu0 %v1175_v51 }
 0x619   :  { %2375 = vmatmul.msk.f32.gmra.mxu2 %vm1622_vm12, %v3524_v12 }
 0x61a   :  { %1766 = vmatpush.msra.mxu1 %v1170_v10  ;;  %1824 = vmatpush.msra.mxu0 %v1171_v56 }
 0x61b   :  { %1767 = vmatmul.f32.vlgmr.msra.gmra.mxu1 %v3589_v7  ;;  %1825 = vmatmul.f32.vlgmr.msra.gmra.mxu0 %v3589_v7 }
 0x61f   :  { %2373 = vmatmul.msk.f32.gmra.mxu3 %vm1622_vm12, %v3602_v20 }
 0x621   :  { %2376 = vmatmul.msk.f32.gmra.mxu2 %vm1622_vm12, %v3557_v50 }
 0x623   :  { %1770 = vmatmul.f32.gmra.mxu1 %v3646_v4  ;;  %1828 = vmatmul.f32.gmra.mxu0 %v3646_v4 }
 0x629   :  { %2377 = vmatmul.msk.f32.gmra.mxu2 %vm1622_vm12, %v3602_v20 }
 0x62b   :  { %1773 = vmatmul.f32.gmra.mxu1 %v3679_v38  ;;  %1831 = vmatmul.f32.gmra.mxu0 %v3679_v38 }
 0x633   :  { %1776 = vmatmul.f32.gmra.mxu1 %v1548_v36  ;;  %1834 = vmatmul.f32.gmra.mxu0 %v1548_v36 }
 0x654   :  { %v1739_v42 = vpop.f32.mrf.mxu3 }
 0x65f   :  { %v1742_v24 = vpop.f32.mrf.mxu3 }
 0x667   :  { %v1745_v7 = vpop.f32.mrf.mxu3 }
 0x66e   :  { %v1652_v53 = vpop.f32.mrf.mxu0 }
 0x670   :  { %v1748_v61 = vpop.f32.mrf.mxu3 }
 0x674   :  { %v1710_v58 = vpop.f32.mrf.mxu2 }
 0x675   :  { %v3774_v26 = vadd.f32 %v1739_v42, %v1710_v58 }
 0x676   :  { %v1655_v14 = vpop.f32.mrf.mxu0 }
 0x677   :  { %v1905_v37 = vmul.f32 %v3774_v26, %v3774_v26 }
 0x678   :  { %v1681_v12 = vpop.f32.mrf.mxu1 }
 0x679   :  { %v3772_v20 = vadd.f32 %v1681_v12, %v1652_v53 }
 0x67b   :  { %v1875_v39 = vadd.f32 %v3774_v26, %v3772_v20  ;;  %v1904_v30 = vmul.f32 %v3772_v20, %v3772_v20 }
 0x67c   :  { %v1713_v54 = vpop.f32.mrf.mxu2 }
 0x67d   :  { %v3789_v15 = vadd.f32 %v1742_v24, %v1713_v54  ;;  %v1920_v38 = vadd.f32 %v1905_v37, %v1904_v30 }
 0x67e   :  { %v1658_v18 = vpop.f32.mrf.mxu0 }
 0x67f   :  { %v1909_v23 = vmul.f32 %v3789_v15, %v3789_v15 }
 0x680   :  { %v1684_v9 = vpop.f32.mrf.mxu1 }
 0x681   :  { %v3787_v21 = vadd.f32 %v1684_v9, %v1655_v14 }
 0x683   :  { %v1880_v45 = vadd.f32 %v3789_v15, %v3787_v21  ;;  %v1908_v2 = vmul.f32 %v3787_v21, %v3787_v21 }
 0x684   :  { %v1716_v50 = vpop.f32.mrf.mxu2 }
 0x685   :  { %v3808_v36 = vadd.f32 %v1745_v7, %v1716_v50  ;;  %v1925_v35 = vadd.f32 %v1909_v23, %v1908_v2 }
 0x686   :  { %v1661_v28 = vpop.f32.mrf.mxu0 }
 0x687   :  { %v1913_v10 = vmul.f32 %v3808_v36, %v3808_v36 }
 0x688   :  { %v1687_v43 = vpop.f32.mrf.mxu1 }
 0x689   :  { %v3806_v1 = vadd.f32 %v1687_v43, %v1658_v18 }
 0x68a   :  { %v1797_v40 = vpop.f32.mrf.mxu3 }
 0x68b   :  { %v1912_v47 = vmul.f32 %v3806_v1, %v3806_v1  ;;  %v1885_v57 = vadd.f32 %v3808_v36, %v3806_v1 }
 0x68c   :  { %v1719_v60 = vpop.f32.mrf.mxu2 }
 0x68d   :  { %v3822_v63 = vadd.f32 %v1748_v61, %v1719_v60  ;;  %v1930_v58 = vadd.f32 %v1913_v10, %v1912_v47 }
 0x68f   :  { %v1917_v12 = vmul.f32 %v3822_v63, %v3822_v63  ;;  %v1892_v61 = vsel %vm1890_vm0, %v3822_v63, 0.0 }
 0x690   :  { %v1690_v0 = vpop.f32.mrf.mxu1 }
 0x691   :  { %v3820_v29 = vadd.f32 %v1690_v0, %v1661_v28 }
 0x692   :  { %v1800_v13 = vpop.f32.mrf.mxu3 }
 0x693   :  { %v1916_v14 = vmul.f32 %v3820_v29, %v3820_v29  ;;  %v1891_v50 = vsel %vm1890_vm0, %v3820_v29, 0.0 }
 0x694   :  { %v1855_v48 = vpop.f32.mrf.mxu2 }
 0x698   :  { %v1768_v59 = vpop.f32.mrf.mxu1  ;;  %v1826_v4 = vpop.f32.mrf.mxu0 }
 0x699   :  { %v3778_v55 = vadd.f32 %v1797_v40, %v1768_v59  ;;  %v3780_v62 = vadd.f32 %v1855_v48, %v1826_v4  ;;  %v1935_v40 = vsel %vm1890_vm0, %v1916_v14, 0.0  ;;  %v1936_v48 = vsel %vm1890_vm0, %v1917_v12, 0.0 }
 0x69a   :  { %v1803_v3 = vpop.f32.mrf.mxu3 }
 0x69b   :  { %v1876_v33 = vadd.f32 %v1875_v39, %v3778_v55  ;;  %v1906_v11 = vmul.f32 %v3778_v55, %v3778_v55  ;;  %v1907_v27 = vmul.f32 %v3780_v62, %v3780_v62  ;;  %v1893_v39 = vadd.f32 %v1892_v61, %v1891_v50 }
 0x69c   :  { %v1858_v52 = vpop.f32.mrf.mxu2 }
 0x69d   :  { %v1877_v49 = vadd.f32 %v1876_v33, %v3780_v62  ;;  %v1921_v31 = vadd.f32 %v1920_v38, %v1906_v11 }
 0x69f   :  { %1878 = vadd.xlane.f32.xlu2 %v1877_v49  ;;  %v1922_v6 = vadd.f32 %v1921_v31, %v1907_v27  ;;  %v1937_v49 = vadd.f32 %v1936_v48, %v1935_v40 }
 0x6a0   :  { %v1771_v17 = vpop.f32.mrf.mxu1  ;;  %v1829_v8 = vpop.f32.mrf.mxu0 }
 0x6a1   :  { %v3796_v5 = vadd.f32 %v1800_v13, %v1771_v17  ;;  %v3798_v34 = vadd.f32 %v1858_v52, %v1829_v8 }
 0x6a2   :  { %v1806_v18 = vpop.f32.mrf.mxu3 }
 0x6a3   :  { %v1881_v32 = vadd.f32 %v1880_v45, %v3796_v5  ;;  %v1910_v22 = vmul.f32 %v3796_v5, %v3796_v5  ;;  %v1911_v25 = vmul.f32 %v3798_v34, %v3798_v34 }
 0x6a4   :  { %v1861_v56 = vpop.f32.mrf.mxu2 }
 0x6a5   :  { %v1882_v16 = vadd.f32 %v1881_v32, %v3798_v34  ;;  %v1926_v51 = vadd.f32 %v1925_v35, %v1910_v22 }
 0x6a7   :  { %1923 = vadd.xlane.f32.xlu2 %v1922_v6  ;;  %1883 = vadd.xlane.f32.xlu1 %v1882_v16  ;;  %v1927_v7 = vadd.f32 %v1926_v51, %v1911_v25 }
 0x6a8   :  { %v1774_v46 = vpop.f32.mrf.mxu1  ;;  %v1832_v41 = vpop.f32.mrf.mxu0 }
 0x6a9   :  { %v3826_v44 = vadd.f32 %v1803_v3, %v1774_v46  ;;  %v3828_v19 = vadd.f32 %v1861_v56, %v1832_v41 }
 0x6ab   :  { %v1914_v42 = vmul.f32 %v3826_v44, %v3826_v44  ;;  %v1886_v53 = vadd.f32 %v1885_v57, %v3826_v44  ;;  %v1915_v24 = vmul.f32 %v3828_v19, %v3828_v19 }
 0x6ac   :  { %v1864_v60 = vpop.f32.mrf.mxu2 }
 0x6ad   :  { %v1887_v54 = vadd.f32 %v1886_v53, %v3828_v19  ;;  %v1931_v9 = vadd.f32 %v1930_v58, %v1914_v42 }
 0x6af   :  { %1928 = vadd.xlane.f32.xlu1 %v1927_v7  ;;  %1888 = vadd.xlane.f32.xlu0 %v1887_v54  ;;  %v1932_v43 = vadd.f32 %v1931_v9, %v1915_v24 }
 0x6b0   :  { %v1777_v28 = vpop.f32.mrf.mxu1  ;;  %v1835_v0 = vpop.f32.mrf.mxu0 }
 0x6b1   :  { %v3846_v59 = vadd.f32 %v1806_v18, %v1777_v28  ;;  %1933 = vadd.xlane.f32.xlu2 %v1932_v43  ;;  %v3848_v4 = vadd.f32 %v1864_v60, %v1835_v0 }
 0x6b3   :  { %v1918_v13 = vmul.f32 %v3846_v59, %v3846_v59  ;;  %v1919_v30 = vmul.f32 %v3848_v4, %v3848_v4  ;;  %v1894_v37 = vsel %vm1890_vm0, %v3846_v59, 0.0  ;;  %v1896_v33 = vsel %vm1890_vm0, %v3848_v4, 0.0 }
 0x6b4   :  { %v1895_v11 = vadd.f32 %v1894_v37, %v1893_v39 }
 0x6b5   :  { %v1938_v52 = vsel %vm1890_vm0, %v1918_v13, 0.0  ;;  %v1940_v38 = vsel %vm1890_vm0, %v1919_v30, 0.0 }
 0x6b6   :  { %v1897_v45 = vadd.f32 %v1896_v33, %v1895_v11  ;;  %v1939_v17 = vadd.f32 %v1938_v52, %v1937_v49  ;;  %v1867_v52 = vld [vmem:[%s4178_s5 + $0x80] sm:$0xff] }
 0x6b8   :  { %1898 = vadd.xlane.f32.xlu0 %v1897_v45  ;;  %v1941_v8 = vadd.f32 %v1940_v38, %v1939_v17 }
 0x6ba   :  { %1942 = vadd.xlane.f32.xlu1 %v1941_v8 }
 0x712   :  { %v1879_v27 = vpop.xlane.xlu2 %1878 }
 0x713   :  { %v3860_v31 = vmul.f32 0.001953125, %v1879_v27 }
 0x715   :  { %v1948_v32 = vmul.f32 %v3860_v31, %v3860_v31 }
 0x71a   :  { %v1924_v23 = vpop.xlane.xlu2 %1923  ;;  %v1884_v2 = vpop.xlane.xlu1 %1883 }
 0x71b   :  { %v1944_v3 = vmul.f32 0.001953125, %v1924_v23  ;;  %v3864_v16 = vmul.f32 0.001953125, %v1884_v2 }
 0x71d   :  { %v1952_v22 = vsub.f32 %v1944_v3, %v1948_v32  ;;  %v1949_v56 = vmul.f32 %v3864_v16, %v3864_v16  ;;  %v1868_v32 = vld [vmem:[%s4178_s5 + $0x88] sm:$0xff] }
 0x71f   :  { %v1956_v6 = vmax.f32 %v1952_v22, 0.0 }
 0x721   :  { %v1960_v35 = vadd.f32 1e-05, %v1956_v6 }
 0x722   :  { %v1929_v47 = vpop.xlane.xlu1 %1928  ;;  %v1889_v10 = vpop.xlane.xlu0 %1888 }
 0x723   :  { %2404 = vrsqrt.f32 %v1960_v35  ;;  %v1945_v57 = vmul.f32 0.001953125, %v1929_v47  ;;  %v3868_v46 = vmul.f32 0.001953125, %v1889_v10  ;;  %vm1970_vm2 = vweird.f32 %v1960_v35  ;;  %v1871_v47 = vld [vmem:[%s4178_s5 + $0xa0] sm:$0xff]  ;;  %v1869_v10 = vld [vmem:[%s4178_s5 + $0x90] sm:$0xff] }
 0x724   :  { %v1934_v41 = vpop.xlane.xlu2 %1933 }
 0x725   :  { %v1953_v25 = vsub.f32 %v1945_v57, %v1949_v56  ;;  %v1950_v51 = vmul.f32 %v3868_v46, %v3868_v46  ;;  %v1946_v42 = vmul.f32 0.001953125, %v1934_v41 }
 0x727   :  { %v1957_v53 = vmax.f32 %v1953_v25, 0.0  ;;  %v1954_v24 = vsub.f32 %v1946_v42, %v1950_v51 }
 0x729   :  { %v2405_v58 = vpop.eup %2404  ;;  %v1961_v12 = vadd.f32 1e-05, %v1957_v53  ;;  %v1958_v14 = vmax.f32 %v1954_v24, 0.0 }
 0x72a   :  { %v1965_v7 = vmul.f32 %v2405_v58, %v1960_v35  ;;  %vm1971_vm1 = vweird.f32 %v2405_v58 }
 0x72b   :  { %2406 = vrsqrt.f32 %v1961_v12  ;;  %v1962_v54 = vadd.f32 1e-05, %v1958_v14  ;;  %v1899_v9 = vpop.xlane.xlu0 %1898  ;;  %vm1972_vm3 = vmor %vm1970_vm2, %vm1971_vm1  ;;  %vm1980_vm5 = vweird.f32 %v1961_v12 }
 0x72c   :  { %v1966_v18 = vmul.f32 %v2405_v58, %v1965_v7  ;;  %v3872_v50 = vmul.f32 0.001953125, %v1899_v9  ;;  %v1873_v7 = vld [vmem:[%s4178_s5 + $0xb0] sm:$0xff] }
 0x72d   :  { %2408 = vrsqrt.f32 %v1962_v54  ;;  %v1943_v61 = vpop.xlane.xlu1 %1942  ;;  %vm1990_vm13 = vweird.f32 %v1962_v54 }
 0x72e   :  { %v1967_v43 = vmul.f32 0.5, %v1966_v18  ;;  %v1951_v60 = vmul.f32 %v3872_v50, %v3872_v50  ;;  %v1947_v28 = vmul.f32 0.001953125, %v1943_v61 }
 0x730   :  { %v1968_v0 = vsub.f32 1.5, %v1967_v43  ;;  %v1955_v40 = vsub.f32 %v1947_v28, %v1951_v60 }
 0x731   :  { %v2407_v48 = vpop.eup %2406 }
 0x732   :  { %v1975_v39 = vmul.f32 %v2407_v48, %v1961_v12  ;;  %v1959_v13 = vmax.f32 %v1955_v40, 0.0  ;;  %v1969_v30 = vmul.f32 %v2405_v58, %v1968_v0  ;;  %vm1981_vm4 = vweird.f32 %v2407_v48 }
 0x733   :  { %v2409_v37 = vpop.eup %2408  ;;  %vm1982_vm7 = vmor %vm1980_vm5, %vm1981_vm4 }
 0x734   :  { %v1976_v33 = vmul.f32 %v2407_v48, %v1975_v39  ;;  %v1985_v11 = vmul.f32 %v2409_v37, %v1962_v54  ;;  %v1963_v49 = vadd.f32 1e-05, %v1959_v13  ;;  %v1973_v38 = vsel %vm1972_vm3, %v2405_v58, %v1969_v30  ;;  %v1872_v58 = vld [vmem:[%s4178_s5 + $0xa8] sm:$0xff] }
 0x735   :  { %v2004_v8 = vmul.f32 %v1973_v38, %v1867_v52  ;;  %vm1991_vm6 = vweird.f32 %v2409_v37 }
 0x736   :  { %v1977_v45 = vmul.f32 0.5, %v1976_v33  ;;  %v1986_v17 = vmul.f32 %v2409_v37, %v1985_v11  ;;  %2410 = vrsqrt.f32 %v1963_v49  ;;  %vm1992_vm14 = vmor %vm1990_vm13, %vm1991_vm6  ;;  %vm2000_vm8 = vweird.f32 %v1963_v49 }
 0x737   :  { %2018 = vperm.xlu0 %2397, %v2004_v8   ;;  %v2008_v22 = vmul.f32 %v2004_v8, %v3860_v31 }
 0x738   :  { %v1978_v27 = vsub.f32 1.5, %v1977_v45  ;;  %v1987_v23 = vmul.f32 0.5, %v1986_v17 }
 0x739   :  { %v2012_v42 = vsub.f32 %v1871_v47, %v2008_v22 }
 0x73a   :  { %v1988_v2 = vsub.f32 1.5, %v1987_v23  ;;  %v1979_v3 = vmul.f32 %v2407_v48, %v1978_v27 }
 0x73c   :  { %v2411_v6 = vpop.eup %2410  ;;  %v1983_v35 = vsel %vm1982_vm7, %v2407_v48, %v1979_v3  ;;  %v1989_v56 = vmul.f32 %v2409_v37, %v1988_v2 }
 0x73d   :  { %v1995_v57 = vmul.f32 %v2411_v6, %v1963_v49  ;;  %v2005_v41 = vmul.f32 %v1983_v35, %v1868_v32  ;;  %vm2001_vm15 = vweird.f32 %v2411_v6 }
 0x73e   :  { %v1993_v25 = vsel %vm1992_vm14, %v2409_v37, %v1989_v56  ;;  %vm2002_vm9 = vmor %vm2000_vm8, %vm2001_vm15 }
 0x73f   :  { %v1996_v51 = vmul.f32 %v2411_v6, %v1995_v57  ;;  %2023 = vperm.xlu2 %2396, %v2005_v41   ;;  %v2006_v31 = vmul.f32 %v1993_v25, %v1869_v10  ;;  %v2009_v24 = vmul.f32 %v2005_v41, %v3864_v16  ;;  %2054 = vperm.xlu0 %2397, %v2012_v42   ;;  %v1870_v16 = vld [vmem:[%s4178_s5 + $0x98] sm:$0x1] }
 0x741   :  { %v1997_v53 = vmul.f32 0.5, %v1996_v51  ;;  %2028 = vperm.xlu1 %2395, %v2006_v31   ;;  %v2010_v14 = vmul.f32 %v2006_v31, %v3868_v46  ;;  %v2013_v54 = vsub.f32 %v1872_v58, %v2009_v24  ;;  %v1874_v46 = vld [vmem:[%s4178_s5 + $0xb8] sm:$0x1] }
 0x743   :  { %v1998_v12 = vsub.f32 1.5, %v1997_v53  ;;  %v2014_v18 = vsub.f32 %v1873_v7, %v2010_v14 }
 0x745   :  { %v1999_v9 = vmul.f32 %v2411_v6, %v1998_v12 }
 0x747   :  { %2059 = vperm.xlu2 %2396, %v2013_v54   ;;  %v2003_v61 = vsel %vm2002_vm9, %v2411_v6, %v1999_v9 }
 0x748   :  { %v2007_v43 = vmul.f32 %v2003_v61, %v1870_v16 }
 0x749   :  { %2064 = vperm.xlu1 %2395, %v2014_v18  }
 0x74a   :  { %2033 = vperm.xlu0 %2397, %v2007_v43   ;;  %v2011_v60 = vmul.f32 %v2007_v43, %v3872_v50 }
 0x74c   :  { %v2015_v28 = vsub.f32 %v1874_v46, %v2011_v60 }
 0x74f   :  { %2069 = vperm.xlu2 %2396, %v2015_v28  }
 0x799   :  { %v2024_v0 = vpop.permute.xlu2 %2023 }
 0x79a   :  { %v2040_v39 = vmul.f32 %v2024_v0, %v3787_v21  ;;  %v2041_v13 = vmul.f32 %v2024_v0, %v3789_v15  ;;  %v2042_v30 = vmul.f32 %v2024_v0, %v3796_v5  ;;  %v2043_v37 = vmul.f32 %v2024_v0, %v3798_v34 }
 0x7a1   :  { %v2060_v48 = vpop.permute.xlu2 %2059 }
 0x7a2   :  { %v3908_v11 = vadd.f32 %v2060_v48, %v2040_v39  ;;  %v3910_v49 = vadd.f32 %v2060_v48, %v2041_v13  ;;  %v3912_v52 = vadd.f32 %v2060_v48, %v2042_v30  ;;  %v3914_v50 = vadd.f32 %v2060_v48, %v2043_v37 }
 0x7a4   :  { %v2092_v23 = vmax.f32 %v3908_v11, 0.0  ;;  %v2093_v2 = vmax.f32 %v3910_v49, 0.0 }
 0x7a9   :  { %v2019_v40 = vpop.permute.xlu0 %2018  ;;  %v2070_v42 = vpop.permute.xlu2 %2069 }
 0x7aa   :  { %v2036_v45 = vmul.f32 %v2019_v40, %v3772_v20  ;;  %v2037_v21 = vmul.f32 %v2019_v40, %v3774_v26  ;;  %v2038_v15 = vmul.f32 %v2019_v40, %v3778_v55  ;;  %v2039_v5 = vmul.f32 %v2019_v40, %v3780_v62 }
 0x7ab   :  { %v2094_v20 = vmax.f32 %v3912_v52, 0.0  ;;  %v2095_v26 = vmax.f32 %v3914_v50, 0.0 }
 0x7b1   :  { %v2055_v38 = vpop.permute.xlu0 %2054 }
 0x7b2   :  { %v3920_v17 = vadd.f32 %v2055_v38, %v2036_v45  ;;  %v3922_v34 = vadd.f32 %v2055_v38, %v2037_v21  ;;  %v3924_v8 = vadd.f32 %v2055_v38, %v2038_v15  ;;  %v3926_v27 = vadd.f32 %v2055_v38, %v2039_v5 }
 0x7b3   :  { %v2029_v33 = vpop.permute.xlu1 %2028 }
 0x7b4   :  { %v2044_v55 = vmul.f32 %v2029_v33, %v3806_v1  ;;  %v2045_v62 = vmul.f32 %v2029_v33, %v3808_v36  ;;  %v2046_v32 = vmul.f32 %v2029_v33, %v3826_v44  ;;  %v2047_v3 = vmul.f32 %v2029_v33, %v3828_v19 }
 0x7b5   :  { %v2088_v22 = vmax.f32 %v3920_v17, 0.0  ;;  %v2089_v6 = vmax.f32 %v3922_v34, 0.0  ;;  %v2090_v35 = vmax.f32 %v3924_v8, 0.0  ;;  %v2091_v47 = vmax.f32 %v3926_v27, 0.0 }
 0x7b7   :  { %v2124_v7 = vmax.f32 %v2090_v35, %v2094_v20  ;;  %v2134_v54 = vmax.f32 %v2091_v47, %v2095_v26 }
 0x7bb   :  { %v2065_v10 = vpop.permute.xlu1 %2064 }
 0x7bc   :  { %v3940_v56 = vadd.f32 %v2065_v10, %v2044_v55  ;;  %v3942_v57 = vadd.f32 %v2065_v10, %v2045_v62  ;;  %v3944_v1 = vadd.f32 %v2065_v10, %v2046_v32  ;;  %v3946_v36 = vadd.f32 %v2065_v10, %v2047_v3  ;;  %v2034_v44 = vpop.permute.xlu0 %2033 }
 0x7bd   :  { %v2048_v19 = vmul.f32 %v2034_v44, %v3820_v29  ;;  %v2049_v41 = vmul.f32 %v2034_v44, %v3822_v63  ;;  %v2050_v25 = vmul.f32 %v2034_v44, %v3846_v59  ;;  %v2051_v51 = vmul.f32 %v2034_v44, %v3848_v4 }
 0x7be   :  { %v2096_v31 = vmax.f32 %v3940_v56, 0.0  ;;  %v2097_v53 = vmax.f32 %v3942_v57, 0.0  ;;  %v2098_v24 = vmax.f32 %v3944_v1, 0.0  ;;  %v2099_v58 = vmax.f32 %v3946_v36, 0.0 }
 0x7bf   :  { %v3956_v12 = vadd.f32 %v2070_v42, %v2048_v19  ;;  %v3958_v14 = vadd.f32 %v2070_v42, %v2049_v41  ;;  %v3960_v29 = vadd.f32 %v2070_v42, %v2050_v25  ;;  %v3962_v63 = vadd.f32 %v2070_v42, %v2051_v51 }
 0x7c0   :  { %v2104_v59 = vmax.f32 %v2088_v22, %v2092_v23  ;;  %v2114_v4 = vmax.f32 %v2089_v6, %v2093_v2  ;;  %v2125_v60 = vmax.f32 %v2124_v7, %v2098_v24  ;;  %v2135_v28 = vmax.f32 %v2134_v54, %v2099_v58 }
 0x7c1   :  { %v2100_v16 = vmax.f32 %v3956_v12, 0.0  ;;  %v2101_v9 = vmax.f32 %v3958_v14, 0.0  ;;  %v2102_v18 = vmax.f32 %v3960_v29, 0.0  ;;  %v2103_v61 = vmax.f32 %v3962_v63, 0.0 }
 0x7c2   :  { %v2105_v43 = vmax.f32 %v2104_v59, %v2096_v31  ;;  %v2115_v46 = vmax.f32 %v2114_v4, %v2097_v53 }
 0x7c3   :  { %v2106_v0 = vsel %vm1890_vm0, %v2100_v16, -inf  ;;  %v2116_v40 = vsel %vm1890_vm0, %v2101_v9, -inf  ;;  %v2126_v48 = vsel %vm1890_vm0, %v2102_v18, -inf  ;;  %v2136_v39 = vsel %vm1890_vm0, %v2103_v61, -inf }
 0x7c4   :  { %v2107_v13 = vmax.f32 %v2105_v43, %v2106_v0  ;;  %v2117_v30 = vmax.f32 %v2115_v46, %v2116_v40  ;;  %v2127_v37 = vmax.f32 %v2125_v60, %v2126_v48  ;;  %v2137_v33 = vmax.f32 %v2135_v28, %v2136_v39 }
 0x7c6   :  { %v2108_v38 = vrot.slane %v2107_v13, 4  ;;  %v2118_v45 = vrot.slane %v2117_v30, 4  ;;  %v2128_v21 = vrot.slane %v2127_v37, 4  ;;  %v2138_v15 = vrot.slane %v2137_v33, 4 }
 0x7c8   :  { %v2109_v5 = vmax.f32 %v2107_v13, %v2108_v38  ;;  %v2119_v55 = vmax.f32 %v2117_v30, %v2118_v45  ;;  %v2129_v62 = vmax.f32 %v2127_v37, %v2128_v21  ;;  %v2139_v32 = vmax.f32 %v2137_v33, %v2138_v15 }
 0x7ca   :  { %v2110_v3 = vrot.slane %v2109_v5, 2  ;;  %v2120_v10 = vrot.slane %v2119_v55, 2  ;;  %v2130_v44 = vrot.slane %v2129_v62, 2  ;;  %v2140_v19 = vrot.slane %v2139_v32, 2 }
 0x7cc   :  { %v2111_v41 = vmax.f32 %v2109_v5, %v2110_v3  ;;  %v2121_v25 = vmax.f32 %v2119_v55, %v2120_v10  ;;  %v2131_v51 = vmax.f32 %v2129_v62, %v2130_v44  ;;  %v2141_v42 = vmax.f32 %v2139_v32, %v2140_v19 }
 0x7ce   :  { %v2112_v59 = vrot.slane %v2111_v41, 1  ;;  %v2122_v4 = vrot.slane %v2121_v25, 1  ;;  %v2132_v7 = vrot.slane %v2131_v51, 1  ;;  %v2142_v54 = vrot.slane %v2141_v42, 1 }
 0x7d0   :  { %v2113_v43 = vmax.f32 %v2111_v41, %v2112_v59  ;;  %v2123_v46 = vmax.f32 %v2121_v25, %v2122_v4  ;;  %v2133_v60 = vmax.f32 %v2131_v51, %v2132_v7  ;;  %v2143_v28 = vmax.f32 %v2141_v42, %v2142_v54 }
 0x7d2   :  { %v2144_v0 = vsub.f32 %v2088_v22, %v2113_v43  ;;  %v2145_v40 = vsub.f32 %v2089_v6, %v2123_v46  ;;  %v2146_v48 = vsub.f32 %v2090_v35, %v2133_v60  ;;  %v2147_v39 = vsub.f32 %v2091_v47, %v2143_v28 }
 0x7d3   :  { %v2148_v13 = vsub.f32 %v2092_v23, %v2113_v43  ;;  %v2149_v30 = vsub.f32 %v2093_v2, %v2123_v46  ;;  %v2150_v37 = vsub.f32 %v2094_v20, %v2133_v60  ;;  %v2151_v34 = vsub.f32 %v2095_v26, %v2143_v28 }
 0x7d4   :  { %v2160_v17 = vmul.f32 1.442695, %v2144_v0  ;;  %v2162_v22 = vmul.f32 1.442695, %v2145_v40  ;;  %v2164_v33 = vmul.f32 1.442695, %v2146_v48  ;;  %v2152_v27 = vsub.f32 %v2096_v31, %v2113_v43 }
 0x7d5   :  { %v2166_v8 = vmul.f32 1.442695, %v2147_v39  ;;  %v2168_v6 = vmul.f32 1.442695, %v2148_v13  ;;  %v2153_v11 = vsub.f32 %v2097_v53, %v2123_v46  ;;  %v2170_v49 = vmul.f32 1.442695, %v2149_v30 }
 0x7d6   :  { %2412 = vpow2.f32 %v2160_v17  ;;  %v2154_v52 = vsub.f32 %v2098_v24, %v2133_v60  ;;  %v2172_v23 = vmul.f32 1.442695, %v2150_v37  ;;  %v2155_v50 = vsub.f32 %v2099_v58, %v2143_v28 }
 0x7d7   :  { %2414 = vpow2.f32 %v2162_v22  ;;  %v2174_v2 = vmul.f32 1.442695, %v2151_v34  ;;  %v2156_v20 = vsub.f32 %v2100_v16, %v2113_v43  ;;  %v2176_v26 = vmul.f32 1.442695, %v2152_v27 }
 0x7d8   :  { %2416 = vpow2.f32 %v2164_v33  ;;  %v2157_v35 = vsub.f32 %v2101_v9, %v2123_v46  ;;  %v2178_v47 = vmul.f32 1.442695, %v2153_v11  ;;  %v2158_v57 = vsub.f32 %v2102_v18, %v2133_v60 }
 0x7d9   :  { %2418 = vpow2.f32 %v2166_v8  ;;  %v2180_v1 = vmul.f32 1.442695, %v2154_v52  ;;  %v2159_v31 = vsub.f32 %v2103_v61, %v2143_v28  ;;  %v2182_v53 = vmul.f32 1.442695, %v2155_v50 }
 0x7da   :  { %2420 = vpow2.f32 %v2168_v6  ;;  %v2184_v58 = vmul.f32 1.442695, %v2156_v20  ;;  %v2186_v14 = vmul.f32 1.442695, %v2157_v35  ;;  %v2188_v29 = vmul.f32 1.442695, %v2158_v57 }
 0x7db   :  { %2422 = vpow2.f32 %v2170_v49  ;;  %v2190_v18 = vmul.f32 1.442695, %v2159_v31 }
 0x7dc   :  { %v4032_v56 = vpop.eup %2412  ;;  %2424 = vpow2.f32 %v2172_v23 }
 0x7dd   :  { %v4036_v36 = vpop.eup %2414  ;;  %2426 = vpow2.f32 %v2174_v2 }
 0x7de   :  { %v4040_v24 = vpop.eup %2416  ;;  %2428 = vpow2.f32 %v2176_v26 }
 0x7df   :  { %v4042_v12 = vpop.eup %2418  ;;  %2430 = vpow2.f32 %v2178_v47 }
 0x7e0   :  { %v4044_v16 = vpop.eup %2420  ;;  %2432 = vpow2.f32 %v2180_v1 }
 0x7e1   :  { %v4046_v9 = vpop.eup %2422  ;;  %2434 = vpow2.f32 %v2182_v53  ;;  %v2192_v61 = vadd.f32 %v4044_v16, %v4032_v56 }
 0x7e2   :  { %v4048_v63 = vpop.eup %2424  ;;  %2436 = vpow2.f32 %v2184_v58  ;;  %v2202_v45 = vadd.f32 %v4046_v9, %v4036_v36 }
 0x7e3   :  { %v4052_v38 = vpop.eup %2426  ;;  %2438 = vpow2.f32 %v2186_v14  ;;  %v2212_v15 = vadd.f32 %v4048_v63, %v4040_v24 }
 0x7e4   :  { %v4056_v21 = vpop.eup %2428  ;;  %2440 = vpow2.f32 %v2188_v29  ;;  %v2222_v55 = vadd.f32 %v4052_v38, %v4042_v12 }
 0x7e5   :  { %v4060_v5 = vpop.eup %2430  ;;  %2442 = vpow2.f32 %v2190_v18  ;;  %v2193_v32 = vadd.f32 %v4056_v21, %v2192_v61 }
 0x7e6   :  { %v4064_v62 = vpop.eup %2432  ;;  %v2203_v10 = vadd.f32 %v4060_v5, %v2202_v45 }
 0x7e7   :  { %v4067_v3 = vpop.eup %2434  ;;  %v2213_v19 = vadd.f32 %v4064_v62, %v2212_v15 }
 0x7e8   :  { %v4070_v44 = vpop.eup %2436  ;;  %v2223_v51 = vadd.f32 %v4067_v3, %v2222_v55 }
 0x7e9   :  { %v4073_v41 = vpop.eup %2438  ;;  %v2194_v25 = vsel %vm1890_vm0, %v4070_v44, 0.0 }
 0x7ea   :  { %v4078_v42 = vpop.eup %2440  ;;  %v2195_v59 = vadd.f32 %v2194_v25, %v2193_v32  ;;  %v2204_v4 = vsel %vm1890_vm0, %v4073_v41, 0.0 }
 0x7eb   :  { %v4082_v7 = vpop.eup %2442  ;;  %v2205_v54 = vadd.f32 %v2204_v4, %v2203_v10  ;;  %v2214_v43 = vsel %vm1890_vm0, %v4078_v42, 0.0 }
 0x7ec   :  { %v2196_v46 = vrot.slane %v2195_v59, 4  ;;  %v2215_v60 = vadd.f32 %v2214_v43, %v2213_v19  ;;  %v2224_v28 = vsel %vm1890_vm0, %v4082_v7, 0.0 }
 0x7ed   :  { %v2206_v0 = vrot.slane %v2205_v54, 4  ;;  %v2225_v40 = vadd.f32 %v2224_v28, %v2223_v51 }
 0x7ee   :  { %v2197_v48 = vadd.f32 %v2196_v46, %v2195_v59  ;;  %v2216_v39 = vrot.slane %v2215_v60, 4 }
 0x7ef   :  { %v2207_v13 = vadd.f32 %v2206_v0, %v2205_v54  ;;  %v2226_v30 = vrot.slane %v2225_v40, 4 }
 0x7f0   :  { %v2198_v37 = vrot.slane %v2197_v48, 2  ;;  %v2217_v17 = vadd.f32 %v2216_v39, %v2215_v60 }
 0x7f1   :  { %v2208_v22 = vrot.slane %v2207_v13, 2  ;;  %v2227_v33 = vadd.f32 %v2226_v30, %v2225_v40 }
 0x7f2   :  { %v2199_v34 = vadd.f32 %v2198_v37, %v2197_v48  ;;  %v2218_v8 = vrot.slane %v2217_v17, 2 }
 0x7f3   :  { %v2209_v27 = vadd.f32 %v2208_v22, %v2207_v13  ;;  %v2228_v6 = vrot.slane %v2227_v33, 2 }
 0x7f4   :  { %v2200_v11 = vrot.slane %v2199_v34, 1  ;;  %v2219_v49 = vadd.f32 %v2218_v8, %v2217_v17 }
 0x7f5   :  { %v2210_v52 = vrot.slane %v2209_v27, 1  ;;  %v2229_v23 = vadd.f32 %v2228_v6, %v2227_v33 }
 0x7f6   :  { %v2201_v50 = vadd.f32 %v2200_v11, %v2199_v34  ;;  %v2220_v2 = vrot.slane %v2219_v49, 1 }
 0x7f7   :  { %v2211_v20 = vadd.f32 %v2210_v52, %v2209_v27  ;;  %v2230_v26 = vrot.slane %v2229_v23, 1 }
 0x7f8   :  { %v2221_v35 = vadd.f32 %v2220_v2, %v2219_v49  ;;  %2444 = vrcp.f32 %v2201_v50  ;;  %v2241_v57 = vand.u32 2147483647, %v2201_v50  ;;  %v2243_v31 = vand.u32 2147483648, %v2201_v50 }
 0x7f9   :  { %v4088_v47 = vadd.f32 %v2230_v26, %v2229_v23  ;;  %2446 = vrcp.f32 %v2211_v20  ;;  %vm2237_vm10 = vweird.f32 %v2201_v50  ;;  %vm2251_vm11 = vweird.f32 %v2211_v20 }
 0x7fa   :  { %2448 = vrcp.f32 %v2221_v35  ;;  %vm4091_vm12 = vcmp.eq.f32.partialorder %v2241_v57, 8.507059e+37  ;;  %v2255_v45 = vand.u32 2147483647, %v2211_v20  ;;  %v2244_v32 = vor.u32 1.1754944e-38, %v2243_v31 }
 0x7fb   :  { %2450 = vrcp.f32 %v4088_v47  ;;  %v2257_v19 = vand.u32 2147483648, %v2211_v20  ;;  %vm2265_vm0 = vweird.f32 %v2221_v35  ;;  %v2269_v54 = vand.u32 2147483647, %v2221_v35 }
 0x7fc   :  { %v2271_v43 = vand.u32 2147483648, %v2221_v35  ;;  %vm2256_vm5 = vcmp.eq.f32.partialorder %v2255_v45, 8.507059e+37  ;;  %v2285_v48 = vand.u32 2147483648, %v4088_v47  ;;  %vm2279_vm14 = vweird.f32 %v4088_v47 }
 0x7fd   :  { %v2258_v40 = vor.u32 1.1754944e-38, %v2257_v19  ;;  %v2283_v33 = vand.u32 2147483647, %v4088_v47  ;;  %vm2270_vm8 = vcmp.eq.f32.partialorder %v2269_v54, 8.507059e+37 }
 0x7fe   :  { %v2445_v1 = vpop.eup %2444  ;;  %v2272_v11 = vor.u32 1.1754944e-38, %v2271_v43  ;;  %v2286_v2 = vor.u32 1.1754944e-38, %v2285_v48 }
 0x7ff   :  { %v2447_v53 = vpop.eup %2446  ;;  %v2233_v58 = vmul.f32 %v2445_v1, %v2201_v50  ;;  %vm2238_vm1 = vweird.f32 %v2445_v1  ;;  %vm2284_vm9 = vcmp.eq.f32.partialorder %v2283_v33, 8.507059e+37 }
 0x800   :  { %v2449_v14 = vpop.eup %2448  ;;  %v2247_v29 = vmul.f32 %v2447_v53, %v2211_v20  ;;  %vm2252_vm2 = vweird.f32 %v2447_v53  ;;  %vm2239_vm4 = vmor %vm2237_vm10, %vm2238_vm1 }
 0x801   :  { %v2234_v18 = vsub.f32 1.0, %v2233_v58  ;;  %v2261_v15 = vmul.f32 %v2449_v14, %v2221_v35  ;;  %v2451_v55 = vpop.eup %2450  ;;  %vm2266_vm3 = vweird.f32 %v2449_v14  ;;  %vm2253_vm6 = vmor %vm2251_vm11, %vm2252_vm2 }
 0x802   :  { %v2248_v10 = vsub.f32 1.0, %v2247_v29  ;;  %v2275_v59 = vmul.f32 %v2451_v55, %v4088_v47  ;;  %vm2280_vm7 = vweird.f32 %v2451_v55  ;;  %vm4103_vm13 = vmor %vm2265_vm0, %vm2266_vm3 }
 0x803   :  { %v2235_v25 = vmul.f32 %v2445_v1, %v2234_v18  ;;  %v2262_v51 = vsub.f32 1.0, %v2261_v15  ;;  %vm2281_vm15 = vmor %vm2279_vm14, %vm2280_vm7 }
 0x804   :  { %v2249_v4 = vmul.f32 %v2447_v53, %v2248_v10  ;;  %v2276_v28 = vsub.f32 1.0, %v2275_v59 }
 0x805   :  { %v2236_v46 = vadd.f32 %v2445_v1, %v2235_v25  ;;  %v2263_v60 = vmul.f32 %v2449_v14, %v2262_v51 }
 0x806   :  { %v2250_v0 = vadd.f32 %v2447_v53, %v2249_v4  ;;  %v2277_v30 = vmul.f32 %v2451_v55, %v2276_v28 }
 0x807   :  { %v2240_v39 = vsel %vm2239_vm4, %v2445_v1, %v2236_v46  ;;  %v2264_v13 = vadd.f32 %v2449_v14, %v2263_v60 }
 0x808   :  { %v2245_v37 = vsel %vm4091_vm12, %v2244_v32, %v2240_v39  ;;  %v2254_v17 = vsel %vm2253_vm6, %v2447_v53, %v2250_v0  ;;  %v2278_v27 = vadd.f32 %v2451_v55, %v2277_v30 }
 0x809   :  { %v2259_v34 = vsel %vm2256_vm5, %v2258_v40, %v2254_v17  ;;  %v2268_v8 = vsel %vm4103_vm13, %v2449_v14, %v2264_v13  ;;  %v2288_v6 = vmul.f32 %v4032_v56, %v2245_v37  ;;  %v2292_v52 = vmul.f32 %v4044_v16, %v2245_v37 }
 0x80a   :  { %v2289_v49 = vmul.f32 %v4036_v36, %v2259_v34  ;;  %v2293_v23 = vmul.f32 %v4046_v9, %v2259_v34  ;;  %v2282_v50 = vsel %vm2281_vm15, %v2451_v55, %v2278_v27  ;;  %v2296_v20 = vmul.f32 %v4056_v21, %v2245_v37 }
 0x80b   :  { %2304 = vst [vmem:[%s4181_s6] sm:$0xff] %v2288_v6  ;;  %v2273_v26 = vsel %vm2270_vm8, %v2272_v11, %v2268_v8  ;;  %v2297_v56 = vmul.f32 %v4060_v5, %v2259_v34  ;;  %v2287_v36 = vsel %vm2284_vm9, %v2286_v2, %v2282_v50  ;;  %v2300_v16 = vmul.f32 %v4070_v44, %v2245_v37 }
 0x80c   :  { %2305 = vst [vmem:[%s4181_s6 + $0x8] sm:$0xff] %v2289_v49  ;;  %v2301_v9 = vmul.f32 %v4073_v41, %v2259_v34  ;;  %v2290_v21 = vmul.f32 %v4040_v24, %v2273_v26  ;;  %v2291_v5 = vmul.f32 %v4042_v12, %v2287_v36  ;;  %v2294_v44 = vmul.f32 %v4048_v63, %v2273_v26 }
 0x80d   :  { %2306 = vst [vmem:[%s4181_s6 + $0x10] sm:$0xff] %v2292_v52  ;;  %v2295_v41 = vmul.f32 %v4052_v38, %v2287_v36  ;;  %v2298_v24 = vmul.f32 %v4064_v62, %v2273_v26  ;;  %v2299_v12 = vmul.f32 %v4067_v3, %v2287_v36  ;;  %v2302_v63 = vmul.f32 %v4078_v42, %v2273_v26 }
 0x80e   :  { %2307 = vst [vmem:[%s4181_s6 + $0x18] sm:$0xff] %v2293_v23  ;;  %v2303_v38 = vmul.f32 %v4082_v7, %v2287_v36 }
 0x80f   :  { %2308 = vst [vmem:[%s4181_s6 + $0x20] sm:$0xff] %v2296_v20 }
 0x810   :  { %2309 = vst [vmem:[%s4181_s6 + $0x28] sm:$0xff] %v2297_v56 }
 0x811   :  { %2310 = vst [vmem:[%s4181_s6 + $0x30] sm:$0x1] %v2300_v16 }
 0x812   :  { %2311 = vst [vmem:[%s4181_s6 + $0x38] sm:$0x1] %v2301_v9 }
 0x813   :  { %2378 = vst [vmem:[%s4181_s6 + $0x40] sm:$0xff] %v2290_v21 }
 0x814   :  { %2379 = vst [vmem:[%s4181_s6 + $0x48] sm:$0xff] %v2291_v5 }
 0x815   :  { %2380 = vst [vmem:[%s4181_s6 + $0x50] sm:$0xff] %v2294_v44 }
 0x816   :  { %2381 = vst [vmem:[%s4181_s6 + $0x58] sm:$0xff] %v2295_v41 }
 0x817   :  { %2382 = vst [vmem:[%s4181_s6 + $0x60] sm:$0xff] %v2298_v24 }
 0x818   :  { %2383 = vst [vmem:[%s4181_s6 + $0x68] sm:$0xff] %v2299_v12 }
 0x819   :  { %2384 = vst [vmem:[%s4181_s6 + $0x70] sm:$0x1] %v2302_v63 }
 0x81a   :  { %2385 = vst [vmem:[%s4181_s6 + $0x78] sm:$0x1] %v2303_v38 }

</bundles_post_ra>
